<compile_context>
chip_gen: v6e
topology: v6e:2x2x1
jax: 0.10.0
libtpu: 0.0.40
codegen_flags: <defaults>
</compile_context>

<pallas_src>
import functools
import numpy as np

import jax
import jax.numpy as jnp
from jax.experimental import pallas as pl
from jax.experimental.pallas import tpu as pltpu

LN_EPS = 1e-5


# ------------------------------------------------------------------ small helpers

def _layernorm(y, g, b):
    mu = jnp.mean(y, axis=-1, keepdims=True)
    var = jnp.mean((y - mu) ** 2, axis=-1, keepdims=True)
    return (y - mu) * jax.lax.rsqrt(var + LN_EPS) * g + b


def _wspec(a):
    # full-array (weight) block, same block for every grid step
    return pl.BlockSpec(a.shape, lambda i: (0,) * a.ndim)


# ------------------------------------------------------------------ fused 3-layer MLP
# MeshGraphMLP(hidden_layers=2): Lin-ReLU-Lin-ReLU-Lin[-LayerNorm].  Used by the node
# encoder, edge encoder (once per rollout) and node decoder.

def _mlp3_kernel(x_ref, w1_ref, b1_ref, w2_ref, b2_ref, w3_ref, b3_ref,
                 g_ref, bt_ref, o_ref, *, use_ln):
    x = x_ref[...].astype(jnp.bfloat16)
    h = jnp.dot(x, w1_ref[...], preferred_element_type=jnp.float32) + b1_ref[...]
    h = jnp.maximum(h, 0.0).astype(jnp.bfloat16)          # bf16 hidden: fewer vregs/casts
    h = jnp.dot(h, w2_ref[...], preferred_element_type=jnp.float32) + b2_ref[...]
    h = jnp.maximum(h, 0.0).astype(jnp.bfloat16)
    y = jnp.dot(h, w3_ref[...], preferred_element_type=jnp.float32) + b3_ref[...]
    if use_ln:
        y = _layernorm(y, g_ref[...], bt_ref[...])
    o_ref[...] = y.astype(o_ref.dtype)


def run_mlp(x, p, *, use_ln, out_dtype, row_block):
    m, din = x.shape
    dout = p["w3"].shape[1]
    assert m % row_block == 0, (m, row_block)
    return pl.pallas_call(
        functools.partial(_mlp3_kernel, use_ln=use_ln),
        out_shape=jax.ShapeDtypeStruct((m, dout), out_dtype),
        grid=(m // row_block,),
        in_specs=[pl.BlockSpec((row_block, din), lambda i: (i, 0)),
                  _wspec(p["w1"]), _wspec(p["b1"]),
                  _wspec(p["w2"]), _wspec(p["b2"]),
                  _wspec(p["w3"]), _wspec(p["b3"]),
                  _wspec(p["g"]), _wspec(p["bt"])],
        out_specs=pl.BlockSpec((row_block, dout), lambda i: (i, 0)),
        compiler_params=pltpu.CompilerParams(dimension_semantics=("parallel",),
                                             vmem_limit_bytes=32 * 1024 * 1024),
    )(x, p["w1"], p["b1"], p["w2"], p["b2"], p["w3"], p["b3"], p["g"], p["bt"])


# ------------------------------------------------------------------ fused processor layer
# One MeshEdgeBlock + MeshNodeBlock per pallas_call:
#   e' = LN(MLP_e([e, n_src, n_dst])) + e        (zeroed on padded CSC slots)
#   n' = LN(MLP_n([sum_{e->n} e', n])) + n
# Per grid step i (one tile of `node_tile` destination nodes):
#   n_ref    : (T, d)      old node features of the tile                 (bf16)
#   s_ref    : (T*K, d)    pre-gathered src-node rows, CSC slot order    (bf16)
#   e_ref    : (T*K, d)    old edge features, CSC slot order             (bf16)
#   m_ref    : (T*K, 1)    1.0 real slot / 0.0 padded slot               (f32)

def _processor_kernel(n_ref, s_ref, e_ref, m_ref,
                      ew1_ref, ewd_ref, eb1_ref, ew2_ref, eb2_ref, ew3_ref, eb3_ref,
                      eg_ref, ebt_ref,
                      nw1_ref, nb1_ref, nw2_ref, nb2_ref, nw3_ref, nb3_ref,
                      ng_ref, nbt_ref,
                      eo_ref, no_ref, *, node_tile, max_deg):
    n_bf = n_ref[...]                                     # (T, d)   bf16
    e_bf = e_ref[...]                                     # (T*K, d) bf16
    s_bf = s_ref[...]                                     # (T*K, d) bf16

    # -------- MeshEdgeBlock.  W1 split: K=2d fused dot on [e, n_src] (one deep-K MXU
    # pass) + a d x d dot for n_dst computed ONCE per node and replicated over the
    # max_deg slots (CSC dst sharing saves (K-1)/K of that matmul).
    es = jnp.concatenate([e_bf, s_bf], axis=-1)           # (T*K, 2d) bf16
    h = jnp.dot(es, ew1_ref[...], preferred_element_type=jnp.float32)
    dst = jnp.dot(n_bf, ewd_ref[...], preferred_element_type=jnp.float32)   # (T, d)
    h = h + jnp.concatenate([dst] * max_deg, axis=0) + eb1_ref[...]
    h = jnp.maximum(h, 0.0).astype(jnp.bfloat16)
    h = jnp.dot(h, ew2_ref[...], preferred_element_type=jnp.float32) + eb2_ref[...]
    h = jnp.maximum(h, 0.0).astype(jnp.bfloat16)
    y = jnp.dot(h, ew3_ref[...], preferred_element_type=jnp.float32) + eb3_ref[...]
    y = _layernorm(y, eg_ref[...], ebt_ref[...])
    e_new = (y + e_bf.astype(jnp.float32)) * m_ref[...]   # padded CSC slots forced to 0
    eo_ref[...] = e_new.astype(eo_ref.dtype)

    # -------- sum aggregation: CSC-contiguous, no scatter / no index loop.
    agg = e_new[0:node_tile, :]
    for k in range(1, max_deg):
        agg = agg + e_new[k * node_tile:(k + 1) * node_tile, :]

    # -------- MeshNodeBlock.  One K=2d fused dot on [agg, n].
    an = jnp.concatenate([agg.astype(jnp.bfloat16), n_bf], axis=-1)          # (T, 2d)
    h = jnp.dot(an, nw1_ref[...], preferred_element_type=jnp.float32) + nb1_ref[...]
    h = jnp.maximum(h, 0.0).astype(jnp.bfloat16)
    h = jnp.dot(h, nw2_ref[...], preferred_element_type=jnp.float32) + nb2_ref[...]
    h = jnp.maximum(h, 0.0).astype(jnp.bfloat16)
    y = jnp.dot(h, nw3_ref[...], preferred_element_type=jnp.float32) + nb3_ref[...]
    y = _layernorm(y, ng_ref[...], nbt_ref[...])
    no_ref[...] = (y + n_bf.astype(jnp.float32)).astype(no_ref.dtype)


def processor_block(nfeat, efeat, src_feat, emask, p, *, node_tile, max_deg):
    Npad, d = nfeat.shape
    Ep = efeat.shape[0]
    ET = node_tile * max_deg
    assert Ep == Npad * max_deg and Npad % node_tile == 0
    em, nm = p["edge_mlp"], p["node_mlp"]
    return pl.pallas_call(
        functools.partial(_processor_kernel, node_tile=node_tile, max_deg=max_deg),
        out_shape=(jax.ShapeDtypeStruct((Ep, d), jnp.bfloat16),
                   jax.ShapeDtypeStruct((Npad, d), jnp.bfloat16)),
        grid=(Npad // node_tile,),
        in_specs=[pl.BlockSpec((node_tile, d), lambda i: (i, 0)),
                  pl.BlockSpec((ET, d), lambda i: (i, 0)),
                  pl.BlockSpec((ET, d), lambda i: (i, 0)),
                  pl.BlockSpec((ET, 1), lambda i: (i, 0)),
                  _wspec(em["w1_es"]), _wspec(em["w1_d"]), _wspec(em["b1"]),
                  _wspec(em["w2"]), _wspec(em["b2"]), _wspec(em["w3"]), _wspec(em["b3"]),
                  _wspec(em["g"]), _wspec(em["bt"]),
                  _wspec(nm["w1_an"]), _wspec(nm["b1"]),
                  _wspec(nm["w2"]), _wspec(nm["b2"]), _wspec(nm["w3"]), _wspec(nm["b3"]),
                  _wspec(nm["g"]), _wspec(nm["bt"])],
        out_specs=(pl.BlockSpec((ET, d), lambda i: (i, 0)),
                   pl.BlockSpec((node_tile, d), lambda i: (i, 0))),
        compiler_params=pltpu.CompilerParams(dimension_semantics=("parallel",),
                                             vmem_limit_bytes=32 * 1024 * 1024),
    )(nfeat, src_feat, efeat, emask,
      em["w1_es"], em["w1_d"], em["b1"], em["w2"], em["b2"], em["w3"], em["b3"],
      em["g"], em["bt"],
      nm["w1_an"], nm["b1"], nm["w2"], nm["b2"], nm["w3"], nm["b3"], nm["g"], nm["bt"])


# ------------------------------------------------------------------ graph construction
# Replicates create_grid_2d_graph(height, width, periodic=(False, True)) +
# create_edge_features + update_batched_graph, but pre-sorts the directed edges into a
# CSC slot layout padded to max_deg, so the kernels need no gather/scatter indices.

def build_batched_graph(H, W, B, *, node_tile, edge_feat_pad):
    assert H == W and H > 2, "edge-feature wrap trick assumes a square grid with H == W > 2"
    N = H * W
    und = []
    for i in range(H):
        for j in range(W):
            u = i * W + j
            if i + 1 < H:                                 # rows: non-periodic
                und.append((u, (i + 1) * W + j))
            und.append((u, i * W + (j + 1) % W))          # cols: periodic wrap
    src = np.array([u for u, v in und] + [v for u, v in und], dtype=np.int64)
    dst = np.array([v for u, v in und] + [u for u, v in und], dtype=np.int64)

    uxy = np.stack([src // W, src % W], axis=1)
    vxy = np.stack([dst // W, dst % W], axis=1)
    normal = (vxy - uxy).astype(np.int64)
    normal[normal == (H - 1)] = -1
    normal[normal == -(H - 1)] = 1
    efeat = normal.astype(np.float32)                     # [E_single, 2]

    src_b = np.concatenate([src + b * N for b in range(B)])
    dst_b = np.concatenate([dst + b * N for b in range(B)])
    efeat_b = np.concatenate([efeat] * B, axis=0)

    Nt = B * N
    Np = ((Nt + node_tile - 1) // node_tile) * node_tile
    deg = np.zeros((Nt,), np.int64)
    np.add.at(deg, dst_b, 1)
    max_deg = int(deg.max())
    Ep = Np * max_deg

    # CSC slot layout: for destination node n = tile*node_tile + r and its k-th incoming
    # edge, slot index = tile*node_tile*max_deg + k*node_tile + r.  Within a tile the rows
    # are slot-major, so aggregation = sum of max_deg contiguous slices and the dst rows
    # are just max_deg stacked copies of the node tile.  Missing slots are zero-masked.
    src_slot = np.zeros((Ep,), np.int32)
    ef_slot = np.zeros((Ep, edge_feat_pad), np.float32)
    mask_slot = np.zeros((Ep, 1), np.float32)
    fill = np.zeros((Nt,), np.int64)
    for e in range(src_b.shape[0]):
        n = int(dst_b[e])
        k = int(fill[n]); fill[n] += 1
        tile, r = divmod(n, node_tile)
        slot = tile * node_tile * max_deg + k * node_tile + r
        src_slot[slot] = src_b[e]
        ef_slot[slot, :efeat_b.shape[1]] = efeat_b[e]
        mask_slot[slot, 0] = 1.0

    garrays = {"src_idx": jnp.asarray(src_slot),          # (Ep,)  int32
               "emask": jnp.asarray(mask_slot),           # (Ep,1) f32
               "edge_in": jnp.asarray(ef_slot)}           # (Ep,edge_feat_pad) f32
    gstatic = {"num_nodes": Nt, "Np": Np, "Ep": Ep, "max_deg": max_deg}
    return garrays, gstatic


# ------------------------------------------------------------------ parameter init
# Weight matrices stored bf16 (MXU operands); biases / LayerNorm params f32.

def _linear(key, fan_in, shape_w, shape_b):
    kw, kb = jax.random.split(key)
    bound = 1.0 / np.sqrt(fan_in)
    w = jax.random.uniform(kw, shape_w, jnp.float32, -bound, bound)
    b = jax.random.uniform(kb, shape_b, jnp.float32, -bound, bound)
    return w, b


def init_mlp_params(key, din, dh, dout, *, dout_pad=None):
    dout_pad = dout if dout_pad is None else dout_pad
    k1, k2, k3 = jax.random.split(key, 3)
    w1, b1 = _linear(k1, din, (din, dh), (1, dh))
    w2, b2 = _linear(k2, dh, (dh, dh), (1, dh))
    w3, b3 = _linear(k3, dh, (dh, dout), (1, dout))
    if dout_pad != dout:                                  # lane-dense decoder output
        w3 = jnp.pad(w3, ((0, 0), (0, dout_pad - dout)))
        b3 = jnp.pad(b3, ((0, 0), (0, dout_pad - dout)))
    return {"w1": w1.astype(jnp.bfloat16), "b1": b1,
            "w2": w2.astype(jnp.bfloat16), "b2": b2,
            "w3": w3.astype(jnp.bfloat16), "b3": b3,
            "g": jnp.ones((1, dout_pad), jnp.float32),
            "bt": jnp.zeros((1, dout_pad), jnp.float32)}


def init_edge_mlp(key, dh):
    k1, k2, k3 = jax.random.split(key, 3)
    w1, b1 = _linear(k1, 3 * dh, (3 * dh, dh), (1, dh))   # one Linear(3h, h), split rows
    w2, b2 = _linear(k2, dh, (dh, dh), (1, dh))
    w3, b3 = _linear(k3, dh, (dh, dh), (1, dh))
    return {"w1_es": w1[:2 * dh].astype(jnp.bfloat16),    # fused K=2h operand for [e, src]
            "w1_d": w1[2 * dh:].astype(jnp.bfloat16),     # dst part (applied once per node)
            "b1": b1, "w2": w2.astype(jnp.bfloat16), "b2": b2,
            "w3": w3.astype(jnp.bfloat16), "b3": b3,
            "g": jnp.ones((1, dh), jnp.float32), "bt": jnp.zeros((1, dh), jnp.float32)}


def init_node_mlp(key, dh):
    k1, k2, k3 = jax.random.split(key, 3)
    w1, b1 = _linear(k1, 2 * dh, (2 * dh, dh), (1, dh))   # one Linear(2h, h), kept fused
    w2, b2 = _linear(k2, dh, (dh, dh), (1, dh))
    w3, b3 = _linear(k3, dh, (dh, dh), (1, dh))
    return {"w1_an": w1.astype(jnp.bfloat16),
            "b1": b1, "w2": w2.astype(jnp.bfloat16), "b2": b2,
            "w3": w3.astype(jnp.bfloat16), "b3": b3,
            "g": jnp.ones((1, dh), jnp.float32), "bt": jnp.zeros((1, dh), jnp.float32)}


def init_mgn_params(key, node_feat_pad, edge_feat_pad, hidden, output_dim, dout_pad,
                    processor_size):
    keys = jax.random.split(key, 3 + 2 * processor_size)
    return {
        "node_encoder": init_mlp_params(keys[0], node_feat_pad, hidden, hidden),
        "edge_encoder": init_mlp_params(keys[1], edge_feat_pad, hidden, hidden),
        "node_decoder": init_mlp_params(keys[2], hidden, hidden, output_dim,
                                        dout_pad=dout_pad),
        "processor": [{"edge_mlp": init_edge_mlp(keys[3 + 2 * i], hidden),
                       "node_mlp": init_node_mlp(keys[4 + 2 * i], hidden)}
                      for i in range(processor_size)],
    }


# ------------------------------------------------------------------ model forward

def _mgn_step(params, src_idx, emask, efeat0, x_t, *, mp_steps, node_tile, max_deg,
              num_nodes, Np, node_feat_pad, output_dim):
    """One timestep of update_nodes_and_edges (node encode -> processor -> decode)."""
    B, Din, H, W = x_t.shape
    node_features = jnp.transpose(x_t, (0, 2, 3, 1)).reshape(B * H * W, Din)   # 'b d h w -> (b h w) d'
    nf_in = jnp.zeros((Np, node_feat_pad), jnp.float32).at[:num_nodes, :Din].set(node_features)

    nfeat = run_mlp(nf_in, params["node_encoder"], use_ln=True,
                    out_dtype=jnp.bfloat16, row_block=node_tile)
    for _ in range(mp_steps):
        efeat = efeat0                                     # processor re-reads encoded edges
        for blk in params["processor"]:
            # vectorized src-row gather (XLA) in CSC slot order; kernels need no indices
            src_feat = jnp.take(nfeat, src_idx, axis=0)
            efeat, nfeat = processor_block(nfeat, efeat, src_feat, emask, blk,
                                           node_tile=node_tile, max_deg=max_deg)
    dec = run_mlp(nfeat, params["node_decoder"], use_ln=False,
                  out_dtype=jnp.float32, row_block=node_tile)
    out_nodes = dec[:num_nodes, :output_dim]
    return jnp.transpose(out_nodes.reshape(B, H, W, output_dim), (0, 3, 1, 2))


def mgn_forward(params, garrays, gstatic, constants, prescribed, prognostic,
                *, context_size, message_passing_steps, node_tile, node_feat_pad,
                output_dim):
    B, T, Cp, H, W = prognostic.shape

    # Edge input features are static per graph: encode ONCE per rollout (hoisted).
    erb = node_tile * gstatic["max_deg"]
    enc = run_mlp(garrays["edge_in"], params["edge_encoder"], use_ln=True,
                  out_dtype=jnp.float32, row_block=erb)
    efeat0 = (enc * garrays["emask"]).astype(jnp.bfloat16)   # zero the padded CSC slots

    step = jax.jit(functools.partial(
        _mgn_step, mp_steps=message_passing_steps, node_tile=node_tile,
        max_deg=gstatic["max_deg"], num_nodes=gstatic["num_nodes"], Np=gstatic["Np"],
        node_feat_pad=node_feat_pad, output_dim=output_dim))

    outs = []
    for t in range(context_size, T):
        t_start = max(0, t - context_size)
        if t == context_size:
            prog_t = prognostic[:, t_start:t]
        else:
            # TODO(synk): the reference else-branch calls .to() on a Python list (bug);
            # we implement the intended autoregressive concat semantics here.
            prev = jnp.stack(outs, axis=1)[:, -context_size:]
            prog_t = jnp.concatenate([prognostic[:, t_start:context_size], prev], axis=1)

        tensors = []
        if constants is not None:
            tensors.append(constants[:, 0])
        if prescribed is not None:
            pres_t = prescribed[:, t - context_size:t]
            tensors.append(pres_t.reshape(B, context_size * pres_t.shape[2], H, W))
        tensors.append(prog_t.reshape(B, context_size * Cp, H, W))
        x_t = jnp.concatenate(tensors, axis=1)             # (B, D_in, H, W) NCHW

        out_img = step(params, garrays["src_idx"], garrays["emask"], efeat0, x_t)
        outs.append(prog_t[:, -1] + out_img)
    return jnp.stack(outs, axis=1)


# ------------------------------------------------------------------ main

if __name__ == "__main__":
    # Small, self-consistent configuration
    B, H, W = 2, 8, 8
    context_size = 2
    constant_channels, prescribed_channels, prognostic_channels = 1, 1, 1
    input_dim_edges = 2
    hidden = 128                        # hidden_dim_processor default (lane-dense)
    processor_size = 3
    message_passing_steps = 1
    T = context_size + 2                # two output timesteps (exercises autoregressive step)

    NODE_TILE = 256                     # >=256 rows per tile (review); edge rows/tile = 1024
    NODE_FEAT_PAD = 128                 # lane-dense input features
    EDGE_FEAT_PAD = 128
    DOUT_PAD = 128                      # lane-dense decoder store, sliced once outside

    input_dim_nodes = constant_channels + (prescribed_channels + prognostic_channels) * context_size
    output_dim = prognostic_channels
    assert input_dim_nodes <= NODE_FEAT_PAD and input_dim_edges <= EDGE_FEAT_PAD

    key = jax.random.PRNGKey(0)
    kp, kc, kpre, kpro = jax.random.split(key, 4)

    garrays, gstatic = build_batched_graph(H, W, B, node_tile=NODE_TILE,
                                           edge_feat_pad=EDGE_FEAT_PAD)
    params = init_mgn_params(kp, NODE_FEAT_PAD, EDGE_FEAT_PAD, hidden, output_dim,
                             DOUT_PAD, processor_size)

    constants = jax.random.normal(kc, (B, 1, constant_channels, H, W), jnp.float32)
    prescribed = jax.random.normal(kpre, (B, T, prescribed_channels, H, W), jnp.float32)
    prognostic = jax.random.normal(kpro, (B, T, prognostic_channels, H, W), jnp.float32)

    out = mgn_forward(params, garrays, gstatic, constants, prescribed, prognostic,
                      context_size=context_size,
                      message_passing_steps=message_passing_steps,
                      node_tile=NODE_TILE, node_feat_pad=NODE_FEAT_PAD,
                      output_dim=output_dim)
    out = jax.block_until_ready(out)
    assert out.shape == (B, T - context_size, prognostic_channels, H, W), out.shape
    assert bool(jnp.all(jnp.isfinite(out)))
    print("KERNEL_OK")
</pallas_src>

<mosaic_0001>
module attributes {stable_mosaic.version = 11 : i64} {
  func.func @_mlp3_kernel(%arg0: i32, %arg1: memref<1024x128xf32, #tpu.memory_space<vmem>>, %arg2: memref<128x128xbf16, #tpu.memory_space<vmem>>, %arg3: memref<1x128xf32, #tpu.memory_space<vmem>>, %arg4: memref<128x128xbf16, #tpu.memory_space<vmem>>, %arg5: memref<1x128xf32, #tpu.memory_space<vmem>>, %arg6: memref<128x128xbf16, #tpu.memory_space<vmem>>, %arg7: memref<1x128xf32, #tpu.memory_space<vmem>>, %arg8: memref<1x128xf32, #tpu.memory_space<vmem>>, %arg9: memref<1x128xf32, #tpu.memory_space<vmem>>, %arg10: memref<1024x128xf32, #tpu.memory_space<vmem>>) attributes {dimension_semantics = [#tpu.dimension_semantics<parallel>], iteration_bounds = array<i64: 1>, scalar_prefetch = 0 : i64, scratch_operands = 0 : i64, tpu.core_type = #tpu.core_type<tc>, window_params = [{transform_indices = @transform_0, window_bounds = array<i64: 1024, 128>}, {pipeline_mode = #tpu.pipeline_mode<synchronous>, transform_indices = @transform_1, window_bounds = array<i64: 128, 128>}, {pipeline_mode = #tpu.pipeline_mode<synchronous>, transform_indices = @transform_2, window_bounds = array<i64: 1, 128>}, {pipeline_mode = #tpu.pipeline_mode<synchronous>, transform_indices = @transform_3, window_bounds = array<i64: 128, 128>}, {pipeline_mode = #tpu.pipeline_mode<synchronous>, transform_indices = @transform_4, window_bounds = array<i64: 1, 128>}, {pipeline_mode = #tpu.pipeline_mode<synchronous>, transform_indices = @transform_5, window_bounds = array<i64: 128, 128>}, {pipeline_mode = #tpu.pipeline_mode<synchronous>, transform_indices = @transform_6, window_bounds = array<i64: 1, 128>}, {pipeline_mode = #tpu.pipeline_mode<synchronous>, transform_indices = @transform_7, window_bounds = array<i64: 1, 128>}, {pipeline_mode = #tpu.pipeline_mode<synchronous>, transform_indices = @transform_8, window_bounds = array<i64: 1, 128>}, {transform_indices = @transform_9, window_bounds = array<i64: 1024, 128>}]} {
    %c0 = arith.constant 0 : index
    %c0_0 = arith.constant 0 : index
    %0 = vector.load %arg1[%c0, %c0_0] : memref<1024x128xf32, #tpu.memory_space<vmem>>, vector<1024x128xf32>
    %1 = arith.truncf %0 : vector<1024x128xf32> to vector<1024x128xbf16>
    %c0_1 = arith.constant 0 : index
    %c0_2 = arith.constant 0 : index
    %2 = vector.load %arg2[%c0_1, %c0_2] : memref<128x128xbf16, #tpu.memory_space<vmem>>, vector<128x128xbf16>
    %cst = arith.constant dense<0.000000e+00> : vector<1024x128xf32>
    %3 = tpu.matmul %1, %2, %cst {dimension_numbers = #tpu.dot_dimension_numbers<[1], [0], [0], [1], [0, 0, 1, 1], [], []>} : vector<1024x128xbf16>, vector<128x128xbf16>, vector<1024x128xf32> -> vector<1024x128xf32>
    %c0_3 = arith.constant 0 : index
    %c0_4 = arith.constant 0 : index
    %4 = vector.load %arg3[%c0_3, %c0_4] : memref<1x128xf32, #tpu.memory_space<vmem>>, vector<1x128xf32>
    %5 = vector.broadcast %4 : vector<1x128xf32> to vector<1024x128xf32>
    %6 = arith.addf %3, %5 : vector<1024x128xf32>
    %cst_5 = arith.constant 0.000000e+00 : f32
    %7 = vector.broadcast %cst_5 : f32 to vector<1024x128xf32>
    %8 = arith.maximumf %6, %7 : vector<1024x128xf32>
    %9 = arith.truncf %8 : vector<1024x128xf32> to vector<1024x128xbf16>
    %c0_6 = arith.constant 0 : index
    %c0_7 = arith.constant 0 : index
    %10 = vector.load %arg4[%c0_6, %c0_7] : memref<128x128xbf16, #tpu.memory_space<vmem>>, vector<128x128xbf16>
    %cst_8 = arith.constant dense<0.000000e+00> : vector<1024x128xf32>
    %11 = tpu.matmul %9, %10, %cst_8 {dimension_numbers = #tpu.dot_dimension_numbers<[1], [0], [0], [1], [0, 0, 1, 1], [], []>} : vector<1024x128xbf16>, vector<128x128xbf16>, vector<1024x128xf32> -> vector<1024x128xf32>
    %c0_9 = arith.constant 0 : index
    %c0_10 = arith.constant 0 : index
    %12 = vector.load %arg5[%c0_9, %c0_10] : memref<1x128xf32, #tpu.memory_space<vmem>>, vector<1x128xf32>
    %13 = vector.broadcast %12 : vector<1x128xf32> to vector<1024x128xf32>
    %14 = arith.addf %11, %13 : vector<1024x128xf32>
    %cst_11 = arith.constant 0.000000e+00 : f32
    %15 = vector.broadcast %cst_11 : f32 to vector<1024x128xf32>
    %16 = arith.maximumf %14, %15 : vector<1024x128xf32>
    %17 = arith.truncf %16 : vector<1024x128xf32> to vector<1024x128xbf16>
    %c0_12 = arith.constant 0 : index
    %c0_13 = arith.constant 0 : index
    %18 = vector.load %arg6[%c0_12, %c0_13] : memref<128x128xbf16, #tpu.memory_space<vmem>>, vector<128x128xbf16>
    %cst_14 = arith.constant dense<0.000000e+00> : vector<1024x128xf32>
    %19 = tpu.matmul %17, %18, %cst_14 {dimension_numbers = #tpu.dot_dimension_numbers<[1], [0], [0], [1], [0, 0, 1, 1], [], []>} : vector<1024x128xbf16>, vector<128x128xbf16>, vector<1024x128xf32> -> vector<1024x128xf32>
    %c0_15 = arith.constant 0 : index
    %c0_16 = arith.constant 0 : index
    %20 = vector.load %arg7[%c0_15, %c0_16] : memref<1x128xf32, #tpu.memory_space<vmem>>, vector<1x128xf32>
    %21 = vector.broadcast %20 : vector<1x128xf32> to vector<1024x128xf32>
    %22 = arith.addf %19, %21 : vector<1024x128xf32>
    %c0_17 = arith.constant 0 : index
    %c0_18 = arith.constant 0 : index
    %23 = vector.load %arg8[%c0_17, %c0_18] : memref<1x128xf32, #tpu.memory_space<vmem>>, vector<1x128xf32>
    %c0_19 = arith.constant 0 : index
    %c0_20 = arith.constant 0 : index
    %24 = vector.load %arg9[%c0_19, %c0_20] : memref<1x128xf32, #tpu.memory_space<vmem>>, vector<1x128xf32>
    %cst_21 = arith.constant dense<0.000000e+00> : vector<1024xf32>
    %25 = vector.multi_reduction <add>, %22, %cst_21 [1] : vector<1024x128xf32> to vector<1024xf32>
    %26 = vector.shape_cast %25 : vector<1024xf32> to vector<1024x1xf32>
    %cst_22 = arith.constant 1.280000e+02 : f32
    %27 = vector.broadcast %cst_22 : f32 to vector<1024x1xf32>
    %28 = arith.divf %26, %27 : vector<1024x1xf32>
    %29 = vector.broadcast %28 : vector<1024x1xf32> to vector<1024x128xf32>
    %30 = arith.subf %22, %29 : vector<1024x128xf32>
    %31 = arith.mulf %30, %30 : vector<1024x128xf32>
    %cst_23 = arith.constant dense<0.000000e+00> : vector<1024xf32>
    %32 = vector.multi_reduction <add>, %31, %cst_23 [1] : vector<1024x128xf32> to vector<1024xf32>
    %33 = vector.shape_cast %32 : vector<1024xf32> to vector<1024x1xf32>
    %cst_24 = arith.constant 1.280000e+02 : f32
    %34 = vector.broadcast %cst_24 : f32 to vector<1024x1xf32>
    %35 = arith.divf %33, %34 : vector<1024x1xf32>
    %36 = vector.broadcast %28 : vector<1024x1xf32> to vector<1024x128xf32>
    %37 = arith.subf %22, %36 : vector<1024x128xf32>
    %cst_25 = arith.constant 9.99999974E-6 : f32
    %38 = vector.broadcast %cst_25 : f32 to vector<1024x1xf32>
    %39 = arith.addf %35, %38 : vector<1024x1xf32>
    %40 = math.rsqrt %39 : vector<1024x1xf32>
    %41 = vector.broadcast %40 : vector<1024x1xf32> to vector<1024x128xf32>
    %42 = arith.mulf %37, %41 : vector<1024x128xf32>
    %43 = vector.broadcast %23 : vector<1x128xf32> to vector<1024x128xf32>
    %44 = arith.mulf %42, %43 : vector<1024x128xf32>
    %45 = vector.broadcast %24 : vector<1x128xf32> to vector<1024x128xf32>
    %46 = arith.addf %44, %45 : vector<1024x128xf32>
    %c0_26 = arith.constant 0 : index
    %c0_27 = arith.constant 0 : index
    %47 = vector.load %arg10[%c0_26, %c0_27] : memref<1024x128xf32, #tpu.memory_space<vmem>>, vector<1024x128xf32>
    tpu.vector_store %arg10[%c0_26, %c0_27], %46 {strides = array<i32>} : memref<1024x128xf32, #tpu.memory_space<vmem>>, vector<1024x128xf32>,
    return
  }
  func.func @transform_0(%arg0: i32) -> (i32, i32) {
    %c0_i32 = arith.constant 0 : i32
    %c0_i32_0 = arith.constant 0 : i32
    return %arg0, %c0_i32 : i32, i32
  }
  func.func @transform_1(%arg0: i32) -> (i32, i32) {
    %c0_i32 = arith.constant 0 : i32
    %c0_i32_0 = arith.constant 0 : i32
    %c0_i32_1 = arith.constant 0 : i32
    return %c0_i32, %c0_i32_0 : i32, i32
  }
  func.func @transform_2(%arg0: i32) -> (i32, i32) {
    %c0_i32 = arith.constant 0 : i32
    %c0_i32_0 = arith.constant 0 : i32
    %c0_i32_1 = arith.constant 0 : i32
    return %c0_i32, %c0_i32_0 : i32, i32
  }
  func.func @transform_3(%arg0: i32) -> (i32, i32) {
    %c0_i32 = arith.constant 0 : i32
    %c0_i32_0 = arith.constant 0 : i32
    %c0_i32_1 = arith.constant 0 : i32
    return %c0_i32, %c0_i32_0 : i32, i32
  }
  func.func @transform_4(%arg0: i32) -> (i32, i32) {
    %c0_i32 = arith.constant 0 : i32
    %c0_i32_0 = arith.constant 0 : i32
    %c0_i32_1 = arith.constant 0 : i32
    return %c0_i32, %c0_i32_0 : i32, i32
  }
  func.func @transform_5(%arg0: i32) -> (i32, i32) {
    %c0_i32 = arith.constant 0 : i32
    %c0_i32_0 = arith.constant 0 : i32
    %c0_i32_1 = arith.constant 0 : i32
    return %c0_i32, %c0_i32_0 : i32, i32
  }
  func.func @transform_6(%arg0: i32) -> (i32, i32) {
    %c0_i32 = arith.constant 0 : i32
    %c0_i32_0 = arith.constant 0 : i32
    %c0_i32_1 = arith.constant 0 : i32
    return %c0_i32, %c0_i32_0 : i32, i32
  }
  func.func @transform_7(%arg0: i32) -> (i32, i32) {
    %c0_i32 = arith.constant 0 : i32
    %c0_i32_0 = arith.constant 0 : i32
    %c0_i32_1 = arith.constant 0 : i32
    return %c0_i32, %c0_i32_0 : i32, i32
  }
  func.func @transform_8(%arg0: i32) -> (i32, i32) {
    %c0_i32 = arith.constant 0 : i32
    %c0_i32_0 = arith.constant 0 : i32
    %c0_i32_1 = arith.constant 0 : i32
    return %c0_i32, %c0_i32_0 : i32, i32
  }
  func.func @transform_9(%arg0: i32) -> (i32, i32) {
    %c0_i32 = arith.constant 0 : i32
    %c0_i32_0 = arith.constant 0 : i32
    return %arg0, %c0_i32 : i32, i32
  }
}

</mosaic_0001>

<bundles_post_ra>
// kernel: tpu_custom_call.1
= control target key start
LH: loop header
LB: loop body
LE: loop exit
PB: predicated region body
PF: predicated region fallthrough
CT: control target
= control target key end

     0   :  { %14 = vsyncpa [#allocation3], 0  ;;  %s7884_s0 = inlined_call_operand.hbm [shape: f32[1024,128], index: 0, kind: input, shape index: {}]   ;;  %s7885_s1 = inlined_call_operand.hbm [shape: bf16[128,128], index: 1, kind: input, shape index: {}]   ;;  %s7886_s2 = inlined_call_operand.vmem [shape: f32[1,128], index: 2, kind: input, shape index: {}]   ;;  %s7887_s3 = inlined_call_operand.hbm [shape: bf16[128,128], index: 3, kind: input, shape index: {}]   ;;  %s7888_s4 = inlined_call_operand.vmem [shape: f32[1,128], index: 4, kind: input, shape index: {}]   ;;  %s7889_s5 = inlined_call_operand.hbm [shape: bf16[128,128], index: 5, kind: input, shape index: {}]   ;;  %s7890_s6 = inlined_call_operand.vmem [shape: f32[1,128], index: 6, kind: input, shape index: {}]   ;;  %s7891_s7 = inlined_call_operand.vmem [shape: f32[1,128], index: 7, kind: input, shape index: {}]   ;;  %s7892_s8 = inlined_call_operand.vmem [shape: f32[1,128], index: 8, kind: input, shape index: {}]   ;;  %s7893_s9 = inlined_call_operand.hbm [shape: f32[1024,128], index: 9, kind: output, shape index: {}]  }
   0x1   :  { %15 = vsyncpa [#allocation6], 0 }
   0x2   :  { %16 = vsyncpa [#allocation9], 0 }
   0x3   :  { %17 = vsyncpa [#allocation4], 0  ;;  %s5437_s30 = smov [#allocation5]  }
   0x4   :  { %s35_s10 = sshll.u32 %s5437_s30, 4  ;;  %s36_s10 = int_to_ptr.vmem [resolvable:$true] %s35_s10 }
   0x5   :  { %s5337_s11 = scalar_lea.vmem %s36_s10, 1024  ;;  %p5342_p1 = scmp.lt.s32.totalorder %s36_s10, %s36_s10 }
   0x6   :  { %p5338_p0 = scmp.ne.s32.totalorder %s36_s10, %s5337_s11  ;;  %p5343_p2 = scmp.lt.s32.totalorder %s5337_s11, %s5337_s11 }
   0x8   :  { %p5344_p3 = por %p5343_p2, %p5342_p1 }
   0xa   :  { %p5345_p4 = pnand %p5344_p3, %p5338_p0 }
   0xc   :  { %5348 = shalt.err (!%p5345_p4)
}
   0xd   :  { %s5438_s12 = smov 64   ;;  %s5439_s13 = smov 4  }
   0xe   :  { %41 = dma.hbm_to_vmem [thread:$0]  %s7885_s1, 1024, %s36_s10, [#allocation6], %s5438_s12, %s5438_s12, %s5439_s13  }
   0xf   :  { %s5440_s16 = smov [#allocation2]  }
  0x10   :  { %s23_s17 = sshll.u32 %s5440_s16, 4  ;;  %s24_s17 = int_to_ptr.vmem [resolvable:$true] %s23_s17 }
  0x11   :  { %s5357_s18 = scalar_lea.vmem %s24_s17, 16384  ;;  %p5362_p6 = scmp.lt.s32.totalorder %s24_s17, %s24_s17 }
  0x12   :  { %p5358_p5 = scmp.ne.s32.totalorder %s24_s17, %s5357_s18  ;;  %p5363_p7 = scmp.lt.s32.totalorder %s5357_s18, %s5357_s18 }
  0x14   :  { %p5364_p8 = por %p5363_p7, %p5362_p6 }
  0x16   :  { %p5365_p9 = pnand %p5364_p8, %p5358_p5 }
  0x18   :  { %5368 = shalt.err (!%p5365_p9)
}
  0x19   :  { %s5441_s19 = smov 128   ;;  %s5442_s20 = smov 8  }
  0x1a   :  { %29 = dma.hbm_to_vmem [thread:$0]  %s7884_s0, 16384, %s24_s17, [#allocation3], %s5441_s19, %s5441_s19, %s5442_s20  }
  0x1b   :  { %s5443_s1 = smov [#allocation7]   ;;  %s5444_s24 = smov [#allocation8]  }
  0x1c   :  { %s49_s23 = sshll.u32 %s5443_s1, 4  ;;  %s63_s25 = sshll.u32 %s5444_s24, 4  ;;  %s50_s23 = int_to_ptr.vmem [resolvable:$true] %s49_s23  ;;  %s64_s25 = int_to_ptr.vmem [resolvable:$true] %s63_s25 }
  0x1d   :  { %s5377_s26 = scalar_lea.vmem %s50_s23, 1024  ;;  %p5382_p11 = scmp.lt.s32.totalorder %s50_s23, %s50_s23 }
  0x1e   :  { %p5378_p10 = scmp.ne.s32.totalorder %s50_s23, %s5377_s26  ;;  %p5383_p12 = scmp.lt.s32.totalorder %s5377_s26, %s5377_s26 }
  0x20   :  { %p5384_p13 = por %p5383_p12, %p5382_p11 }
  0x22   :  { %p5385_p0 = pnand %p5384_p13, %p5378_p10 }
  0x24   :  { %5388 = shalt.err (!%p5385_p0)
}
  0x25   :  { %55 = dma.hbm_to_vmem [thread:$0]  %s7887_s3, 1024, %s50_s23, [#allocation6], %s5438_s12, %s5438_s12, %s5439_s13  }
  0x26   :  { %s5397_s0 = scalar_lea.vmem %s64_s25, 1024  ;;  %p5402_p2 = scmp.lt.s32.totalorder %s64_s25, %s64_s25 }
  0x27   :  { %p5398_p1 = scmp.ne.s32.totalorder %s64_s25, %s5397_s0  ;;  %p5403_p3 = scmp.lt.s32.totalorder %s5397_s0, %s5397_s0 }
  0x29   :  { %p5404_p4 = por %p5403_p3, %p5402_p2 }
  0x2b   :  { %p5405_p5 = pnand %p5404_p4, %p5398_p1 }
  0x2d   :  { %5408 = shalt.err (!%p5405_p5)
}
  0x2e   :  { %69 = dma.hbm_to_vmem [thread:$0]  %s7889_s5, 1024, %s64_s25, [#allocation9], %s5438_s12, %s5438_s12, %s5439_s13  }
  0x2f   :  { %5429 = dma.done.wait [#allocation3], 16384  }
  0x30   :  { %5430 = vsyncadd [#allocation3], 4294950912 }
  0x31   :  { %5431 = dma.done.wait [#allocation6], 2048  }
  0x32   :  { %5432 = vsyncadd [#allocation6], 4294965248 }
  0x33   :  { %5433 = dma.done.wait [#allocation9], 1024  }
  0x34   :  { %5434 = vsyncadd [#allocation9], 4294966272  ;;  %v5041_v0 = vld [vmem:[#allocation5 + $0x38] sm:$0xff]   ;;  %v5042_v1 = vld [vmem:[#allocation5 + $0x30] sm:$0xff]  }
  0x35   :  { %4584 = vmatprep.subr.bf16.mxu0 %v5041_v0  ;;  %5016 = vmatprep.subr.bf16.mxu1 %v5041_v0  ;;  %v5043_v2 = vld [vmem:[#allocation5 + $0x28] sm:$0xff]   ;;  %v5044_v3 = vld [vmem:[#allocation5 + $0x20] sm:$0xff]   ;;  %v5045_v7 = vld [vmem:[#allocation5 + $0x18] sm:$0xff]  }
  0x36   :  { %4585 = vmatpush3.bf16.msra.mxu0 %v5041_v0  ;;  %5024 = vmatpush3.bf16.msra.mxu1 %v5041_v0  ;;  %v89_v4 = vld [vmem:[#allocation2] sm:$0xff]  ;;  %v90_v5 = vld [vmem:[#allocation2 + $0x8] sm:$0xff]  ;;  %v5046_v8 = vld [vmem:[#allocation5 + $0x10] sm:$0xff]  }
  0x37   :  { %4586 = vmatprep.subr.bf16.mxu0 %v5042_v1  ;;  %5017 = vmatprep.subr.bf16.mxu1 %v5042_v1  ;;  %v217_v6 = vpack.c.bf16 %v90_v5, %v89_v4  ;;  %v5047_v9 = vld [vmem:[#allocation5 + $0x8] sm:$0xff]   ;;  %v153_v10 = vld [vmem:[#allocation2 + $0x200] sm:$0xff]  ;;  %v91_v14 = vld [vmem:[#allocation2 + $0x10] sm:$0xff] }
  0x38   :  { %v154_v11 = vld [vmem:[#allocation2 + $0x208] sm:$0xff]  ;;  %v5048_v13 = vld [vmem:[#allocation5] sm:$0xff]   ;;  %v92_v15 = vld [vmem:[#allocation2 + $0x18] sm:$0xff] }
  0x39   :  { %4600 = vmatprep.mubr.bf16.mxu0 %v217_v6  ;;  %v249_v12 = vpack.c.bf16 %v154_v11, %v153_v10  ;;  %v93_v16 = vld [vmem:[#allocation2 + $0x20] sm:$0xff]  ;;  %v94_v17 = vld [vmem:[#allocation2 + $0x28] sm:$0xff]  ;;  %v155_v18 = vld [vmem:[#allocation2 + $0x210] sm:$0xff]  ;;  %v218_v23 = vpack.c.bf16 %v92_v15, %v91_v14 }
  0x3a   :  { %4587 = vmatpush3.bf16.msra.mxu0 %v5042_v1  ;;  %5025 = vmatpush3.bf16.msra.mxu1 %v5042_v1  ;;  %v156_v19 = vld [vmem:[#allocation2 + $0x218] sm:$0xff]  ;;  %v157_v21 = vld [vmem:[#allocation2 + $0x220] sm:$0xff]  ;;  %v158_v22 = vld [vmem:[#allocation2 + $0x228] sm:$0xff]  ;;  %v219_v24 = vpack.c.bf16 %v94_v17, %v93_v16 }
  0x3b   :  { %4588 = vmatprep.subr.bf16.mxu0 %v5043_v2  ;;  %5018 = vmatprep.subr.bf16.mxu1 %v5043_v2  ;;  %v5049_v20 = vld [vmem:[#allocation7 + $0x38] sm:$0xff]   ;;  %v250_v25 = vpack.c.bf16 %v156_v19, %v155_v18  ;;  %v251_v26 = vpack.c.bf16 %v158_v22, %v157_v21  ;;  %v5050_v27 = vld [vmem:[#allocation7 + $0x30] sm:$0xff]   ;;  %v97_v30 = vld [vmem:[#allocation2 + $0x40] sm:$0xff] }
  0x3c   :  { %4664 = vmatprep.mubr.bf16.mxu1 %v249_v12  ;;  %v95_v28 = vld [vmem:[#allocation2 + $0x30] sm:$0xff]  ;;  %v96_v29 = vld [vmem:[#allocation2 + $0x38] sm:$0xff]  ;;  %v98_v31 = vld [vmem:[#allocation2 + $0x48] sm:$0xff] }
  0x3d   :  { %v159_v32 = vld [vmem:[#allocation2 + $0x230] sm:$0xff]  ;;  %v160_v33 = vld [vmem:[#allocation2 + $0x238] sm:$0xff]  ;;  %v161_v34 = vld [vmem:[#allocation2 + $0x240] sm:$0xff]  ;;  %v220_v37 = vpack.c.bf16 %v96_v29, %v95_v28  ;;  %v221_v38 = vpack.c.bf16 %v98_v31, %v97_v30 }
  0x3e   :  { %4589 = vmatpush3.bf16.msra.mxu0 %v5043_v2  ;;  %5026 = vmatpush3.bf16.msra.mxu1 %v5043_v2  ;;  %v162_v35 = vld [vmem:[#allocation2 + $0x248] sm:$0xff]  ;;  %v252_v39 = vpack.c.bf16 %v160_v33, %v159_v32  ;;  %v99_v41 = vld [vmem:[#allocation2 + $0x50] sm:$0xff]  ;;  %v5052_v42 = vld [vmem:[#allocation7 + $0x20] sm:$0xff]  }
  0x3f   :  { %4590 = vmatprep.subr.bf16.mxu0 %v5044_v3  ;;  %5019 = vmatprep.subr.bf16.mxu1 %v5044_v3  ;;  %v5051_v36 = vld [vmem:[#allocation7 + $0x28] sm:$0xff]   ;;  %v253_v40 = vpack.c.bf16 %v162_v35, %v161_v34  ;;  %v100_v43 = vld [vmem:[#allocation2 + $0x58] sm:$0xff]  ;;  %v101_v44 = vld [vmem:[#allocation2 + $0x60] sm:$0xff] }
  0x40   :  { %v102_v45 = vld [vmem:[#allocation2 + $0x68] sm:$0xff]  ;;  %v163_v46 = vld [vmem:[#allocation2 + $0x250] sm:$0xff]  ;;  %v164_v47 = vld [vmem:[#allocation2 + $0x258] sm:$0xff]  ;;  %v222_v50 = vpack.c.bf16 %v100_v43, %v99_v41 }
  0x41   :  { %v165_v48 = vld [vmem:[#allocation2 + $0x260] sm:$0xff]  ;;  %v166_v49 = vld [vmem:[#allocation2 + $0x268] sm:$0xff]  ;;  %v5053_v51 = vld [vmem:[#allocation7 + $0x18] sm:$0xff]   ;;  %v223_v52 = vpack.c.bf16 %v102_v45, %v101_v44  ;;  %v254_v53 = vpack.c.bf16 %v164_v47, %v163_v46 }
  0x42   :  { %4591 = vmatpush3.bf16.msra.mxu0 %v5044_v3  ;;  %5027 = vmatpush3.bf16.msra.mxu1 %v5044_v3  ;;  %v255_v54 = vpack.c.bf16 %v166_v49, %v165_v48  ;;  %v5054_v55 = vld [vmem:[#allocation7 + $0x10] sm:$0xff]   ;;  %v104_v57 = vld [vmem:[#allocation2 + $0x78] sm:$0xff]  ;;  %v105_v58 = vld [vmem:[#allocation2 + $0x80] sm:$0xff] }
  0x43   :  { %4592 = vmatprep.subr.bf16.mxu0 %v5045_v7  ;;  %5020 = vmatprep.subr.bf16.mxu1 %v5045_v7  ;;  %v103_v56 = vld [vmem:[#allocation2 + $0x70] sm:$0xff]  ;;  %v106_v59 = vld [vmem:[#allocation2 + $0x88] sm:$0xff]  ;;  %v168_v61 = vld [vmem:[#allocation2 + $0x278] sm:$0xff] }
  0x44   :  { %v167_v60 = vld [vmem:[#allocation2 + $0x270] sm:$0xff]  ;;  %v169_v62 = vld [vmem:[#allocation2 + $0x280] sm:$0xff]  ;;  %v170_v63 = vld [vmem:[#allocation2 + $0x288] sm:$0xff]  ;;  %v224_v1 = vpack.c.bf16 %v104_v57, %v103_v56  ;;  %v225_v2 = vpack.c.bf16 %v106_v59, %v105_v58 }
  0x45   :  { %v5055_v0 = vld [vmem:[#allocation7 + $0x8] sm:$0xff]   ;;  %v256_v3 = vpack.c.bf16 %v168_v61, %v167_v60  ;;  %v257_v4 = vpack.c.bf16 %v170_v63, %v169_v62  ;;  %v107_v5 = vld [vmem:[#allocation2 + $0x90] sm:$0xff]  ;;  %v108_v6 = vld [vmem:[#allocation2 + $0x98] sm:$0xff] }
  0x46   :  { %4593 = vmatpush3.bf16.msra.mxu0 %v5045_v7  ;;  %5028 = vmatpush3.bf16.msra.mxu1 %v5045_v7  ;;  %v5056_v7 = vld [vmem:[#allocation7] sm:$0xff]   ;;  %v171_v10 = vld [vmem:[#allocation2 + $0x290] sm:$0xff]  ;;  %v172_v11 = vld [vmem:[#allocation2 + $0x298] sm:$0xff]  ;;  %v226_v14 = vpack.c.bf16 %v108_v6, %v107_v5 }
  0x47   :  { %4594 = vmatprep.subr.bf16.mxu0 %v5046_v8  ;;  %5021 = vmatprep.subr.bf16.mxu1 %v5046_v8  ;;  %v173_v12 = vld [vmem:[#allocation2 + $0x2a0] sm:$0xff]  ;;  %v258_v16 = vpack.c.bf16 %v172_v11, %v171_v10  ;;  %v111_v18 = vld [vmem:[#allocation2 + $0xb0] sm:$0xff]  ;;  %v112_v19 = vld [vmem:[#allocation2 + $0xb8] sm:$0xff] }
  0x48   :  { %v114_v21 = vld [vmem:[#allocation2 + $0xc8] sm:$0xff]  ;;  %v175_v22 = vld [vmem:[#allocation2 + $0x2b0] sm:$0xff]  ;;  %v116_v31 = vld [vmem:[#allocation2 + $0xd8] sm:$0xff] }
  0x49   :  { %v115_v30 = vld [vmem:[#allocation2 + $0xd0] sm:$0xff]  ;;  %v117_v32 = vld [vmem:[#allocation2 + $0xe0] sm:$0xff]  ;;  %v118_v33 = vld [vmem:[#allocation2 + $0xe8] sm:$0xff] }
  0x4a   :  { %4595 = vmatpush3.bf16.msra.mxu0 %v5046_v8  ;;  %5029 = vmatpush3.bf16.msra.mxu1 %v5046_v8  ;;  %v109_v8 = vld [vmem:[#allocation2 + $0xa0] sm:$0xff]  ;;  %v179_v34 = vld [vmem:[#allocation2 + $0x2d0] sm:$0xff]  ;;  %v180_v35 = vld [vmem:[#allocation2 + $0x2d8] sm:$0xff] }
  0x4b   :  { %4596 = vmatprep.subr.bf16.mxu0 %v5047_v9  ;;  %5022 = vmatprep.subr.bf16.mxu1 %v5047_v9  ;;  %v120_v43 = vld [vmem:[#allocation2 + $0xf8] sm:$0xff]  ;;  %v121_v44 = vld [vmem:[#allocation2 + $0x100] sm:$0xff]  ;;  %v122_v45 = vld [vmem:[#allocation2 + $0x108] sm:$0xff] }
  0x4c   :  { %v183_v46 = vld [vmem:[#allocation2 + $0x2f0] sm:$0xff]  ;;  %v184_v47 = vld [vmem:[#allocation2 + $0x2f8] sm:$0xff]  ;;  %v185_v48 = vld [vmem:[#allocation2 + $0x300] sm:$0xff] }
  0x4d   :  { %v186_v49 = vld [vmem:[#allocation2 + $0x308] sm:$0xff]  ;;  %v125_v56 = vld [vmem:[#allocation2 + $0x120] sm:$0xff]  ;;  %v187_v58 = vld [vmem:[#allocation2 + $0x310] sm:$0xff] }
  0x4e   :  { %4597 = vmatpush3.bf16.msra.mxu0 %v5047_v9  ;;  %5030 = vmatpush3.bf16.msra.mxu1 %v5047_v9  ;;  %v110_v9 = vld [vmem:[#allocation2 + $0xa8] sm:$0xff]  ;;  %v188_v59 = vld [vmem:[#allocation2 + $0x318] sm:$0xff]  ;;  %v189_v60 = vld [vmem:[#allocation2 + $0x320] sm:$0xff] }
  0x4f   :  { %4598 = vmatprep.subr.bf16.mxu0 %v5048_v13  ;;  %5023 = vmatprep.subr.bf16.mxu1 %v5048_v13  ;;  %v227_v15 = vpack.c.bf16 %v110_v9, %v109_v8  ;;  %v126_v57 = vld [vmem:[#allocation2 + $0x128] sm:$0xff]  ;;  %v191_v6 = vld [vmem:[#allocation2 + $0x330] sm:$0xff]  ;;  %v193_v8 = vld [vmem:[#allocation2 + $0x340] sm:$0xff] }
  0x50   :  { %v190_v61 = vld [vmem:[#allocation2 + $0x328] sm:$0xff]  ;;  %v235_v63 = vpack.c.bf16 %v126_v57, %v125_v56  ;;  %v209_v56 = vld [vmem:[#allocation2 + $0x3c0] sm:$0xff] }
  0x51   :  { %v130_v5 = vld [vmem:[#allocation2 + $0x148] sm:$0xff] }
  0x52   :  { %4599 = vmatpush3.bf16.msra.mxu0 %v5048_v13  ;;  %5031 = vmatpush3.bf16.msra.mxu1 %v5048_v13  ;;  %v174_v13 = vld [vmem:[#allocation2 + $0x2a8] sm:$0xff] }
  0x53   :  { %4728 = vmatprep.subr.bf16.mxu1 %v5049_v20  ;;  %v259_v17 = vpack.c.bf16 %v174_v13, %v173_v12  ;;  %v194_v9 = vld [vmem:[#allocation2 + $0x348] sm:$0xff] }
  0x54   :  { %v269_v13 = vpack.c.bf16 %v194_v9, %v193_v8  ;;  %v210_v57 = vld [vmem:[#allocation2 + $0x3c8] sm:$0xff] }
  0x55   :  { %4601 = vmatmul.mubr.bf16.vlgmr.msra.gmra.mxu0 %v218_v23  ;;  %4665 = vmatmul.mubr.bf16.vlgmr.msra.gmra.mxu1 %v250_v25  ;;  %v176_v23 = vld [vmem:[#allocation2 + $0x2b8] sm:$0xff]  ;;  %v178_v25 = vld [vmem:[#allocation2 + $0x2c8] sm:$0xff] }
  0x56   :  { %4604 = vmatprep.mubr.bf16.mxu0 %v219_v24  ;;  %4729 = vmatpush3.bf16.msra.mxu1 %v5049_v20  ;;  %v113_v20 = vld [vmem:[#allocation2 + $0xc0] sm:$0xff]  ;;  %v260_v28 = vpack.c.bf16 %v176_v23, %v175_v22 }
  0x57   :  { %4668 = vmatprep.mubr.bf16.mxu1 %v251_v26  ;;  %4730 = vmatprep.subr.bf16.mxu1 %v5050_v27  ;;  %v177_v24 = vld [vmem:[#allocation2 + $0x2c0] sm:$0xff]  ;;  %v228_v26 = vpack.c.bf16 %v112_v19, %v111_v18  ;;  %v195_v18 = vld [vmem:[#allocation2 + $0x350] sm:$0xff]  ;;  %v196_v19 = vld [vmem:[#allocation2 + $0x358] sm:$0xff] }
  0x58   :  { %v261_v29 = vpack.c.bf16 %v178_v25, %v177_v24  ;;  %v270_v24 = vpack.c.bf16 %v196_v19, %v195_v18  ;;  %v5059_v18 = vld [vmem:[#allocation8 + $0x28] sm:$0xff]  }
  0x5a   :  { %4731 = vmatpush3.bf16.msra.mxu1 %v5050_v27  ;;  %v229_v27 = vpack.c.bf16 %v114_v21, %v113_v20  ;;  %v197_v20 = vld [vmem:[#allocation2 + $0x360] sm:$0xff]  ;;  %v198_v21 = vld [vmem:[#allocation2 + $0x368] sm:$0xff] }
  0x5b   :  { %4732 = vmatprep.subr.bf16.mxu1 %v5051_v36  ;;  %v271_v25 = vpack.c.bf16 %v198_v21, %v197_v20 }
  0x5d   :  { %4605 = vmatmul.mubr.bf16.gmra.mxu0 %v220_v37  ;;  %4669 = vmatmul.mubr.bf16.gmra.mxu1 %v252_v39  ;;  %v182_v37 = vld [vmem:[#allocation2 + $0x2e8] sm:$0xff]  ;;  %v231_v39 = vpack.c.bf16 %v118_v33, %v117_v32  ;;  %v201_v32 = vld [vmem:[#allocation2 + $0x380] sm:$0xff] }
  0x5e   :  { %4608 = vmatprep.mubr.bf16.mxu0 %v221_v38  ;;  %4672 = vmatprep.mubr.bf16.mxu1 %v253_v40  ;;  %v230_v38 = vpack.c.bf16 %v116_v31, %v115_v30  ;;  %v262_v40 = vpack.c.bf16 %v180_v35, %v179_v34  ;;  %v199_v30 = vld [vmem:[#allocation2 + $0x370] sm:$0xff]  ;;  %v200_v31 = vld [vmem:[#allocation2 + $0x378] sm:$0xff]  ;;  %v202_v33 = vld [vmem:[#allocation2 + $0x388] sm:$0xff] }
  0x5f   :  { %4733 = vmatpush3.bf16.msra.mxu1 %v5051_v36  ;;  %v181_v36 = vld [vmem:[#allocation2 + $0x2e0] sm:$0xff] }
  0x60   :  { %4734 = vmatprep.subr.bf16.mxu1 %v5052_v42  ;;  %v263_v41 = vpack.c.bf16 %v182_v37, %v181_v36  ;;  %v272_v36 = vpack.c.bf16 %v200_v31, %v199_v30  ;;  %v273_v37 = vpack.c.bf16 %v202_v33, %v201_v32  ;;  %v5060_v32 = vld [vmem:[#allocation8 + $0x20] sm:$0xff]  }
  0x63   :  { %4735 = vmatpush3.bf16.msra.mxu1 %v5052_v42  ;;  %v119_v42 = vld [vmem:[#allocation2 + $0xf0] sm:$0xff] }
  0x64   :  { %4736 = vmatprep.subr.bf16.mxu1 %v5053_v51 }
  0x65   :  { %4609 = vmatmul.mubr.bf16.gmra.mxu0 %v222_v50  ;;  %4673 = vmatmul.mubr.bf16.gmra.mxu1 %v254_v53  ;;  %v232_v50 = vpack.c.bf16 %v120_v43, %v119_v42  ;;  %v265_v53 = vpack.c.bf16 %v186_v49, %v185_v48  ;;  %v203_v42 = vld [vmem:[#allocation2 + $0x390] sm:$0xff]  ;;  %v204_v43 = vld [vmem:[#allocation2 + $0x398] sm:$0xff] }
  0x66   :  { %4612 = vmatprep.mubr.bf16.mxu0 %v223_v52  ;;  %4676 = vmatprep.mubr.bf16.mxu1 %v255_v54  ;;  %v264_v52 = vpack.c.bf16 %v184_v47, %v183_v46  ;;  %v123_v54 = vld [vmem:[#allocation2 + $0x110] sm:$0xff]  ;;  %v274_v48 = vpack.c.bf16 %v204_v43, %v203_v42 }
  0x67   :  { %4737 = vmatpush3.bf16.msra.mxu1 %v5053_v51  ;;  %v233_v51 = vpack.c.bf16 %v122_v45, %v121_v44  ;;  %v205_v44 = vld [vmem:[#allocation2 + $0x3a0] sm:$0xff]  ;;  %v206_v45 = vld [vmem:[#allocation2 + $0x3a8] sm:$0xff] }
  0x68   :  { %4738 = vmatprep.subr.bf16.mxu1 %v5054_v55  ;;  %v275_v49 = vpack.c.bf16 %v206_v45, %v205_v44 }
  0x6b   :  { %4739 = vmatpush3.bf16.msra.mxu1 %v5054_v55  ;;  %v124_v55 = vld [vmem:[#allocation2 + $0x118] sm:$0xff] }
  0x6c   :  { %4740 = vmatprep.subr.bf16.mxu1 %v5055_v0  ;;  %v234_v62 = vpack.c.bf16 %v124_v55, %v123_v54  ;;  %v207_v54 = vld [vmem:[#allocation2 + $0x3b0] sm:$0xff]  ;;  %v208_v55 = vld [vmem:[#allocation2 + $0x3b8] sm:$0xff] }
  0x6d   :  { %4613 = vmatmul.mubr.bf16.gmra.mxu0 %v224_v1  ;;  %4677 = vmatmul.mubr.bf16.gmra.mxu1 %v256_v3  ;;  %v267_v1 = vpack.c.bf16 %v190_v61, %v189_v60  ;;  %v128_v3 = vld [vmem:[#allocation2 + $0x138] sm:$0xff]  ;;  %v276_v60 = vpack.c.bf16 %v208_v55, %v207_v54  ;;  %v277_v61 = vpack.c.bf16 %v210_v57, %v209_v56 }
  0x6e   :  { %4616 = vmatprep.mubr.bf16.mxu0 %v225_v2  ;;  %4680 = vmatprep.mubr.bf16.mxu1 %v257_v4  ;;  %v127_v2 = vld [vmem:[#allocation2 + $0x130] sm:$0xff]  ;;  %v129_v4 = vld [vmem:[#allocation2 + $0x140] sm:$0xff] }
  0x6f   :  { %4741 = vmatpush3.bf16.msra.mxu1 %v5055_v0  ;;  %v266_v0 = vpack.c.bf16 %v188_v59, %v187_v58  ;;  %v236_v10 = vpack.c.bf16 %v128_v3, %v127_v2  ;;  %v237_v11 = vpack.c.bf16 %v130_v5, %v129_v4  ;;  %v211_v2 = vld [vmem:[#allocation2 + $0x3d0] sm:$0xff]  ;;  %v212_v3 = vld [vmem:[#allocation2 + $0x3d8] sm:$0xff]  ;;  %v213_v4 = vld [vmem:[#allocation2 + $0x3e0] sm:$0xff] }
  0x70   :  { %4742 = vmatprep.subr.bf16.mxu1 %v5056_v7  ;;  %v214_v5 = vld [vmem:[#allocation2 + $0x3e8] sm:$0xff]  ;;  %v278_v8 = vpack.c.bf16 %v212_v3, %v211_v2 }
  0x71   :  { %v279_v9 = vpack.c.bf16 %v214_v5, %v213_v4  ;;  %v5061_v5 = vld [vmem:[#allocation8 + $0x18] sm:$0xff]  }
  0x73   :  { %4743 = vmatpush3.bf16.msra.mxu1 %v5056_v7  ;;  %v192_v7 = vld [vmem:[#allocation2 + $0x338] sm:$0xff] }
  0x74   :  { %v268_v12 = vpack.c.bf16 %v192_v7, %v191_v6 }
  0x75   :  { %4617 = vmatmul.mubr.bf16.gmra.mxu0 %v226_v14  ;;  %4681 = vmatmul.mubr.bf16.gmra.mxu1 %v258_v16  ;;  %v131_v14 = vld [vmem:[#allocation2 + $0x150] sm:$0xff]  ;;  %v133_v16 = vld [vmem:[#allocation2 + $0x160] sm:$0xff] }
  0x76   :  { %4620 = vmatprep.mubr.bf16.mxu0 %v227_v15  ;;  %4684 = vmatprep.mubr.bf16.mxu1 %v259_v17  ;;  %v132_v15 = vld [vmem:[#allocation2 + $0x158] sm:$0xff]  ;;  %v134_v17 = vld [vmem:[#allocation2 + $0x168] sm:$0xff] }
  0x77   :  { %v238_v22 = vpack.c.bf16 %v132_v15, %v131_v14  ;;  %v239_v23 = vpack.c.bf16 %v134_v17, %v133_v16  ;;  %v5057_v16 = vld [vmem:[#allocation8 + $0x38] sm:$0xff]   ;;  %v5058_v17 = vld [vmem:[#allocation8 + $0x30] sm:$0xff]  }
  0x78   :  { %4872 = vmatprep.subr.bf16.mxu0 %v5057_v16 }
  0x79   :  { %4873 = vmatpush3.bf16.msra.mxu0 %v5057_v16 }
  0x7a   :  { %4874 = vmatprep.subr.bf16.mxu0 %v5058_v17 }
  0x7d   :  { %4621 = vmatmul.mubr.bf16.gmra.mxu0 %v228_v26  ;;  %4685 = vmatmul.mubr.bf16.gmra.mxu1 %v260_v28  ;;  %v135_v26 = vld [vmem:[#allocation2 + $0x170] sm:$0xff]  ;;  %v137_v28 = vld [vmem:[#allocation2 + $0x180] sm:$0xff] }
  0x7e   :  { %4624 = vmatprep.mubr.bf16.mxu0 %v229_v27  ;;  %4688 = vmatprep.mubr.bf16.mxu1 %v261_v29  ;;  %v136_v27 = vld [vmem:[#allocation2 + $0x178] sm:$0xff]  ;;  %v138_v29 = vld [vmem:[#allocation2 + $0x188] sm:$0xff] }
  0x7f   :  { %v240_v34 = vpack.c.bf16 %v136_v27, %v135_v26  ;;  %v241_v35 = vpack.c.bf16 %v138_v29, %v137_v28  ;;  %4875 = vmatpush3.bf16.msra.mxu0 %v5058_v17 }
  0x80   :  { %4876 = vmatprep.subr.bf16.mxu0 %v5059_v18 }
  0x83   :  { %4877 = vmatpush3.bf16.msra.mxu0 %v5059_v18 }
  0x84   :  { %4878 = vmatprep.subr.bf16.mxu0 %v5060_v32 }
  0x85   :  { %4625 = vmatmul.mubr.bf16.gmra.mxu0 %v230_v38  ;;  %4689 = vmatmul.mubr.bf16.gmra.mxu1 %v262_v40  ;;  %v139_v38 = vld [vmem:[#allocation2 + $0x190] sm:$0xff]  ;;  %v141_v40 = vld [vmem:[#allocation2 + $0x1a0] sm:$0xff] }
  0x86   :  { %4628 = vmatprep.mubr.bf16.mxu0 %v231_v39  ;;  %4692 = vmatprep.mubr.bf16.mxu1 %v263_v41  ;;  %v140_v39 = vld [vmem:[#allocation2 + $0x198] sm:$0xff]  ;;  %v142_v41 = vld [vmem:[#allocation2 + $0x1a8] sm:$0xff] }
  0x87   :  { %v242_v46 = vpack.c.bf16 %v140_v39, %v139_v38  ;;  %v243_v47 = vpack.c.bf16 %v142_v41, %v141_v40  ;;  %4879 = vmatpush3.bf16.msra.mxu0 %v5060_v32 }
  0x88   :  { %4880 = vmatprep.subr.bf16.mxu0 %v5061_v5 }
  0x8b   :  { %4881 = vmatpush3.bf16.msra.mxu0 %v5061_v5 }
  0x8d   :  { %4629 = vmatmul.mubr.bf16.gmra.mxu0 %v232_v50  ;;  %4693 = vmatmul.mubr.bf16.gmra.mxu1 %v264_v52  ;;  %v143_v50 = vld [vmem:[#allocation2 + $0x1b0] sm:$0xff]  ;;  %v145_v52 = vld [vmem:[#allocation2 + $0x1c0] sm:$0xff] }
  0x8e   :  { %4632 = vmatprep.mubr.bf16.mxu0 %v233_v51  ;;  %4696 = vmatprep.mubr.bf16.mxu1 %v265_v53  ;;  %v144_v51 = vld [vmem:[#allocation2 + $0x1b8] sm:$0xff]  ;;  %v146_v53 = vld [vmem:[#allocation2 + $0x1c8] sm:$0xff] }
  0x8f   :  { %v244_v58 = vpack.c.bf16 %v144_v51, %v143_v50  ;;  %v245_v59 = vpack.c.bf16 %v146_v53, %v145_v52 }
  0x95   :  { %4633 = vmatmul.mubr.bf16.gmra.mxu0 %v234_v62  ;;  %4697 = vmatmul.mubr.bf16.gmra.mxu1 %v266_v0  ;;  %v147_v62 = vld [vmem:[#allocation2 + $0x1d0] sm:$0xff]  ;;  %v149_v0 = vld [vmem:[#allocation2 + $0x1e0] sm:$0xff] }
  0x96   :  { %4636 = vmatprep.mubr.bf16.mxu0 %v235_v63  ;;  %4700 = vmatprep.mubr.bf16.mxu1 %v267_v1  ;;  %v148_v63 = vld [vmem:[#allocation2 + $0x1d8] sm:$0xff]  ;;  %v150_v1 = vld [vmem:[#allocation2 + $0x1e8] sm:$0xff] }
  0x97   :  { %v246_v6 = vpack.c.bf16 %v148_v63, %v147_v62  ;;  %v247_v7 = vpack.c.bf16 %v150_v1, %v149_v0 }
  0x9d   :  { %4637 = vmatmul.mubr.bf16.gmra.mxu0 %v236_v10  ;;  %4701 = vmatmul.mubr.bf16.gmra.mxu1 %v268_v12  ;;  %v151_v10 = vld [vmem:[#allocation2 + $0x1f0] sm:$0xff] }
  0x9e   :  { %4640 = vmatprep.mubr.bf16.mxu0 %v237_v11  ;;  %4704 = vmatprep.mubr.bf16.mxu1 %v269_v13  ;;  %v152_v11 = vld [vmem:[#allocation2 + $0x1f8] sm:$0xff]  ;;  %v215_v12 = vld [vmem:[#allocation2 + $0x3f0] sm:$0xff] }
  0x9f   :  { %v216_v13 = vld [vmem:[#allocation2 + $0x3f8] sm:$0xff]  ;;  %v248_v14 = vpack.c.bf16 %v152_v11, %v151_v10 }
  0xa0   :  { %v280_v15 = vpack.c.bf16 %v216_v13, %v215_v12 }
  0xa5   :  { %4641 = vmatmul.mubr.bf16.gmra.mxu0 %v238_v22  ;;  %4705 = vmatmul.mubr.bf16.gmra.mxu1 %v270_v24  ;;  %v5525_v22 = vld [vmem:[%s7886_s2] ss:$0 sm:$0xff] }
  0xa6   :  { %4644 = vmatprep.mubr.bf16.mxu0 %v239_v23  ;;  %4708 = vmatprep.mubr.bf16.mxu1 %v271_v25 }
  0xad   :  { %4645 = vmatmul.mubr.bf16.gmra.mxu0 %v240_v34  ;;  %4709 = vmatmul.mubr.bf16.gmra.mxu1 %v272_v36 }
  0xae   :  { %4648 = vmatprep.mubr.bf16.mxu0 %v241_v35  ;;  %4712 = vmatprep.mubr.bf16.mxu1 %v273_v37 }
  0xb5   :  { %4649 = vmatmul.mubr.bf16.gmra.mxu0 %v242_v46  ;;  %4713 = vmatmul.mubr.bf16.gmra.mxu1 %v274_v48 }
  0xb6   :  { %4652 = vmatprep.mubr.bf16.mxu0 %v243_v47  ;;  %4716 = vmatprep.mubr.bf16.mxu1 %v275_v49 }
  0xbd   :  { %4653 = vmatmul.mubr.bf16.gmra.mxu0 %v244_v58  ;;  %4717 = vmatmul.mubr.bf16.gmra.mxu1 %v276_v60 }
  0xbe   :  { %4656 = vmatprep.mubr.bf16.mxu0 %v245_v59  ;;  %4720 = vmatprep.mubr.bf16.mxu1 %v277_v61 }
  0xc5   :  { %4657 = vmatmul.mubr.bf16.gmra.mxu0 %v246_v6  ;;  %4721 = vmatmul.mubr.bf16.gmra.mxu1 %v278_v8 }
  0xc6   :  { %4660 = vmatprep.mubr.bf16.mxu0 %v247_v7  ;;  %4724 = vmatprep.mubr.bf16.mxu1 %v279_v9 }
  0xcd   :  { %4661 = vmatmul.mubr.bf16.gmra.mxu0 %v248_v14  ;;  %4725 = vmatmul.mubr.bf16.gmra.mxu1 %v280_v15 }
 0x115   :  { %v4602_v19 = vpop.f32.mrf.mxu0  ;;  %v5520_v20 = vpop.f32.mrf.mxu1 }
 0x116   :  { %v395_v28 = vadd.f32 %v4602_v19, %v5525_v22 }
 0x117   :  { %v386_v21 = vpop.f32.mrf.mxu0  ;;  %v5527_v23 = vpop.f32.mrf.mxu1 }
 0x118   :  { %v387_v25 = vadd.f32 %v5525_v22, %v386_v21  ;;  %v899_v38 = vmax.f32 %v395_v28, 0.0 }
 0x119   :  { %v4603_v24 = vpop.f32.mrf.mxu0  ;;  %v5531_v27 = vpop.f32.mrf.mxu1 }
 0x11a   :  { %v398_v26 = vadd.f32 %v4603_v24, %v5525_v22  ;;  %v897_v35 = vmax.f32 %v387_v25, 0.0 }
 0x11b   :  { %v389_v29 = vpop.f32.mrf.mxu0  ;;  %v5535_v31 = vpop.f32.mrf.mxu1 }
 0x11c   :  { %v390_v30 = vadd.f32 %v5525_v22, %v389_v29  ;;  %v900_v33 = vmax.f32 %v398_v26, 0.0 }
 0x11d   :  { %v4606_v34 = vpop.f32.mrf.mxu0  ;;  %v5537_v37 = vpop.f32.mrf.mxu1 }
 0x11e   :  { %v898_v36 = vmax.f32 %v390_v30, 0.0  ;;  %v1026_v42 = vpack.c.bf16 %v900_v33, %v899_v38  ;;  %v411_v47 = vadd.f32 %v4606_v34, %v5525_v22 }
 0x11f   :  { %v402_v39 = vpop.f32.mrf.mxu0  ;;  %v5539_v41 = vpop.f32.mrf.mxu1 }
 0x120   :  { %v1025_v40 = vpack.c.bf16 %v898_v36, %v897_v35  ;;  %v403_v44 = vadd.f32 %v5525_v22, %v402_v39  ;;  %v903_v56 = vmax.f32 %v411_v47, 0.0 }
 0x121   :  { %v4607_v43 = vpop.f32.mrf.mxu0  ;;  %v5543_v46 = vpop.f32.mrf.mxu1 }
 0x122   :  { %v414_v45 = vadd.f32 %v4607_v43, %v5525_v22  ;;  %4744 = vmatprep.mubr.bf16.mxu1 %v1025_v40  ;;  %v901_v53 = vmax.f32 %v403_v44, 0.0 }
 0x123   :  { %v405_v48 = vpop.f32.mrf.mxu0  ;;  %4745 = vmatmul.mubr.bf16.vlgmr.msra.gmra.mxu1 %v1026_v42  ;;  %v5547_v50 = vpop.f32.mrf.mxu1 }
 0x124   :  { %v406_v49 = vadd.f32 %v5525_v22, %v405_v48  ;;  %v904_v51 = vmax.f32 %v414_v45, 0.0 }
 0x125   :  { %v4610_v52 = vpop.f32.mrf.mxu0  ;;  %v5549_v55 = vpop.f32.mrf.mxu1 }
 0x126   :  { %v902_v54 = vmax.f32 %v406_v49, 0.0  ;;  %v1028_v60 = vpack.c.bf16 %v904_v51, %v903_v56  ;;  %v427_v1 = vadd.f32 %v4610_v52, %v5525_v22  ;;  %v5062_v51 = vld [vmem:[#allocation8 + $0x10] sm:$0xff]  }
 0x127   :  { %v418_v57 = vpop.f32.mrf.mxu0  ;;  %v5551_v59 = vpop.f32.mrf.mxu1  ;;  %4882 = vmatprep.subr.bf16.mxu0 %v5062_v51 }
 0x128   :  { %v1027_v58 = vpack.c.bf16 %v902_v54, %v901_v53  ;;  %v419_v62 = vadd.f32 %v5525_v22, %v418_v57  ;;  %v907_v11 = vmax.f32 %v427_v1, 0.0  ;;  %4883 = vmatpush3.bf16.msra.mxu0 %v5062_v51 }
 0x129   :  { %v4611_v61 = vpop.f32.mrf.mxu0  ;;  %v5555_v0 = vpop.f32.mrf.mxu1 }
 0x12a   :  { %v430_v63 = vadd.f32 %v4611_v61, %v5525_v22  ;;  %4748 = vmatprep.mubr.bf16.mxu1 %v1027_v58  ;;  %v905_v8 = vmax.f32 %v419_v62, 0.0 }
 0x12b   :  { %v421_v2 = vpop.f32.mrf.mxu0  ;;  %4749 = vmatmul.mubr.bf16.gmra.mxu1 %v1028_v60  ;;  %v5559_v4 = vpop.f32.mrf.mxu1 }
 0x12c   :  { %v422_v3 = vadd.f32 %v5525_v22, %v421_v2  ;;  %v908_v6 = vmax.f32 %v430_v63, 0.0 }
 0x12d   :  { %v4614_v7 = vpop.f32.mrf.mxu0  ;;  %v5561_v10 = vpop.f32.mrf.mxu1 }
 0x12e   :  { %v906_v9 = vmax.f32 %v422_v3, 0.0  ;;  %v1030_v15 = vpack.c.bf16 %v908_v6, %v907_v11  ;;  %v443_v21 = vadd.f32 %v4614_v7, %v5525_v22 }
 0x12f   :  { %v434_v12 = vpop.f32.mrf.mxu0  ;;  %v5563_v14 = vpop.f32.mrf.mxu1 }
 0x130   :  { %v1029_v13 = vpack.c.bf16 %v906_v9, %v905_v8  ;;  %v435_v17 = vadd.f32 %v5525_v22, %v434_v12  ;;  %v911_v34 = vmax.f32 %v443_v21, 0.0 }
 0x131   :  { %v4615_v16 = vpop.f32.mrf.mxu0  ;;  %v5567_v19 = vpop.f32.mrf.mxu1 }
 0x132   :  { %v446_v18 = vadd.f32 %v4615_v16, %v5525_v22  ;;  %4752 = vmatprep.mubr.bf16.mxu1 %v1029_v13  ;;  %v909_v30 = vmax.f32 %v435_v17, 0.0 }
 0x133   :  { %v437_v24 = vpop.f32.mrf.mxu0  ;;  %4753 = vmatmul.mubr.bf16.gmra.mxu1 %v1030_v15  ;;  %v5571_v26 = vpop.f32.mrf.mxu1 }
 0x134   :  { %v438_v25 = vadd.f32 %v5525_v22, %v437_v24  ;;  %v912_v28 = vmax.f32 %v446_v18, 0.0 }
 0x135   :  { %v4618_v29 = vpop.f32.mrf.mxu0  ;;  %v5573_v33 = vpop.f32.mrf.mxu1 }
 0x136   :  { %v910_v32 = vmax.f32 %v438_v25, 0.0  ;;  %v1032_v39 = vpack.c.bf16 %v912_v28, %v911_v34  ;;  %v459_v45 = vadd.f32 %v4618_v29, %v5525_v22 }
 0x137   :  { %v450_v35 = vpop.f32.mrf.mxu0  ;;  %v5575_v38 = vpop.f32.mrf.mxu1 }
 0x138   :  { %v1031_v36 = vpack.c.bf16 %v910_v32, %v909_v30  ;;  %v451_v42 = vadd.f32 %v5525_v22, %v450_v35  ;;  %v915_v58 = vmax.f32 %v459_v45, 0.0 }
 0x139   :  { %v4619_v40 = vpop.f32.mrf.mxu0  ;;  %v5579_v44 = vpop.f32.mrf.mxu1 }
 0x13a   :  { %v462_v43 = vadd.f32 %v4619_v40, %v5525_v22  ;;  %4756 = vmatprep.mubr.bf16.mxu1 %v1031_v36  ;;  %v913_v54 = vmax.f32 %v451_v42, 0.0  ;;  %v5063_v36 = vld [vmem:[#allocation8 + $0x8] sm:$0xff]  }
 0x13b   :  { %v453_v47 = vpop.f32.mrf.mxu0  ;;  %4757 = vmatmul.mubr.bf16.gmra.mxu1 %v1032_v39  ;;  %v5583_v49 = vpop.f32.mrf.mxu1  ;;  %4884 = vmatprep.subr.bf16.mxu0 %v5063_v36 }
 0x13c   :  { %v454_v48 = vadd.f32 %v5525_v22, %v453_v47  ;;  %v916_v52 = vmax.f32 %v462_v43, 0.0  ;;  %4885 = vmatpush3.bf16.msra.mxu0 %v5063_v36 }
 0x13d   :  { %v4622_v53 = vpop.f32.mrf.mxu0  ;;  %v5585_v57 = vpop.f32.mrf.mxu1 }
 0x13e   :  { %v914_v56 = vmax.f32 %v454_v48, 0.0  ;;  %v1034_v63 = vpack.c.bf16 %v916_v52, %v915_v58  ;;  %v475_v6 = vadd.f32 %v4622_v53, %v5525_v22 }
 0x13f   :  { %v466_v60 = vpop.f32.mrf.mxu0  ;;  %v5587_v62 = vpop.f32.mrf.mxu1 }
 0x140   :  { %v1033_v61 = vpack.c.bf16 %v914_v56, %v913_v54  ;;  %v467_v2 = vadd.f32 %v5525_v22, %v466_v60  ;;  %v919_v17 = vmax.f32 %v475_v6, 0.0 }
 0x141   :  { %v4623_v1 = vpop.f32.mrf.mxu0  ;;  %v5591_v5 = vpop.f32.mrf.mxu1 }
 0x142   :  { %v478_v3 = vadd.f32 %v4623_v1, %v5525_v22  ;;  %4760 = vmatprep.mubr.bf16.mxu1 %v1033_v61  ;;  %v917_v13 = vmax.f32 %v467_v2, 0.0 }
 0x143   :  { %v469_v7 = vpop.f32.mrf.mxu0  ;;  %4761 = vmatmul.mubr.bf16.gmra.mxu1 %v1034_v63  ;;  %v5595_v9 = vpop.f32.mrf.mxu1 }
 0x144   :  { %v470_v8 = vadd.f32 %v5525_v22, %v469_v7  ;;  %v920_v11 = vmax.f32 %v478_v3, 0.0 }
 0x145   :  { %v4626_v12 = vpop.f32.mrf.mxu0  ;;  %v5597_v16 = vpop.f32.mrf.mxu1 }
 0x146   :  { %v918_v15 = vmax.f32 %v470_v8, 0.0  ;;  %v1036_v24 = vpack.c.bf16 %v920_v11, %v919_v17  ;;  %v491_v32 = vadd.f32 %v4626_v12, %v5525_v22 }
 0x147   :  { %v482_v18 = vpop.f32.mrf.mxu0  ;;  %v5599_v28 = vpop.f32.mrf.mxu1 }
 0x148   :  { %v1035_v21 = vpack.c.bf16 %v918_v15, %v917_v13  ;;  %v483_v29 = vadd.f32 %v5525_v22, %v482_v18  ;;  %v923_v47 = vmax.f32 %v491_v32, 0.0 }
 0x149   :  { %v4627_v25 = vpop.f32.mrf.mxu0  ;;  %v5605_v42 = vpop.f32.mrf.mxu1 }
 0x14a   :  { %v494_v30 = vadd.f32 %v4627_v25, %v5525_v22  ;;  %4764 = vmatprep.mubr.bf16.mxu1 %v1035_v21  ;;  %v921_v43 = vmax.f32 %v483_v29, 0.0 }
 0x14b   :  { %v485_v34 = vpop.f32.mrf.mxu0  ;;  %4765 = vmatmul.mubr.bf16.gmra.mxu1 %v1036_v24  ;;  %v5607_v54 = vpop.f32.mrf.mxu1 }
 0x14c   :  { %v486_v35 = vadd.f32 %v5525_v22, %v485_v34  ;;  %v924_v39 = vmax.f32 %v494_v30, 0.0  ;;  %v5064_v30 = vld [vmem:[#allocation8] sm:$0xff]  }
 0x14d   :  { %v4630_v40 = vpop.f32.mrf.mxu0  ;;  %v5613_v3 = vpop.f32.mrf.mxu1  ;;  %4886 = vmatprep.subr.bf16.mxu0 %v5064_v30 }
 0x14e   :  { %v922_v45 = vmax.f32 %v486_v35, 0.0  ;;  %v1038_v52 = vpack.c.bf16 %v924_v39, %v923_v47  ;;  %v507_v60 = vadd.f32 %v4630_v40, %v5525_v22  ;;  %4887 = vmatpush3.bf16.msra.mxu0 %v5064_v30 }
 0x14f   :  { %v498_v48 = vpop.f32.mrf.mxu0  ;;  %v5615_v17 = vpop.f32.mrf.mxu1 }
 0x150   :  { %v1037_v51 = vpack.c.bf16 %v922_v45, %v921_v43  ;;  %v499_v56 = vadd.f32 %v5525_v22, %v498_v48  ;;  %v927_v8 = vmax.f32 %v507_v60, 0.0 }
 0x151   :  { %v4631_v53 = vpop.f32.mrf.mxu0  ;;  %v5621_v35 = vpop.f32.mrf.mxu1 }
 0x152   :  { %v510_v58 = vadd.f32 %v4631_v53, %v5525_v22  ;;  %4768 = vmatprep.mubr.bf16.mxu1 %v1037_v51  ;;  %v925_v6 = vmax.f32 %v499_v56, 0.0 }
 0x153   :  { %v501_v61 = vpop.f32.mrf.mxu0  ;;  %4769 = vmatmul.mubr.bf16.gmra.mxu1 %v1038_v52  ;;  %v5623_v51 = vpop.f32.mrf.mxu1 }
 0x154   :  { %v502_v63 = vadd.f32 %v5525_v22, %v501_v61  ;;  %v928_v1 = vmax.f32 %v510_v58, 0.0 }
 0x155   :  { %v4634_v2 = vpop.f32.mrf.mxu0 }
 0x156   :  { %v926_v7 = vmax.f32 %v502_v63, 0.0  ;;  %v1040_v13 = vpack.c.bf16 %v928_v1, %v927_v8  ;;  %v523_v24 = vadd.f32 %v4634_v2, %v5525_v22  ;;  %v5629_v1 = vpop.f32.mrf.mxu1 }
 0x157   :  { %v514_v11 = vpop.f32.mrf.mxu0 }
 0x158   :  { %v1039_v12 = vpack.c.bf16 %v926_v7, %v925_v6  ;;  %v515_v18 = vadd.f32 %v5525_v22, %v514_v11  ;;  %v931_v40 = vmax.f32 %v523_v24, 0.0 }
 0x159   :  { %v4635_v15 = vpop.f32.mrf.mxu0 }
 0x15a   :  { %v526_v21 = vadd.f32 %v4635_v15, %v5525_v22  ;;  %4772 = vmatprep.mubr.bf16.mxu1 %v1039_v12  ;;  %v929_v36 = vmax.f32 %v515_v18, 0.0  ;;  %v5631_v15 = vpop.f32.mrf.mxu1 }
 0x15b   :  { %v517_v25 = vpop.f32.mrf.mxu0  ;;  %4773 = vmatmul.mubr.bf16.gmra.mxu1 %v1040_v13 }
 0x15c   :  { %v518_v29 = vadd.f32 %v5525_v22, %v517_v25  ;;  %v932_v32 = vmax.f32 %v526_v21, 0.0 }
 0x15d   :  { %v4638_v34 = vpop.f32.mrf.mxu0 }
 0x15e   :  { %v930_v39 = vmax.f32 %v518_v29, 0.0  ;;  %v1042_v47 = vpack.c.bf16 %v932_v32, %v931_v40  ;;  %v539_v56 = vadd.f32 %v4638_v34, %v5525_v22  ;;  %v5637_v34 = vpop.f32.mrf.mxu1 }
 0x15f   :  { %v530_v43 = vpop.f32.mrf.mxu0 }
 0x160   :  { %v1041_v45 = vpack.c.bf16 %v930_v39, %v929_v36  ;;  %v531_v52 = vadd.f32 %v5525_v22, %v530_v43  ;;  %v935_v7 = vmax.f32 %v539_v56, 0.0 }
 0x161   :  { %v4639_v48 = vpop.f32.mrf.mxu0 }
 0x162   :  { %v542_v53 = vadd.f32 %v4639_v48, %v5525_v22  ;;  %4776 = vmatprep.mubr.bf16.mxu1 %v1041_v45  ;;  %v933_v2 = vmax.f32 %v531_v52, 0.0  ;;  %v5639_v52 = vpop.f32.mrf.mxu1 }
 0x163   :  { %v533_v58 = vpop.f32.mrf.mxu0  ;;  %4777 = vmatmul.mubr.bf16.gmra.mxu1 %v1042_v47 }
 0x164   :  { %v534_v60 = vadd.f32 %v5525_v22, %v533_v58  ;;  %v936_v61 = vmax.f32 %v542_v53, 0.0 }
 0x165   :  { %v4642_v63 = vpop.f32.mrf.mxu0 }
 0x166   :  { %v934_v6 = vmax.f32 %v534_v60, 0.0  ;;  %v1044_v12 = vpack.c.bf16 %v936_v61, %v935_v7  ;;  %v555_v24 = vadd.f32 %v4642_v63, %v5525_v22 }
 0x167   :  { %v546_v8 = vpop.f32.mrf.mxu0 }
 0x168   :  { %v1043_v11 = vpack.c.bf16 %v934_v6, %v933_v2  ;;  %v547_v18 = vadd.f32 %v5525_v22, %v546_v8  ;;  %v939_v40 = vmax.f32 %v555_v24, 0.0  ;;  %v5645_v6 = vpop.f32.mrf.mxu1 }
 0x169   :  { %v4643_v13 = vpop.f32.mrf.mxu0 }
 0x16a   :  { %v558_v21 = vadd.f32 %v4643_v13, %v5525_v22  ;;  %4780 = vmatprep.mubr.bf16.mxu1 %v1043_v11  ;;  %v937_v36 = vmax.f32 %v547_v18, 0.0  ;;  %v5647_v24 = vpop.f32.mrf.mxu1 }
 0x16b   :  { %v549_v25 = vpop.f32.mrf.mxu0  ;;  %4781 = vmatmul.mubr.bf16.gmra.mxu1 %v1044_v12 }
 0x16c   :  { %v550_v29 = vadd.f32 %v5525_v22, %v549_v25  ;;  %v940_v30 = vmax.f32 %v558_v21, 0.0 }
 0x16d   :  { %v4646_v32 = vpop.f32.mrf.mxu0 }
 0x16e   :  { %v938_v39 = vmax.f32 %v550_v29, 0.0  ;;  %v1046_v47 = vpack.c.bf16 %v940_v30, %v939_v40  ;;  %v571_v58 = vadd.f32 %v4646_v32, %v5525_v22 }
 0x16f   :  { %v562_v43 = vpop.f32.mrf.mxu0 }
 0x170   :  { %v1045_v45 = vpack.c.bf16 %v938_v39, %v937_v36  ;;  %v563_v53 = vadd.f32 %v5525_v22, %v562_v43  ;;  %v943_v11 = vmax.f32 %v571_v58, 0.0  ;;  %v5653_v43 = vpop.f32.mrf.mxu1 }
 0x171   :  { %v4647_v48 = vpop.f32.mrf.mxu0 }
 0x172   :  { %v574_v56 = vadd.f32 %v4647_v48, %v5525_v22  ;;  %4784 = vmatprep.mubr.bf16.mxu1 %v1045_v45  ;;  %v941_v7 = vmax.f32 %v563_v53, 0.0 }
 0x173   :  { %v565_v60 = vpop.f32.mrf.mxu0  ;;  %4785 = vmatmul.mubr.bf16.gmra.mxu1 %v1046_v47 }
 0x174   :  { %v566_v61 = vadd.f32 %v5525_v22, %v565_v60  ;;  %v944_v63 = vmax.f32 %v574_v56, 0.0 }
 0x175   :  { %v4650_v2 = vpop.f32.mrf.mxu0 }
 0x176   :  { %v942_v8 = vmax.f32 %v566_v61, 0.0  ;;  %v1048_v18 = vpack.c.bf16 %v944_v63, %v943_v11  ;;  %v587_v30 = vadd.f32 %v4650_v2, %v5525_v22  ;;  %v5655_v61 = vpop.f32.mrf.mxu1 }
 0x177   :  { %v578_v12 = vpop.f32.mrf.mxu0 }
 0x178   :  { %v1047_v13 = vpack.c.bf16 %v942_v8, %v941_v7  ;;  %v579_v25 = vadd.f32 %v5525_v22, %v578_v12  ;;  %v947_v48 = vmax.f32 %v587_v30, 0.0 }
 0x179   :  { %v4651_v21 = vpop.f32.mrf.mxu0 }
 0x17a   :  { %v590_v29 = vadd.f32 %v4651_v21, %v5525_v22  ;;  %4788 = vmatprep.mubr.bf16.mxu1 %v1047_v13  ;;  %v945_v45 = vmax.f32 %v579_v25, 0.0 }
 0x17b   :  { %v581_v32 = vpop.f32.mrf.mxu0  ;;  %4789 = vmatmul.mubr.bf16.gmra.mxu1 %v1048_v18  ;;  %v5661_v18 = vpop.f32.mrf.mxu1 }
 0x17c   :  { %v582_v36 = vadd.f32 %v5525_v22, %v581_v32  ;;  %v948_v39 = vmax.f32 %v590_v29, 0.0 }
 0x17d   :  { %v4654_v40 = vpop.f32.mrf.mxu0 }
 0x17e   :  { %v946_v47 = vmax.f32 %v582_v36, 0.0  ;;  %v1050_v58 = vpack.c.bf16 %v948_v39, %v947_v48  ;;  %v603_v7 = vadd.f32 %v4654_v40, %v5525_v22 }
 0x17f   :  { %v594_v53 = vpop.f32.mrf.mxu0 }
 0x180   :  { %v1049_v56 = vpack.c.bf16 %v946_v47, %v945_v45  ;;  %v595_v63 = vadd.f32 %v5525_v22, %v594_v53  ;;  %v951_v29 = vmax.f32 %v603_v7, 0.0  ;;  %v5663_v45 = vpop.f32.mrf.mxu1 }
 0x181   :  { %v4655_v60 = vpop.f32.mrf.mxu0 }
 0x182   :  { %v606_v2 = vadd.f32 %v4655_v60, %v5525_v22  ;;  %4792 = vmatprep.mubr.bf16.mxu1 %v1049_v56  ;;  %v949_v21 = vmax.f32 %v595_v63, 0.0  ;;  %v5669_v63 = vpop.f32.mrf.mxu1 }
 0x183   :  { %v597_v8 = vpop.f32.mrf.mxu0  ;;  %4793 = vmatmul.mubr.bf16.gmra.mxu1 %v1050_v58 }
 0x184   :  { %v598_v11 = vadd.f32 %v5525_v22, %v597_v8  ;;  %v952_v12 = vmax.f32 %v606_v2, 0.0 }
 0x185   :  { %v4658_v13 = vpop.f32.mrf.mxu0 }
 0x186   :  { %v950_v25 = vmax.f32 %v598_v11, 0.0  ;;  %v1052_v36 = vpack.c.bf16 %v952_v12, %v951_v29  ;;  %v619_v48 = vadd.f32 %v4658_v13, %v5525_v22  ;;  %v5671_v29 = vpop.f32.mrf.mxu1  ;;  %v643_v13 = vadd.f32 %v5525_v22, %v5527_v23 }
 0x187   :  { %v610_v30 = vpop.f32.mrf.mxu0 }
 0x188   :  { %v1051_v32 = vpack.c.bf16 %v950_v25, %v949_v21  ;;  %v611_v47 = vadd.f32 %v5525_v22, %v610_v30  ;;  %v955_v8 = vmax.f32 %v619_v48, 0.0  ;;  %v646_v30 = vadd.f32 %v5525_v22, %v5535_v31 }
 0x189   :  { %v4659_v39 = vpop.f32.mrf.mxu0 }
 0x18a   :  { %v622_v40 = vadd.f32 %v4659_v39, %v5525_v22  ;;  %4796 = vmatprep.mubr.bf16.mxu1 %v1051_v32  ;;  %v953_v2 = vmax.f32 %v611_v47, 0.0 }
 0x18b   :  { %v613_v53 = vpop.f32.mrf.mxu0  ;;  %4797 = vmatmul.mubr.bf16.gmra.mxu1 %v1052_v36 }
 0x18c   :  { %v614_v56 = vadd.f32 %v5525_v22, %v613_v53  ;;  %v956_v58 = vmax.f32 %v622_v40, 0.0  ;;  %v5681_v53 = vpop.f32.mrf.mxu1 }
 0x18d   :  { %v4662_v60 = vpop.f32.mrf.mxu0 }
 0x18e   :  { %v954_v7 = vmax.f32 %v614_v56, 0.0  ;;  %v1054_v21 = vpack.c.bf16 %v956_v58, %v955_v8  ;;  %v635_v39 = vadd.f32 %v4662_v60, %v5525_v22  ;;  %v961_v56 = vmax.f32 %v643_v13, 0.0 }
 0x18f   :  { %v626_v11 = vpop.f32.mrf.mxu0  ;;  %v962_v58 = vmax.f32 %v646_v30, 0.0  ;;  %v651_v8 = vadd.f32 %v5520_v20, %v5525_v22 }
 0x190   :  { %v1053_v12 = vpack.c.bf16 %v954_v7, %v953_v2  ;;  %v627_v32 = vadd.f32 %v5525_v22, %v626_v11  ;;  %v959_v7 = vmax.f32 %v635_v39, 0.0  ;;  %v654_v11 = vadd.f32 %v5531_v27, %v5525_v22 }
 0x191   :  { %v4663_v25 = vpop.f32.mrf.mxu0  ;;  %v1057_v13 = vpack.c.bf16 %v962_v58, %v961_v56  ;;  %v963_v30 = vmax.f32 %v651_v8, 0.0  ;;  %v686_v8 = vadd.f32 %v5555_v0, %v5525_v22  ;;  %v699_v0 = vadd.f32 %v5561_v10, %v5525_v22 }
 0x192   :  { %v638_v36 = vadd.f32 %v4663_v25, %v5525_v22  ;;  %4800 = vmatprep.mubr.bf16.mxu1 %v1053_v12  ;;  %v957_v23 = vmax.f32 %v627_v32, 0.0  ;;  %v5687_v12 = vpop.f32.mrf.mxu1  ;;  %v662_v25 = vadd.f32 %v5525_v22, %v5547_v50  ;;  %v964_v32 = vmax.f32 %v654_v11, 0.0 }
 0x193   :  { %v629_v47 = vpop.f32.mrf.mxu0  ;;  %4801 = vmatmul.mubr.bf16.gmra.mxu1 %v1054_v21  ;;  %v659_v21 = vadd.f32 %v5525_v22, %v5539_v41  ;;  %v670_v41 = vadd.f32 %v5543_v46, %v5525_v22  ;;  %v675_v50 = vadd.f32 %v5525_v22, %v5551_v59  ;;  %v683_v46 = vadd.f32 %v5549_v55, %v5525_v22 }
 0x194   :  { %v630_v40 = vadd.f32 %v5525_v22, %v629_v47  ;;  %v960_v48 = vmax.f32 %v638_v36, 0.0  ;;  %v5693_v36 = vpop.f32.mrf.mxu1  ;;  %v966_v39 = vmax.f32 %v662_v25, 0.0  ;;  %v1058_v27 = vpack.c.bf16 %v964_v32, %v963_v30 }
 0x195   :  { %v965_v20 = vmax.f32 %v659_v21, 0.0  ;;  %v667_v47 = vadd.f32 %v5537_v37, %v5525_v22  ;;  %v694_v11 = vadd.f32 %v5525_v22, %v5571_v26  ;;  %v971_v21 = vmax.f32 %v683_v46, 0.0 }
 0x196   :  { %v958_v2 = vmax.f32 %v630_v40, 0.0  ;;  %v1056_v60 = vpack.c.bf16 %v960_v48, %v959_v7  ;;  %v5699_v40 = vpop.f32.mrf.mxu1  ;;  %v678_v48 = vadd.f32 %v5525_v22, %v5559_v4  ;;  %v969_v7 = vmax.f32 %v675_v50, 0.0 }
 0x197   :  { %v1059_v56 = vpack.c.bf16 %v966_v39, %v965_v20  ;;  %v967_v58 = vmax.f32 %v667_v47, 0.0  ;;  %v691_v4 = vadd.f32 %v5525_v22, %v5563_v14  ;;  %v972_v25 = vmax.f32 %v686_v8, 0.0 }
 0x198   :  { %v1055_v31 = vpack.c.bf16 %v958_v2, %v957_v23  ;;  %v968_v23 = vmax.f32 %v670_v41, 0.0  ;;  %v5705_v2 = vpop.f32.mrf.mxu1  ;;  %v970_v37 = vmax.f32 %v678_v48, 0.0  ;;  %v974_v55 = vmax.f32 %v694_v11, 0.0 }
 0x199   :  { %v973_v30 = vmax.f32 %v691_v4, 0.0  ;;  %v1062_v32 = vpack.c.bf16 %v972_v25, %v971_v21  ;;  %v702_v20 = vadd.f32 %v5567_v19, %v5525_v22  ;;  %v707_v26 = vadd.f32 %v5525_v22, %v5575_v38 }
 0x19a   :  { %4804 = vmatprep.mubr.bf16.mxu1 %v1055_v31  ;;  %v1060_v31 = vpack.c.bf16 %v968_v23, %v967_v58  ;;  %v5711_v59 = vpop.f32.mrf.mxu1  ;;  %v710_v39 = vadd.f32 %v5525_v22, %v5583_v49  ;;  %v975_v47 = vmax.f32 %v699_v0, 0.0  ;;  %v715_v19 = vadd.f32 %v5573_v33, %v5525_v22 }
 0x19b   :  { %4805 = vmatmul.mubr.bf16.gmra.mxu1 %v1056_v60  ;;  %v1061_v60 = vpack.c.bf16 %v970_v37, %v969_v7  ;;  %v976_v41 = vmax.f32 %v702_v20, 0.0  ;;  %v977_v48 = vmax.f32 %v707_v26, 0.0  ;;  %v718_v58 = vadd.f32 %v5579_v44, %v5525_v22 }
 0x19c   :  { %4808 = vmatprep.mubr.bf16.mxu1 %v1057_v13  ;;  %v5717_v13 = vpop.f32.mrf.mxu1  ;;  %v978_v10 = vmax.f32 %v710_v39, 0.0  ;;  %v723_v49 = vadd.f32 %v5525_v22, %v5587_v62  ;;  %v726_v23 = vadd.f32 %v5525_v22, %v5595_v9  ;;  %v979_v37 = vmax.f32 %v715_v19, 0.0 }
 0x19d   :  { %v731_v44 = vadd.f32 %v5585_v57, %v5525_v22  ;;  %v734_v11 = vadd.f32 %v5591_v5, %v5525_v22  ;;  %v739_v9 = vadd.f32 %v5525_v22, %v5599_v28  ;;  %v747_v5 = vadd.f32 %v5597_v16, %v5525_v22 }
 0x19e   :  { %v5723_v14 = vpop.f32.mrf.mxu1  ;;  %v1065_v7 = vpack.c.bf16 %v978_v10, %v977_v48  ;;  %v981_v8 = vmax.f32 %v723_v49, 0.0  ;;  %v982_v33 = vmax.f32 %v726_v23, 0.0  ;;  %v750_v20 = vadd.f32 %v5605_v42, %v5525_v22 }
 0x19f   :  { %v983_v25 = vmax.f32 %v731_v44, 0.0  ;;  %v758_v26 = vadd.f32 %v5525_v22, %v5623_v51  ;;  %v763_v42 = vadd.f32 %v5613_v3, %v5525_v22  ;;  %v771_v51 = vadd.f32 %v5525_v22, %v5631_v15 }
 0x1a0   :  { %v5729_v50 = vpop.f32.mrf.mxu1  ;;  %v1067_v21 = vpack.c.bf16 %v982_v33, %v981_v8  ;;  %v774_v19 = vadd.f32 %v5525_v22, %v5639_v52  ;;  %v782_v8 = vadd.f32 %v5637_v34, %v5525_v22  ;;  %v787_v52 = vadd.f32 %v5525_v22, %v5647_v24 }
 0x1a1   :  { %v990_v16 = vmax.f32 %v758_v26, 0.0  ;;  %v991_v49 = vmax.f32 %v763_v42, 0.0  ;;  %v790_v33 = vadd.f32 %v5525_v22, %v5655_v61  ;;  %v795_v34 = vadd.f32 %v5645_v6, %v5525_v22 }
 0x1a2   :  { %v5735_v38 = vpop.f32.mrf.mxu1  ;;  %v994_v3 = vmax.f32 %v774_v19, 0.0  ;;  %v803_v61 = vadd.f32 %v5525_v22, %v5663_v45  ;;  %v822_v42 = vadd.f32 %v5525_v22, %v5699_v40 }
 0x1a3   :  { %4809 = vmatmul.mubr.bf16.gmra.mxu1 %v1058_v27  ;;  %v1063_v27 = vpack.c.bf16 %v974_v55, %v973_v30  ;;  %v984_v30 = vmax.f32 %v734_v11, 0.0  ;;  %v996_v11 = vmax.f32 %v782_v8, 0.0 }
 0x1a4   :  { %4812 = vmatprep.mubr.bf16.mxu1 %v1059_v56  ;;  %v1064_v56 = vpack.c.bf16 %v976_v41, %v975_v47  ;;  %v5741_v46 = vpop.f32.mrf.mxu1  ;;  %v988_v47 = vmax.f32 %v750_v20, 0.0 }
 0x1a5   :  { %v1068_v0 = vpack.c.bf16 %v984_v30, %v983_v25  ;;  %v798_v25 = vadd.f32 %v5653_v43, %v5525_v22  ;;  %v806_v30 = vadd.f32 %v5525_v22, %v5671_v29  ;;  %v5804_v43 = vld [vmem:[%s7888_s4] ss:$0 sm:$0xff] }
 0x1a6   :  { %v5747_v62 = vpop.f32.mrf.mxu1 }
 0x1a7   :  { %v1002_v6 = vmax.f32 %v806_v30, 0.0 }
 0x1a8   :  { %v5753_v55 = vpop.f32.mrf.mxu1 }
 0x1aa   :  { %v5759_v28 = vpop.f32.mrf.mxu1 }
 0x1ab   :  { %4813 = vmatmul.mubr.bf16.gmra.mxu1 %v1060_v31  ;;  %v980_v31 = vmax.f32 %v718_v58, 0.0 }
 0x1ac   :  { %4816 = vmatprep.mubr.bf16.mxu1 %v1061_v60  ;;  %v742_v60 = vadd.f32 %v5525_v22, %v5607_v54  ;;  %v755_v54 = vadd.f32 %v5525_v22, %v5615_v17  ;;  %v5765_v41 = vpop.f32.mrf.mxu1 }
 0x1ad   :  { %v1066_v4 = vpack.c.bf16 %v980_v31, %v979_v37  ;;  %v993_v37 = vmax.f32 %v771_v51, 0.0 }
 0x1ae   :  { %v986_v57 = vmax.f32 %v742_v60, 0.0  ;;  %v989_v48 = vmax.f32 %v755_v54, 0.0  ;;  %v5771_v17 = vpop.f32.mrf.mxu1  ;;  %v997_v60 = vmax.f32 %v787_v52, 0.0  ;;  %v1001_v54 = vmax.f32 %v803_v61, 0.0 }
 0x1b0   :  { %v1071_v58 = vpack.c.bf16 %v990_v16, %v989_v48  ;;  %v1077_v51 = vpack.c.bf16 %v1002_v6, %v1001_v54 }
 0x1b3   :  { %4817 = vmatmul.mubr.bf16.gmra.mxu1 %v1062_v32  ;;  %v985_v32 = vmax.f32 %v739_v9, 0.0 }
 0x1b4   :  { %4820 = vmatprep.mubr.bf16.mxu1 %v1063_v27  ;;  %v987_v27 = vmax.f32 %v747_v5, 0.0  ;;  %v1000_v5 = vmax.f32 %v798_v25, 0.0 }
 0x1b5   :  { %v1069_v39 = vpack.c.bf16 %v986_v57, %v985_v32 }
 0x1b6   :  { %v1070_v10 = vpack.c.bf16 %v988_v47, %v987_v27  ;;  %v811_v27 = vadd.f32 %v5661_v18, %v5525_v22  ;;  %v814_v47 = vadd.f32 %v5669_v63, %v5525_v22 }
 0x1b8   :  { %v1004_v63 = vmax.f32 %v814_v47, 0.0 }
 0x1bb   :  { %4821 = vmatmul.mubr.bf16.gmra.mxu1 %v1064_v56  ;;  %v766_v56 = vadd.f32 %v5621_v35, %v5525_v22  ;;  %v779_v35 = vadd.f32 %v5629_v1, %v5525_v22  ;;  %v998_v1 = vmax.f32 %v790_v33, 0.0 }
 0x1bc   :  { %4824 = vmatprep.mubr.bf16.mxu1 %v1065_v7  ;;  %v5777_v7 = vpop.f32.mrf.mxu1 }
 0x1bd   :  { %v992_v23 = vmax.f32 %v766_v56, 0.0  ;;  %v995_v44 = vmax.f32 %v779_v35, 0.0  ;;  %v1075_v32 = vpack.c.bf16 %v998_v1, %v997_v60  ;;  %v1006_v35 = vmax.f32 %v822_v42, 0.0 }
 0x1be   :  { %v5783_v15 = vpop.f32.mrf.mxu1 }
 0x1bf   :  { %v1072_v31 = vpack.c.bf16 %v992_v23, %v991_v49  ;;  %v1003_v23 = vmax.f32 %v811_v27, 0.0 }
 0x1c0   :  { %v5789_v9 = vpop.f32.mrf.mxu1 }
 0x1c2   :  { %v5795_v24 = vpop.f32.mrf.mxu1 }
 0x1c3   :  { %4825 = vmatmul.mubr.bf16.gmra.mxu1 %v1066_v4  ;;  %v1073_v4 = vpack.c.bf16 %v994_v3, %v993_v37 }
 0x1c4   :  { %4828 = vmatprep.mubr.bf16.mxu1 %v1067_v21  ;;  %v1074_v21 = vpack.c.bf16 %v996_v11, %v995_v44  ;;  %v827_v44 = vadd.f32 %v5681_v53, %v5525_v22  ;;  %v830_v11 = vadd.f32 %v5693_v36, %v5525_v22 }
 0x1c6   :  { %v1007_v36 = vmax.f32 %v827_v44, 0.0 }
 0x1cb   :  { %4829 = vmatmul.mubr.bf16.gmra.mxu1 %v1068_v0  ;;  %v999_v0 = vmax.f32 %v795_v34, 0.0  ;;  %v838_v34 = vadd.f32 %v5525_v22, %v5723_v14 }
 0x1cc   :  { %4832 = vmatprep.mubr.bf16.mxu1 %v1069_v39 }
 0x1cd   :  { %v1076_v29 = vpack.c.bf16 %v1000_v5, %v999_v0  ;;  %v1008_v0 = vmax.f32 %v830_v11, 0.0  ;;  %v1010_v6 = vmax.f32 %v838_v34, 0.0 }
 0x1d3   :  { %4833 = vmatmul.mubr.bf16.gmra.mxu1 %v1070_v10  ;;  %v819_v10 = vadd.f32 %v5525_v22, %v5687_v12 }
 0x1d4   :  { %4836 = vmatprep.mubr.bf16.mxu1 %v1071_v58 }
 0x1db   :  { %4837 = vmatmul.mubr.bf16.gmra.mxu1 %v1072_v31  ;;  %v1005_v31 = vmax.f32 %v819_v10, 0.0 }
 0x1dc   :  { %4840 = vmatprep.mubr.bf16.mxu1 %v1073_v4  ;;  %v1078_v4 = vpack.c.bf16 %v1004_v63, %v1003_v23 }
 0x1dd   :  { %v1079_v61 = vpack.c.bf16 %v1006_v35, %v1005_v31 }
 0x1e3   :  { %v4746_v57 = vpop.f32.mrf.mxu1  ;;  %4841 = vmatmul.mubr.bf16.gmra.mxu1 %v1074_v21  ;;  %v835_v21 = vadd.f32 %v5525_v22, %v5711_v59 }
 0x1e4   :  { %4844 = vmatprep.mubr.bf16.mxu1 %v1075_v32  ;;  %v1203_v48 = vadd.f32 %v4746_v57, %v5804_v43 }
 0x1e5   :  { %v1194_v20 = vpop.f32.mrf.mxu1  ;;  %v1009_v54 = vmax.f32 %v835_v21, 0.0 }
 0x1e6   :  { %v1195_v45 = vadd.f32 %v5804_v43, %v1194_v20  ;;  %v1707_v37 = vmax.f32 %v1203_v48, 0.0 }
 0x1e7   :  { %v4747_v26 = vpop.f32.mrf.mxu1 }
 0x1e8   :  { %v1206_v39 = vadd.f32 %v4747_v26, %v5804_v43  ;;  %v1705_v49 = vmax.f32 %v1195_v45, 0.0 }
 0x1e9   :  { %v1197_v16 = vpop.f32.mrf.mxu1 }
 0x1ea   :  { %v1198_v56 = vadd.f32 %v5804_v43, %v1197_v16  ;;  %v1708_v19 = vmax.f32 %v1206_v39, 0.0  ;;  %v1080_v39 = vpack.c.bf16 %v1008_v0, %v1007_v36 }
 0x1eb   :  { %v4750_v58 = vpop.f32.mrf.mxu1  ;;  %4845 = vmatmul.mubr.bf16.gmra.mxu1 %v1076_v29  ;;  %v5835_v29 = vld [vmem:[%s7886_s2] ss:$0 sm:$0xff] }
 0x1ec   :  { %v1706_v18 = vmax.f32 %v1198_v56, 0.0  ;;  %4848 = vmatprep.mubr.bf16.mxu1 %v1077_v51  ;;  %v1834_v12 = vpack.c.bf16 %v1708_v19, %v1707_v37  ;;  %v1219_v60 = vadd.f32 %v4750_v58, %v5804_v43  ;;  %v843_v27 = vadd.f32 %v5835_v29, %v5705_v2 }
 0x1ed   :  { %v1210_v3 = vpop.f32.mrf.mxu1  ;;  %v846_v47 = vadd.f32 %v5835_v29, %v5717_v13  ;;  %v851_v10 = vadd.f32 %v5835_v29, %v5735_v38  ;;  %v854_v42 = vadd.f32 %v5835_v29, %v5747_v62  ;;  %v1081_v51 = vpack.c.bf16 %v1010_v6, %v1009_v54 }
 0x1ee   :  { %v1833_v8 = vpack.c.bf16 %v1706_v18, %v1705_v49  ;;  %v1211_v40 = vadd.f32 %v5804_v43, %v1210_v3  ;;  %v1711_v5 = vmax.f32 %v1219_v60, 0.0  ;;  %v1011_v13 = vmax.f32 %v843_v27, 0.0 }
 0x1ef   :  { %v4751_v52 = vpop.f32.mrf.mxu1  ;;  %v1012_v18 = vmax.f32 %v846_v47, 0.0  ;;  %v1013_v37 = vmax.f32 %v851_v10, 0.0  ;;  %v1014_v3 = vmax.f32 %v854_v42, 0.0  ;;  %v867_v44 = vadd.f32 %v5835_v29, %v5759_v28 }
 0x1f0   :  { %v1222_v33 = vadd.f32 %v4751_v52, %v5804_v43  ;;  %4888 = vmatprep.mubr.bf16.mxu0 %v1833_v8  ;;  %v1709_v53 = vmax.f32 %v1211_v40, 0.0  ;;  %v859_v52 = vadd.f32 %v5835_v29, %v5729_v50  ;;  %v862_v40 = vadd.f32 %v5835_v29, %v5741_v46 }
 0x1f1   :  { %v1213_v1 = vpop.f32.mrf.mxu1  ;;  %4889 = vmatmul.mubr.bf16.vlgmr.msra.gmra.mxu0 %v1834_v12  ;;  %v1082_v12 = vpack.c.bf16 %v1012_v18, %v1011_v13  ;;  %v870_v11 = vadd.f32 %v5835_v29, %v5771_v17  ;;  %v875_v54 = vadd.f32 %v5835_v29, %v5753_v55  ;;  %v878_v6 = vadd.f32 %v5835_v29, %v5765_v41 }
 0x1f2   :  { %v1214_v25 = vadd.f32 %v5804_v43, %v1213_v1  ;;  %v1712_v30 = vmax.f32 %v1222_v33, 0.0  ;;  %v1083_v1 = vpack.c.bf16 %v1014_v3, %v1013_v37  ;;  %v1015_v46 = vmax.f32 %v859_v52, 0.0 }
 0x1f3   :  { %v4754_v32 = vpop.f32.mrf.mxu1  ;;  %4849 = vmatmul.mubr.bf16.gmra.mxu1 %v1078_v4  ;;  %v1019_v41 = vmax.f32 %v875_v54, 0.0  ;;  %v891_v13 = vadd.f32 %v5835_v29, %v5777_v7  ;;  %v894_v18 = vadd.f32 %v5835_v29, %v5789_v9 }
 0x1f4   :  { %v1710_v57 = vmax.f32 %v1214_v25, 0.0  ;;  %4852 = vmatprep.mubr.bf16.mxu1 %v1079_v61  ;;  %v1836_v59 = vpack.c.bf16 %v1712_v30, %v1711_v5  ;;  %v1235_v48 = vadd.f32 %v4754_v32, %v5804_v43  ;;  %v1016_v61 = vmax.f32 %v862_v40, 0.0 }
 0x1f5   :  { %v1226_v20 = vpop.f32.mrf.mxu1 }
 0x1f6   :  { %v1835_v26 = vpack.c.bf16 %v1710_v57, %v1709_v53  ;;  %v1227_v22 = vadd.f32 %v5804_v43, %v1226_v20  ;;  %v1715_v23 = vmax.f32 %v1235_v48, 0.0  ;;  %v1017_v53 = vmax.f32 %v867_v44, 0.0 }
 0x1f7   :  { %v4755_v45 = vpop.f32.mrf.mxu1  ;;  %v1018_v57 = vmax.f32 %v870_v11, 0.0  ;;  %v1084_v20 = vpack.c.bf16 %v1016_v61, %v1015_v46 }
 0x1f8   :  { %v1238_v14 = vadd.f32 %v4755_v45, %v5804_v43  ;;  %4892 = vmatprep.mubr.bf16.mxu0 %v1835_v26  ;;  %v1713_v2 = vmax.f32 %v1227_v22, 0.0  ;;  %v883_v45 = vadd.f32 %v5835_v29, %v5783_v15  ;;  %v886_v22 = vadd.f32 %v5835_v29, %v5795_v24 }
 0x1f9   :  { %v1229_v16 = vpop.f32.mrf.mxu1  ;;  %4893 = vmatmul.mubr.bf16.gmra.mxu0 %v1836_v59 }
 0x1fa   :  { %v1230_v56 = vadd.f32 %v5804_v43, %v1229_v16  ;;  %v1716_v19 = vmax.f32 %v1238_v14, 0.0  ;;  %v1020_v16 = vmax.f32 %v878_v6, 0.0 }
 0x1fb   :  { %v4758_v58 = vpop.f32.mrf.mxu1  ;;  %4853 = vmatmul.mubr.bf16.gmra.mxu1 %v1080_v39  ;;  %v1085_v39 = vpack.c.bf16 %v1018_v57, %v1017_v53 }
 0x1fc   :  { %v1714_v49 = vmax.f32 %v1230_v56, 0.0  ;;  %4856 = vmatprep.mubr.bf16.mxu1 %v1081_v51  ;;  %v1838_v38 = vpack.c.bf16 %v1716_v19, %v1715_v23  ;;  %v1251_v33 = vadd.f32 %v4758_v58, %v5804_v43  ;;  %v1021_v56 = vmax.f32 %v883_v45, 0.0 }
 0x1fd   :  { %v1242_v63 = vpop.f32.mrf.mxu1  ;;  %v1022_v51 = vmax.f32 %v886_v22, 0.0 }
 0x1fe   :  { %v1837_v31 = vpack.c.bf16 %v1714_v49, %v1713_v2  ;;  %v1243_v62 = vadd.f32 %v5804_v43, %v1242_v63  ;;  %v1719_v30 = vmax.f32 %v1251_v33, 0.0  ;;  %v1086_v49 = vpack.c.bf16 %v1020_v16, %v1019_v41 }
 0x1ff   :  { %v4759_v35 = vpop.f32.mrf.mxu1  ;;  %v1087_v3 = vpack.c.bf16 %v1022_v51, %v1021_v56 }
 0x200   :  { %v1254_v8 = vadd.f32 %v4759_v35, %v5804_v43  ;;  %4896 = vmatprep.mubr.bf16.mxu0 %v1837_v31  ;;  %v1717_v50 = vmax.f32 %v1243_v62, 0.0 }
 0x201   :  { %v1245_v4 = vpop.f32.mrf.mxu1  ;;  %4897 = vmatmul.mubr.bf16.gmra.mxu0 %v1838_v38 }
 0x202   :  { %v1246_v60 = vadd.f32 %v5804_v43, %v1245_v4  ;;  %v1720_v21 = vmax.f32 %v1254_v8, 0.0  ;;  %v1023_v8 = vmax.f32 %v891_v13, 0.0 }
 0x203   :  { %v4762_v34 = vpop.f32.mrf.mxu1  ;;  %4857 = vmatmul.mubr.bf16.gmra.mxu1 %v1082_v12  ;;  %v1024_v12 = vmax.f32 %v894_v18, 0.0 }
 0x204   :  { %v1718_v25 = vmax.f32 %v1246_v60, 0.0  ;;  %4860 = vmatprep.mubr.bf16.mxu1 %v1083_v1  ;;  %v1840_v28 = vpack.c.bf16 %v1720_v21, %v1719_v30  ;;  %v1267_v26 = vadd.f32 %v4762_v34, %v5804_v43 }
 0x205   :  { %v1258_v32 = vpop.f32.mrf.mxu1  ;;  %v1088_v44 = vpack.c.bf16 %v1024_v12, %v1023_v8 }
 0x206   :  { %v1839_v36 = vpack.c.bf16 %v1718_v25, %v1717_v50  ;;  %v1259_v17 = vadd.f32 %v5804_v43, %v1258_v32  ;;  %v1723_v10 = vmax.f32 %v1267_v26, 0.0 }
 0x207   :  { %v4763_v0 = vpop.f32.mrf.mxu1 }
 0x208   :  { %v1270_v5 = vadd.f32 %v4763_v0, %v5804_v43  ;;  %4900 = vmatprep.mubr.bf16.mxu0 %v1839_v36  ;;  %v1721_v55 = vmax.f32 %v1259_v17, 0.0 }
 0x209   :  { %v1261_v59 = vpop.f32.mrf.mxu1  ;;  %4901 = vmatmul.mubr.bf16.gmra.mxu0 %v1840_v28 }
 0x20a   :  { %v1262_v14 = vadd.f32 %v5804_v43, %v1261_v59  ;;  %v1724_v27 = vmax.f32 %v1270_v5, 0.0 }
 0x20b   :  { %v4766_v47 = vpop.f32.mrf.mxu1  ;;  %4861 = vmatmul.mubr.bf16.gmra.mxu1 %v1084_v20 }
 0x20c   :  { %v1722_v48 = vmax.f32 %v1262_v14, 0.0  ;;  %4864 = vmatprep.mubr.bf16.mxu1 %v1085_v39  ;;  %v1842_v15 = vpack.c.bf16 %v1724_v27, %v1723_v10  ;;  %v1283_v23 = vadd.f32 %v4766_v47, %v5804_v43 }
 0x20d   :  { %v1274_v42 = vpop.f32.mrf.mxu1 }
 0x20e   :  { %v1841_v19 = vpack.c.bf16 %v1722_v48, %v1721_v55  ;;  %v1275_v24 = vadd.f32 %v5804_v43, %v1274_v42  ;;  %v1727_v52 = vmax.f32 %v1283_v23, 0.0 }
 0x20f   :  { %v4767_v58 = vpop.f32.mrf.mxu1 }
 0x210   :  { %v1286_v2 = vadd.f32 %v4767_v58, %v5804_v43  ;;  %4904 = vmatprep.mubr.bf16.mxu0 %v1841_v19  ;;  %v1725_v35 = vmax.f32 %v1275_v24, 0.0 }
 0x211   :  { %v1277_v63 = vpop.f32.mrf.mxu1  ;;  %4905 = vmatmul.mubr.bf16.gmra.mxu0 %v1842_v15 }
 0x212   :  { %v1278_v37 = vadd.f32 %v5804_v43, %v1277_v63  ;;  %v1728_v31 = vmax.f32 %v1286_v2, 0.0 }
 0x213   :  { %v4770_v38 = vpop.f32.mrf.mxu1  ;;  %4865 = vmatmul.mubr.bf16.gmra.mxu1 %v1086_v49 }
 0x214   :  { %v1726_v62 = vmax.f32 %v1278_v37, 0.0  ;;  %4868 = vmatprep.mubr.bf16.mxu1 %v1087_v3  ;;  %v1844_v33 = vpack.c.bf16 %v1728_v31, %v1727_v52  ;;  %v1299_v11 = vadd.f32 %v4770_v38, %v5804_v43 }
 0x215   :  { %v1290_v7 = vpop.f32.mrf.mxu1 }
 0x216   :  { %v1843_v40 = vpack.c.bf16 %v1726_v62, %v1725_v35  ;;  %v1291_v29 = vadd.f32 %v5804_v43, %v1290_v7  ;;  %v1731_v46 = vmax.f32 %v1299_v11, 0.0 }
 0x217   :  { %v4771_v9 = vpop.f32.mrf.mxu1 }
 0x218   :  { %v1302_v4 = vadd.f32 %v4771_v9, %v5804_v43  ;;  %4908 = vmatprep.mubr.bf16.mxu0 %v1843_v40  ;;  %v1729_v50 = vmax.f32 %v1291_v29, 0.0 }
 0x219   :  { %v1293_v60 = vpop.f32.mrf.mxu1  ;;  %4909 = vmatmul.mubr.bf16.gmra.mxu0 %v1844_v33 }
 0x21a   :  { %v1294_v1 = vadd.f32 %v5804_v43, %v1293_v60  ;;  %v1732_v21 = vmax.f32 %v1302_v4, 0.0 }
 0x21b   :  { %v4774_v34 = vpop.f32.mrf.mxu1  ;;  %4869 = vmatmul.mubr.bf16.gmra.mxu1 %v1088_v44 }
 0x21c   :  { %v1730_v25 = vmax.f32 %v1294_v1, 0.0  ;;  %v1846_v32 = vpack.c.bf16 %v1732_v21, %v1731_v46  ;;  %v1315_v28 = vadd.f32 %v4774_v34, %v5804_v43 }
 0x21d   :  { %v1306_v61 = vpop.f32.mrf.mxu1 }
 0x21e   :  { %v1845_v30 = vpack.c.bf16 %v1730_v25, %v1729_v50  ;;  %v1307_v57 = vadd.f32 %v5804_v43, %v1306_v61  ;;  %v1735_v26 = vmax.f32 %v1315_v28, 0.0 }
 0x21f   :  { %v4775_v53 = vpop.f32.mrf.mxu1 }
 0x220   :  { %v1318_v36 = vadd.f32 %v4775_v53, %v5804_v43  ;;  %4912 = vmatprep.mubr.bf16.mxu0 %v1845_v30  ;;  %v1733_v54 = vmax.f32 %v1307_v57, 0.0 }
 0x221   :  { %v1309_v0 = vpop.f32.mrf.mxu1  ;;  %4913 = vmatmul.mubr.bf16.gmra.mxu0 %v1846_v32 }
 0x222   :  { %v1310_v17 = vadd.f32 %v5804_v43, %v1309_v0  ;;  %v1736_v5 = vmax.f32 %v1318_v36, 0.0 }
 0x223   :  { %v4778_v20 = vpop.f32.mrf.mxu1 }
 0x224   :  { %v1734_v6 = vmax.f32 %v1310_v17, 0.0  ;;  %v1848_v22 = vpack.c.bf16 %v1736_v5, %v1735_v26  ;;  %v1331_v47 = vadd.f32 %v4778_v20, %v5804_v43 }
 0x225   :  { %v1322_v59 = vpop.f32.mrf.mxu1 }
 0x226   :  { %v1847_v45 = vpack.c.bf16 %v1734_v6, %v1733_v54  ;;  %v1323_v39 = vadd.f32 %v5804_v43, %v1322_v59  ;;  %v1739_v56 = vmax.f32 %v1331_v47, 0.0 }
 0x227   :  { %v4779_v14 = vpop.f32.mrf.mxu1 }
 0x228   :  { %v1334_v27 = vadd.f32 %v4779_v14, %v5804_v43  ;;  %4916 = vmatprep.mubr.bf16.mxu0 %v1847_v45  ;;  %v1737_v10 = vmax.f32 %v1323_v39, 0.0 }
 0x229   :  { %v1325_v55 = vpop.f32.mrf.mxu1  ;;  %4917 = vmatmul.mubr.bf16.gmra.mxu0 %v1848_v22 }
 0x22a   :  { %v1326_v48 = vadd.f32 %v5804_v43, %v1325_v55  ;;  %v1740_v41 = vmax.f32 %v1334_v27, 0.0 }
 0x22b   :  { %v4782_v16 = vpop.f32.mrf.mxu1 }
 0x22c   :  { %v1738_v42 = vmax.f32 %v1326_v48, 0.0  ;;  %v1850_v15 = vpack.c.bf16 %v1740_v41, %v1739_v56  ;;  %v1347_v49 = vadd.f32 %v4782_v16, %v5804_v43 }
 0x22d   :  { %v1338_v51 = vpop.f32.mrf.mxu1 }
 0x22e   :  { %v1849_v19 = vpack.c.bf16 %v1738_v42, %v1737_v10  ;;  %v1339_v24 = vadd.f32 %v5804_v43, %v1338_v51  ;;  %v1743_v31 = vmax.f32 %v1347_v49, 0.0 }
 0x22f   :  { %v4783_v58 = vpop.f32.mrf.mxu1 }
 0x230   :  { %v1350_v2 = vadd.f32 %v4783_v58, %v5804_v43  ;;  %4920 = vmatprep.mubr.bf16.mxu0 %v1849_v19  ;;  %v1741_v37 = vmax.f32 %v1339_v24, 0.0 }
 0x231   :  { %v1341_v13 = vpop.f32.mrf.mxu1  ;;  %4921 = vmatmul.mubr.bf16.gmra.mxu0 %v1850_v15 }
 0x232   :  { %v1342_v18 = vadd.f32 %v5804_v43, %v1341_v13  ;;  %v1744_v23 = vmax.f32 %v1350_v2, 0.0 }
 0x233   :  { %v4786_v63 = vpop.f32.mrf.mxu1 }
 0x234   :  { %v1742_v3 = vmax.f32 %v1342_v18, 0.0  ;;  %v1852_v62 = vpack.c.bf16 %v1744_v23, %v1743_v31  ;;  %v1363_v7 = vadd.f32 %v4786_v63, %v5804_v43 }
 0x235   :  { %v1354_v38 = vpop.f32.mrf.mxu1 }
 0x236   :  { %v1851_v35 = vpack.c.bf16 %v1742_v3, %v1741_v37  ;;  %v1355_v12 = vadd.f32 %v5804_v43, %v1354_v38  ;;  %v1747_v11 = vmax.f32 %v1363_v7, 0.0 }
 0x237   :  { %v4787_v8 = vpop.f32.mrf.mxu1 }
 0x238   :  { %v1366_v52 = vadd.f32 %v4787_v8, %v5804_v43  ;;  %4924 = vmatprep.mubr.bf16.mxu0 %v1851_v35  ;;  %v1745_v4 = vmax.f32 %v1355_v12, 0.0 }
 0x239   :  { %v1357_v40 = vpop.f32.mrf.mxu1  ;;  %4925 = vmatmul.mubr.bf16.gmra.mxu0 %v1852_v62 }
 0x23a   :  { %v1358_v33 = vadd.f32 %v5804_v43, %v1357_v40  ;;  %v1748_v9 = vmax.f32 %v1366_v52, 0.0 }
 0x23b   :  { %v4790_v29 = vpop.f32.mrf.mxu1 }
 0x23c   :  { %v1746_v44 = vmax.f32 %v1358_v33, 0.0  ;;  %v1854_v21 = vpack.c.bf16 %v1748_v9, %v1747_v11  ;;  %v1379_v46 = vadd.f32 %v4790_v29, %v5804_v43 }
 0x23d   :  { %v1370_v60 = vpop.f32.mrf.mxu1 }
 0x23e   :  { %v1853_v1 = vpack.c.bf16 %v1746_v44, %v1745_v4  ;;  %v1371_v50 = vadd.f32 %v5804_v43, %v1370_v60  ;;  %v1751_v28 = vmax.f32 %v1379_v46, 0.0 }
 0x23f   :  { %v4791_v34 = vpop.f32.mrf.mxu1 }
 0x240   :  { %v1382_v25 = vadd.f32 %v4791_v34, %v5804_v43  ;;  %4928 = vmatprep.mubr.bf16.mxu0 %v1853_v1  ;;  %v1749_v57 = vmax.f32 %v1371_v50, 0.0 }
 0x241   :  { %v1373_v61 = vpop.f32.mrf.mxu1  ;;  %4929 = vmatmul.mubr.bf16.gmra.mxu0 %v1854_v21 }
 0x242   :  { %v1374_v30 = vadd.f32 %v5804_v43, %v1373_v61  ;;  %v1752_v32 = vmax.f32 %v1382_v25, 0.0 }
 0x243   :  { %v4794_v53 = vpop.f32.mrf.mxu1 }
 0x244   :  { %v1750_v36 = vmax.f32 %v1374_v30, 0.0  ;;  %v1856_v5 = vpack.c.bf16 %v1752_v32, %v1751_v28  ;;  %v1395_v26 = vadd.f32 %v4794_v53, %v5804_v43 }
 0x245   :  { %v1386_v0 = vpop.f32.mrf.mxu1 }
 0x246   :  { %v1855_v17 = vpack.c.bf16 %v1750_v36, %v1749_v57  ;;  %v1387_v54 = vadd.f32 %v5804_v43, %v1386_v0  ;;  %v1755_v47 = vmax.f32 %v1395_v26, 0.0 }
 0x247   :  { %v4795_v20 = vpop.f32.mrf.mxu1 }
 0x248   :  { %v1398_v6 = vadd.f32 %v4795_v20, %v5804_v43  ;;  %4932 = vmatprep.mubr.bf16.mxu0 %v1855_v17  ;;  %v1753_v39 = vmax.f32 %v1387_v54, 0.0 }
 0x249   :  { %v1389_v59 = vpop.f32.mrf.mxu1  ;;  %4933 = vmatmul.mubr.bf16.gmra.mxu0 %v1856_v5 }
 0x24a   :  { %v1390_v45 = vadd.f32 %v5804_v43, %v1389_v59  ;;  %v1756_v22 = vmax.f32 %v1398_v6, 0.0 }
 0x24b   :  { %v4798_v14 = vpop.f32.mrf.mxu1 }
 0x24c   :  { %v1754_v27 = vmax.f32 %v1390_v45, 0.0  ;;  %v1858_v41 = vpack.c.bf16 %v1756_v22, %v1755_v47  ;;  %v1411_v56 = vadd.f32 %v4798_v14, %v5804_v43 }
 0x24d   :  { %v1402_v55 = vpop.f32.mrf.mxu1 }
 0x24e   :  { %v1857_v48 = vpack.c.bf16 %v1754_v27, %v1753_v39  ;;  %v1403_v10 = vadd.f32 %v5804_v43, %v1402_v55  ;;  %v1759_v49 = vmax.f32 %v1411_v56, 0.0 }
 0x24f   :  { %v4799_v16 = vpop.f32.mrf.mxu1 }
 0x250   :  { %v1414_v42 = vadd.f32 %v4799_v16, %v5804_v43  ;;  %4936 = vmatprep.mubr.bf16.mxu0 %v1857_v48  ;;  %v1757_v24 = vmax.f32 %v1403_v10, 0.0 }
 0x251   :  { %v1405_v51 = vpop.f32.mrf.mxu1  ;;  %4937 = vmatmul.mubr.bf16.gmra.mxu0 %v1858_v41 }
 0x252   :  { %v1406_v19 = vadd.f32 %v5804_v43, %v1405_v51  ;;  %v1760_v15 = vmax.f32 %v1414_v42, 0.0 }
 0x253   :  { %v4802_v58 = vpop.f32.mrf.mxu1 }
 0x254   :  { %v1758_v2 = vmax.f32 %v1406_v19, 0.0  ;;  %v1860_v23 = vpack.c.bf16 %v1760_v15, %v1759_v49  ;;  %v1427_v31 = vadd.f32 %v4802_v58, %v5804_v43 }
 0x255   :  { %v1418_v13 = vpop.f32.mrf.mxu1 }
 0x256   :  { %v1859_v18 = vpack.c.bf16 %v1758_v2, %v1757_v24  ;;  %v1419_v37 = vadd.f32 %v5804_v43, %v1418_v13  ;;  %v1763_v7 = vmax.f32 %v1427_v31, 0.0 }
 0x257   :  { %v4803_v63 = vpop.f32.mrf.mxu1 }
 0x258   :  { %v1430_v3 = vadd.f32 %v4803_v63, %v5804_v43  ;;  %4940 = vmatprep.mubr.bf16.mxu0 %v1859_v18  ;;  %v1761_v12 = vmax.f32 %v1419_v37, 0.0 }
 0x259   :  { %v1421_v38 = vpop.f32.mrf.mxu1  ;;  %4941 = vmatmul.mubr.bf16.gmra.mxu0 %v1860_v23 }
 0x25a   :  { %v1422_v35 = vadd.f32 %v5804_v43, %v1421_v38  ;;  %v1764_v62 = vmax.f32 %v1430_v3, 0.0 }
 0x25b   :  { %v4806_v8 = vpop.f32.mrf.mxu1 }
 0x25c   :  { %v1762_v52 = vmax.f32 %v1422_v35, 0.0  ;;  %v1862_v9 = vpack.c.bf16 %v1764_v62, %v1763_v7  ;;  %v1443_v11 = vadd.f32 %v4806_v8, %v5804_v43 }
 0x25d   :  { %v1434_v40 = vpop.f32.mrf.mxu1 }
 0x25e   :  { %v1861_v33 = vpack.c.bf16 %v1762_v52, %v1761_v12  ;;  %v1435_v4 = vadd.f32 %v5804_v43, %v1434_v40  ;;  %v1767_v46 = vmax.f32 %v1443_v11, 0.0 }
 0x25f   :  { %v4807_v29 = vpop.f32.mrf.mxu1 }
 0x260   :  { %v1446_v44 = vadd.f32 %v4807_v29, %v5804_v43  ;;  %4944 = vmatprep.mubr.bf16.mxu0 %v1861_v33  ;;  %v1765_v50 = vmax.f32 %v1435_v4, 0.0 }
 0x261   :  { %v1437_v60 = vpop.f32.mrf.mxu1  ;;  %4945 = vmatmul.mubr.bf16.gmra.mxu0 %v1862_v9 }
 0x262   :  { %v1438_v1 = vadd.f32 %v5804_v43, %v1437_v60  ;;  %v1768_v21 = vmax.f32 %v1446_v44, 0.0 }
 0x263   :  { %v4810_v34 = vpop.f32.mrf.mxu1 }
 0x264   :  { %v1766_v25 = vmax.f32 %v1438_v1, 0.0  ;;  %v1864_v32 = vpack.c.bf16 %v1768_v21, %v1767_v46  ;;  %v1459_v28 = vadd.f32 %v4810_v34, %v5804_v43 }
 0x265   :  { %v1450_v61 = vpop.f32.mrf.mxu1 }
 0x266   :  { %v1863_v30 = vpack.c.bf16 %v1766_v25, %v1765_v50  ;;  %v1451_v57 = vadd.f32 %v5804_v43, %v1450_v61  ;;  %v1771_v26 = vmax.f32 %v1459_v28, 0.0 }
 0x267   :  { %v4811_v53 = vpop.f32.mrf.mxu1 }
 0x268   :  { %v1462_v36 = vadd.f32 %v4811_v53, %v5804_v43  ;;  %4948 = vmatprep.mubr.bf16.mxu0 %v1863_v30  ;;  %v1769_v54 = vmax.f32 %v1451_v57, 0.0 }
 0x269   :  { %v1453_v0 = vpop.f32.mrf.mxu1  ;;  %4949 = vmatmul.mubr.bf16.gmra.mxu0 %v1864_v32 }
 0x26a   :  { %v1454_v17 = vadd.f32 %v5804_v43, %v1453_v0  ;;  %v1772_v5 = vmax.f32 %v1462_v36, 0.0 }
 0x26b   :  { %v4814_v20 = vpop.f32.mrf.mxu1 }
 0x26c   :  { %v1770_v6 = vmax.f32 %v1454_v17, 0.0  ;;  %v1866_v22 = vpack.c.bf16 %v1772_v5, %v1771_v26  ;;  %v1475_v47 = vadd.f32 %v4814_v20, %v5804_v43 }
 0x26d   :  { %v1466_v59 = vpop.f32.mrf.mxu1 }
 0x26e   :  { %v1865_v45 = vpack.c.bf16 %v1770_v6, %v1769_v54  ;;  %v1467_v39 = vadd.f32 %v5804_v43, %v1466_v59  ;;  %v1775_v56 = vmax.f32 %v1475_v47, 0.0 }
 0x26f   :  { %v4815_v14 = vpop.f32.mrf.mxu1 }
 0x270   :  { %v1478_v27 = vadd.f32 %v4815_v14, %v5804_v43  ;;  %4952 = vmatprep.mubr.bf16.mxu0 %v1865_v45  ;;  %v1773_v10 = vmax.f32 %v1467_v39, 0.0 }
 0x271   :  { %v1469_v55 = vpop.f32.mrf.mxu1  ;;  %4953 = vmatmul.mubr.bf16.gmra.mxu0 %v1866_v22 }
 0x272   :  { %v1470_v48 = vadd.f32 %v5804_v43, %v1469_v55  ;;  %v1776_v41 = vmax.f32 %v1478_v27, 0.0 }
 0x273   :  { %v4818_v16 = vpop.f32.mrf.mxu1 }
 0x274   :  { %v1774_v42 = vmax.f32 %v1470_v48, 0.0  ;;  %v1868_v15 = vpack.c.bf16 %v1776_v41, %v1775_v56  ;;  %v1491_v49 = vadd.f32 %v4818_v16, %v5804_v43 }
 0x275   :  { %v1482_v51 = vpop.f32.mrf.mxu1 }
 0x276   :  { %v1867_v19 = vpack.c.bf16 %v1774_v42, %v1773_v10  ;;  %v1483_v24 = vadd.f32 %v5804_v43, %v1482_v51  ;;  %v1779_v31 = vmax.f32 %v1491_v49, 0.0 }
 0x277   :  { %v4819_v58 = vpop.f32.mrf.mxu1 }
 0x278   :  { %v1494_v2 = vadd.f32 %v4819_v58, %v5804_v43  ;;  %4956 = vmatprep.mubr.bf16.mxu0 %v1867_v19  ;;  %v1777_v37 = vmax.f32 %v1483_v24, 0.0 }
 0x279   :  { %v1485_v13 = vpop.f32.mrf.mxu1  ;;  %4957 = vmatmul.mubr.bf16.gmra.mxu0 %v1868_v15 }
 0x27a   :  { %v1486_v18 = vadd.f32 %v5804_v43, %v1485_v13  ;;  %v1780_v23 = vmax.f32 %v1494_v2, 0.0 }
 0x27b   :  { %v4822_v63 = vpop.f32.mrf.mxu1 }
 0x27c   :  { %v1778_v3 = vmax.f32 %v1486_v18, 0.0  ;;  %v1870_v62 = vpack.c.bf16 %v1780_v23, %v1779_v31  ;;  %v1507_v7 = vadd.f32 %v4822_v63, %v5804_v43 }
 0x27d   :  { %v1498_v38 = vpop.f32.mrf.mxu1 }
 0x27e   :  { %v1869_v35 = vpack.c.bf16 %v1778_v3, %v1777_v37  ;;  %v1499_v12 = vadd.f32 %v5804_v43, %v1498_v38  ;;  %v1783_v11 = vmax.f32 %v1507_v7, 0.0 }
 0x27f   :  { %v4823_v8 = vpop.f32.mrf.mxu1 }
 0x280   :  { %v1510_v52 = vadd.f32 %v4823_v8, %v5804_v43  ;;  %4960 = vmatprep.mubr.bf16.mxu0 %v1869_v35  ;;  %v1781_v4 = vmax.f32 %v1499_v12, 0.0 }
 0x281   :  { %v1501_v40 = vpop.f32.mrf.mxu1  ;;  %4961 = vmatmul.mubr.bf16.gmra.mxu0 %v1870_v62 }
 0x282   :  { %v1502_v33 = vadd.f32 %v5804_v43, %v1501_v40  ;;  %v1784_v9 = vmax.f32 %v1510_v52, 0.0 }
 0x283   :  { %v4826_v29 = vpop.f32.mrf.mxu1 }
 0x284   :  { %v1782_v44 = vmax.f32 %v1502_v33, 0.0  ;;  %v1872_v21 = vpack.c.bf16 %v1784_v9, %v1783_v11  ;;  %v1523_v46 = vadd.f32 %v4826_v29, %v5804_v43 }
 0x285   :  { %v1514_v60 = vpop.f32.mrf.mxu1 }
 0x286   :  { %v1871_v1 = vpack.c.bf16 %v1782_v44, %v1781_v4  ;;  %v1515_v50 = vadd.f32 %v5804_v43, %v1514_v60  ;;  %v1787_v28 = vmax.f32 %v1523_v46, 0.0 }
 0x287   :  { %v4827_v34 = vpop.f32.mrf.mxu1 }
 0x288   :  { %v1526_v25 = vadd.f32 %v4827_v34, %v5804_v43  ;;  %4964 = vmatprep.mubr.bf16.mxu0 %v1871_v1  ;;  %v1785_v57 = vmax.f32 %v1515_v50, 0.0 }
 0x289   :  { %v1517_v61 = vpop.f32.mrf.mxu1  ;;  %4965 = vmatmul.mubr.bf16.gmra.mxu0 %v1872_v21 }
 0x28a   :  { %v1518_v30 = vadd.f32 %v5804_v43, %v1517_v61  ;;  %v1788_v32 = vmax.f32 %v1526_v25, 0.0 }
 0x28b   :  { %v4830_v53 = vpop.f32.mrf.mxu1 }
 0x28c   :  { %v1786_v36 = vmax.f32 %v1518_v30, 0.0  ;;  %v1874_v5 = vpack.c.bf16 %v1788_v32, %v1787_v28  ;;  %v1539_v26 = vadd.f32 %v4830_v53, %v5804_v43 }
 0x28d   :  { %v1530_v0 = vpop.f32.mrf.mxu1 }
 0x28e   :  { %v1873_v17 = vpack.c.bf16 %v1786_v36, %v1785_v57  ;;  %v1531_v54 = vadd.f32 %v5804_v43, %v1530_v0  ;;  %v1791_v47 = vmax.f32 %v1539_v26, 0.0  ;;  %v5958_v57 = vld [vmem:[%s7890_s6] ss:$0 sm:$0xff] }
 0x28f   :  { %v4831_v20 = vpop.f32.mrf.mxu1 }
 0x290   :  { %v1542_v6 = vadd.f32 %v4831_v20, %v5804_v43  ;;  %4968 = vmatprep.mubr.bf16.mxu0 %v1873_v17  ;;  %v1789_v39 = vmax.f32 %v1531_v54, 0.0 }
 0x291   :  { %v1533_v59 = vpop.f32.mrf.mxu1  ;;  %4969 = vmatmul.mubr.bf16.gmra.mxu0 %v1874_v5 }
 0x292   :  { %v1534_v45 = vadd.f32 %v5804_v43, %v1533_v59  ;;  %v1792_v22 = vmax.f32 %v1542_v6, 0.0 }
 0x293   :  { %v4834_v14 = vpop.f32.mrf.mxu1 }
 0x294   :  { %v1790_v27 = vmax.f32 %v1534_v45, 0.0  ;;  %v1876_v41 = vpack.c.bf16 %v1792_v22, %v1791_v47  ;;  %v1555_v56 = vadd.f32 %v4834_v14, %v5804_v43 }
 0x295   :  { %v1546_v55 = vpop.f32.mrf.mxu1 }
 0x296   :  { %v1875_v48 = vpack.c.bf16 %v1790_v27, %v1789_v39  ;;  %v1547_v10 = vadd.f32 %v5804_v43, %v1546_v55  ;;  %v1795_v49 = vmax.f32 %v1555_v56, 0.0 }
 0x297   :  { %v4835_v16 = vpop.f32.mrf.mxu1 }
 0x298   :  { %v1558_v42 = vadd.f32 %v4835_v16, %v5804_v43  ;;  %4972 = vmatprep.mubr.bf16.mxu0 %v1875_v48  ;;  %v1793_v24 = vmax.f32 %v1547_v10, 0.0 }
 0x299   :  { %v1549_v51 = vpop.f32.mrf.mxu1  ;;  %4973 = vmatmul.mubr.bf16.gmra.mxu0 %v1876_v41 }
 0x29a   :  { %v1550_v19 = vadd.f32 %v5804_v43, %v1549_v51  ;;  %v1796_v15 = vmax.f32 %v1558_v42, 0.0 }
 0x29b   :  { %v4838_v58 = vpop.f32.mrf.mxu1 }
 0x29c   :  { %v1794_v2 = vmax.f32 %v1550_v19, 0.0  ;;  %v1878_v23 = vpack.c.bf16 %v1796_v15, %v1795_v49  ;;  %v1571_v31 = vadd.f32 %v4838_v58, %v5804_v43 }
 0x29d   :  { %v1562_v13 = vpop.f32.mrf.mxu1 }
 0x29e   :  { %v1877_v18 = vpack.c.bf16 %v1794_v2, %v1793_v24  ;;  %v1563_v37 = vadd.f32 %v5804_v43, %v1562_v13  ;;  %v1799_v7 = vmax.f32 %v1571_v31, 0.0 }
 0x29f   :  { %v4839_v63 = vpop.f32.mrf.mxu1 }
 0x2a0   :  { %v1574_v3 = vadd.f32 %v4839_v63, %v5804_v43  ;;  %4976 = vmatprep.mubr.bf16.mxu0 %v1877_v18  ;;  %v1797_v12 = vmax.f32 %v1563_v37, 0.0 }
 0x2a1   :  { %v1565_v38 = vpop.f32.mrf.mxu1  ;;  %4977 = vmatmul.mubr.bf16.gmra.mxu0 %v1878_v23 }
 0x2a2   :  { %v1566_v35 = vadd.f32 %v5804_v43, %v1565_v38  ;;  %v1800_v62 = vmax.f32 %v1574_v3, 0.0 }
 0x2a3   :  { %v4842_v8 = vpop.f32.mrf.mxu1 }
 0x2a4   :  { %v1798_v52 = vmax.f32 %v1566_v35, 0.0  ;;  %v1880_v9 = vpack.c.bf16 %v1800_v62, %v1799_v7  ;;  %v1587_v11 = vadd.f32 %v4842_v8, %v5804_v43 }
 0x2a5   :  { %v1578_v40 = vpop.f32.mrf.mxu1 }
 0x2a6   :  { %v1879_v33 = vpack.c.bf16 %v1798_v52, %v1797_v12  ;;  %v1579_v4 = vadd.f32 %v5804_v43, %v1578_v40  ;;  %v1803_v46 = vmax.f32 %v1587_v11, 0.0  ;;  %v5997_v52 = vld [vmem:[%s7888_s4] ss:$0 sm:$0xff] }
 0x2a7   :  { %v4843_v29 = vpop.f32.mrf.mxu1 }
 0x2a8   :  { %v1590_v44 = vadd.f32 %v4843_v29, %v5804_v43  ;;  %4980 = vmatprep.mubr.bf16.mxu0 %v1879_v33  ;;  %v1801_v50 = vmax.f32 %v1579_v4, 0.0 }
 0x2a9   :  { %v1581_v60 = vpop.f32.mrf.mxu1  ;;  %4981 = vmatmul.mubr.bf16.gmra.mxu0 %v1880_v9 }
 0x2aa   :  { %v1582_v1 = vadd.f32 %v5804_v43, %v1581_v60  ;;  %v1804_v21 = vmax.f32 %v1590_v44, 0.0 }
 0x2ab   :  { %v4846_v34 = vpop.f32.mrf.mxu1 }
 0x2ac   :  { %v1802_v25 = vmax.f32 %v1582_v1, 0.0  ;;  %v1882_v32 = vpack.c.bf16 %v1804_v21, %v1803_v46  ;;  %v1603_v0 = vadd.f32 %v4846_v34, %v5804_v43 }
 0x2ad   :  { %v1594_v61 = vpop.f32.mrf.mxu1 }
 0x2ae   :  { %v1881_v30 = vpack.c.bf16 %v1802_v25, %v1801_v50  ;;  %v1595_v36 = vadd.f32 %v5804_v43, %v1594_v61  ;;  %v1807_v39 = vmax.f32 %v1603_v0, 0.0 }
 0x2af   :  { %v4847_v53 = vpop.f32.mrf.mxu1 }
 0x2b0   :  { %v1606_v28 = vadd.f32 %v4847_v53, %v5804_v43  ;;  %4984 = vmatprep.mubr.bf16.mxu0 %v1881_v30  ;;  %v1805_v45 = vmax.f32 %v1595_v36, 0.0 }
 0x2b1   :  { %v1597_v17 = vpop.f32.mrf.mxu1  ;;  %v4890_v5 = vpop.f32.mrf.mxu0  ;;  %4985 = vmatmul.mubr.bf16.gmra.mxu0 %v1882_v32 }
 0x2b2   :  { %v1598_v20 = vadd.f32 %v5804_v43, %v1597_v17  ;;  %v5965_v54 = vadd.f32 %v4890_v5, %v5958_v57  ;;  %v1808_v6 = vmax.f32 %v1606_v28, 0.0 }
 0x2b3   :  { %v4850_v26 = vpop.f32.mrf.mxu1  ;;  %v2002_v59 = vpop.f32.mrf.mxu0 }
 0x2b4   :  { %v1806_v22 = vmax.f32 %v1598_v20, 0.0  ;;  %v5968_v14 = vadd.f32 %v5958_v57, %v2002_v59  ;;  %2519 = vadd.xlane.f32.xlu1 %v5965_v54  ;;  %v1884_v41 = vpack.c.bf16 %v1808_v6, %v1807_v39  ;;  %v1619_v19 = vadd.f32 %v4850_v26, %v5804_v43 }
 0x2b5   :  { %v1610_v27 = vpop.f32.mrf.mxu1  ;;  %v4891_v47 = vpop.f32.mrf.mxu0 }
 0x2b6   :  { %v1883_v55 = vpack.c.bf16 %v1806_v22, %v1805_v45  ;;  %v5972_v48 = vadd.f32 %v4891_v47, %v5958_v57  ;;  %2515 = vadd.xlane.f32.xlu0 %v5968_v14  ;;  %v1611_v42 = vadd.f32 %v5804_v43, %v1610_v27  ;;  %v1811_v37 = vmax.f32 %v1619_v19, 0.0 }
 0x2b7   :  { %v4851_v16 = vpop.f32.mrf.mxu1  ;;  %v2005_v10 = vpop.f32.mrf.mxu0 }
 0x2b8   :  { %v1622_v56 = vadd.f32 %v4851_v16, %v5804_v43  ;;  %4988 = vmatprep.mubr.bf16.mxu0 %v1883_v55  ;;  %2521 = vadd.xlane.f32.xlu1 %v5972_v48  ;;  %v5979_v51 = vadd.f32 %v5958_v57, %v2005_v10  ;;  %v1809_v18 = vmax.f32 %v1611_v42, 0.0 }
 0x2b9   :  { %v1613_v15 = vpop.f32.mrf.mxu1  ;;  %v4894_v58 = vpop.f32.mrf.mxu0  ;;  %4989 = vmatmul.mubr.bf16.gmra.mxu0 %v1884_v41 }
 0x2ba   :  { %v1614_v24 = vadd.f32 %v5804_v43, %v1613_v15  ;;  %2517 = vadd.xlane.f32.xlu0 %v5979_v51  ;;  %v1812_v2 = vmax.f32 %v1622_v56, 0.0  ;;  %v5985_v63 = vadd.f32 %v4894_v58, %v5958_v57 }
 0x2bb   :  { %v4854_v49 = vpop.f32.mrf.mxu1  ;;  %v2018_v13 = vpop.f32.mrf.mxu0 }
 0x2bc   :  { %v1810_v23 = vmax.f32 %v1614_v24, 0.0  ;;  %v1886_v43 = vpack.c.bf16 %v1812_v2, %v1811_v37  ;;  %v5992_v12 = vadd.f32 %v5958_v57, %v2018_v13  ;;  %v1635_v33 = vadd.f32 %v5997_v52, %v4854_v49 }
 0x2bd   :  { %v1626_v3 = vpop.f32.mrf.mxu1  ;;  %v4895_v31 = vpop.f32.mrf.mxu0 }
 0x2be   :  { %v1885_v38 = vpack.c.bf16 %v1810_v23, %v1809_v18  ;;  %v5988_v35 = vadd.f32 %v4895_v31, %v5958_v57  ;;  %2527 = vadd.xlane.f32.xlu0 %v5985_v63  ;;  %v1627_v7 = vadd.f32 %v5997_v52, %v1626_v3  ;;  %v1815_v25 = vmax.f32 %v1635_v33, 0.0 }
 0x2bf   :  { %v4855_v62 = vpop.f32.mrf.mxu1  ;;  %v2021_v8 = vpop.f32.mrf.mxu0 }
 0x2c0   :  { %v1638_v40 = vadd.f32 %v5997_v52, %v4855_v62  ;;  %4992 = vmatprep.mubr.bf16.mxu0 %v1885_v38  ;;  %2529 = vadd.xlane.f32.xlu1 %v5988_v35  ;;  %v6006_v44 = vadd.f32 %v5958_v57, %v2021_v8  ;;  %v1813_v21 = vmax.f32 %v1627_v7, 0.0 }
 0x2c1   :  { %v1629_v9 = vpop.f32.mrf.mxu1  ;;  %v4898_v29 = vpop.f32.mrf.mxu0  ;;  %4993 = vmatmul.mubr.bf16.gmra.mxu0 %v1886_v43 }
 0x2c2   :  { %v1630_v4 = vadd.f32 %v5997_v52, %v1629_v9  ;;  %2523 = vadd.xlane.f32.xlu0 %v5992_v12  ;;  %v1816_v11 = vmax.f32 %v1638_v40, 0.0  ;;  %v6009_v50 = vadd.f32 %v4898_v29, %v5958_v57 }
 0x2c3   :  { %v4858_v60 = vpop.f32.mrf.mxu1  ;;  %v2034_v1 = vpop.f32.mrf.mxu0 }
 0x2c4   :  { %v1814_v34 = vmax.f32 %v1630_v4, 0.0  ;;  %2525 = vadd.xlane.f32.xlu1 %v6006_v44  ;;  %v1888_v53 = vpack.c.bf16 %v1816_v11, %v1815_v25  ;;  %v6017_v0 = vadd.f32 %v5958_v57, %v2034_v1  ;;  %v1651_v20 = vadd.f32 %v5997_v52, %v4858_v60 }
 0x2c5   :  { %v1642_v46 = vpop.f32.mrf.mxu1  ;;  %v4899_v61 = vpop.f32.mrf.mxu0 }
 0x2c6   :  { %v1887_v30 = vpack.c.bf16 %v1814_v34, %v1813_v21  ;;  %v6013_v32 = vadd.f32 %v4899_v61, %v5958_v57  ;;  %2535 = vadd.xlane.f32.xlu0 %v6009_v50  ;;  %v1643_v17 = vadd.f32 %v5997_v52, %v1642_v46  ;;  %v1819_v16 = vmax.f32 %v1651_v20, 0.0 }
 0x2c7   :  { %v4859_v36 = vpop.f32.mrf.mxu1  ;;  %v2037_v28 = vpop.f32.mrf.mxu0 }
 0x2c8   :  { %v1654_v5 = vadd.f32 %v5997_v52, %v4859_v36  ;;  %4996 = vmatprep.mubr.bf16.mxu0 %v1887_v30  ;;  %2537 = vadd.xlane.f32.xlu1 %v6013_v32  ;;  %v6026_v45 = vadd.f32 %v5958_v57, %v2037_v28  ;;  %v1817_v47 = vmax.f32 %v1643_v17, 0.0 }
 0x2c9   :  { %v1645_v6 = vpop.f32.mrf.mxu1  ;;  %v4902_v26 = vpop.f32.mrf.mxu0  ;;  %4997 = vmatmul.mubr.bf16.gmra.mxu0 %v1888_v53 }
 0x2ca   :  { %v1646_v59 = vadd.f32 %v5997_v52, %v1645_v6  ;;  %2531 = vadd.xlane.f32.xlu0 %v6017_v0  ;;  %v1820_v22 = vmax.f32 %v1654_v5, 0.0  ;;  %v6029_v41 = vadd.f32 %v4902_v26, %v5958_v57 }
 0x2cb   :  { %v4862_v39 = vpop.f32.mrf.mxu1  ;;  %v2050_v27 = vpop.f32.mrf.mxu0 }
 0x2cc   :  { %v1818_v55 = vmax.f32 %v1646_v59, 0.0  ;;  %2533 = vadd.xlane.f32.xlu1 %v6026_v45  ;;  %v1890_v15 = vpack.c.bf16 %v1820_v22, %v1819_v16  ;;  %v6037_v2 = vadd.f32 %v5958_v57, %v2050_v27  ;;  %v1667_v18 = vadd.f32 %v5997_v52, %v4862_v39 }
 0x2cd   :  { %v1658_v10 = vpop.f32.mrf.mxu1  ;;  %v4903_v42 = vpop.f32.mrf.mxu0 }
 0x2ce   :  { %v1889_v56 = vpack.c.bf16 %v1818_v55, %v1817_v47  ;;  %v6033_v19 = vadd.f32 %v4903_v42, %v5958_v57  ;;  %2543 = vadd.xlane.f32.xlu0 %v6029_v41  ;;  %v1659_v49 = vadd.f32 %v5997_v52, %v1658_v10  ;;  %v1823_v33 = vmax.f32 %v1667_v18, 0.0 }
 0x2cf   :  { %v4863_v58 = vpop.f32.mrf.mxu1  ;;  %v2053_v24 = vpop.f32.mrf.mxu0 }
 0x2d0   :  { %v1670_v13 = vadd.f32 %v5997_v52, %v4863_v58  ;;  %5000 = vmatprep.mubr.bf16.mxu0 %v1889_v56  ;;  %2545 = vadd.xlane.f32.xlu1 %v6033_v19  ;;  %v6046_v31 = vadd.f32 %v5958_v57, %v2053_v24  ;;  %v1821_v8 = vmax.f32 %v1659_v49, 0.0 }
 0x2d1   :  { %v1661_v23 = vpop.f32.mrf.mxu1  ;;  %v4906_v37 = vpop.f32.mrf.mxu0  ;;  %5001 = vmatmul.mubr.bf16.gmra.mxu0 %v1890_v15 }
 0x2d2   :  { %v1662_v3 = vadd.f32 %v5997_v52, %v1661_v23  ;;  %2539 = vadd.xlane.f32.xlu0 %v6037_v2  ;;  %v1824_v38 = vmax.f32 %v1670_v13, 0.0  ;;  %v6049_v40 = vadd.f32 %v4906_v37, %v5958_v57 }
 0x2d3   :  { %v4866_v43 = vpop.f32.mrf.mxu1  ;;  %v2066_v62 = vpop.f32.mrf.mxu0 }
 0x2d4   :  { %v1822_v7 = vmax.f32 %v1662_v3, 0.0  ;;  %2541 = vadd.xlane.f32.xlu1 %v6046_v31  ;;  %v1892_v60 = vpack.c.bf16 %v1824_v38, %v1823_v33  ;;  %v6057_v34 = vadd.f32 %v5958_v57, %v2066_v62  ;;  %v1683_v61 = vadd.f32 %v5997_v52, %v4866_v43 }
 0x2d5   :  { %v1674_v9 = vpop.f32.mrf.mxu1  ;;  %v4907_v29 = vpop.f32.mrf.mxu0 }
 0x2d6   :  { %v1891_v4 = vpack.c.bf16 %v1822_v7, %v1821_v8  ;;  %v6053_v11 = vadd.f32 %v4907_v29, %v5958_v57  ;;  %2551 = vadd.xlane.f32.xlu0 %v6049_v40  ;;  %v1675_v25 = vadd.f32 %v5997_v52, %v1674_v9  ;;  %v1827_v22 = vmax.f32 %v1683_v61, 0.0 }
 0x2d7   :  { %v4867_v1 = vpop.f32.mrf.mxu1  ;;  %v2069_v21 = vpop.f32.mrf.mxu0 }
 0x2d8   :  { %v1686_v46 = vadd.f32 %v5997_v52, %v4867_v1  ;;  %5004 = vmatprep.mubr.bf16.mxu0 %v1891_v4  ;;  %2553 = vadd.xlane.f32.xlu1 %v6053_v11  ;;  %v6064_v36 = vadd.f32 %v5958_v57, %v2069_v21  ;;  %v1825_v6 = vmax.f32 %v1675_v25, 0.0 }
 0x2d9   :  { %v1677_v30 = vpop.f32.mrf.mxu1  ;;  %v4910_v53 = vpop.f32.mrf.mxu0  ;;  %5005 = vmatmul.mubr.bf16.gmra.mxu0 %v1892_v60 }
 0x2da   :  { %v1678_v28 = vadd.f32 %v5997_v52, %v1677_v30  ;;  %2547 = vadd.xlane.f32.xlu0 %v6057_v34  ;;  %v1828_v17 = vmax.f32 %v1686_v46, 0.0  ;;  %v6069_v59 = vadd.f32 %v4910_v53, %v5958_v57 }
 0x2db   :  { %v4870_v5 = vpop.f32.mrf.mxu1  ;;  %v2082_v20 = vpop.f32.mrf.mxu0 }
 0x2dc   :  { %v1826_v26 = vmax.f32 %v1678_v28, 0.0  ;;  %2549 = vadd.xlane.f32.xlu1 %v6064_v36  ;;  %v1894_v16 = vpack.c.bf16 %v1828_v17, %v1827_v22  ;;  %v6077_v56 = vadd.f32 %v5958_v57, %v2082_v20  ;;  %v1699_v24 = vadd.f32 %v5997_v52, %v4870_v5 }
 0x2dd   :  { %v1690_v39 = vpop.f32.mrf.mxu1  ;;  %v4911_v27 = vpop.f32.mrf.mxu0 }
 0x2de   :  { %v1893_v47 = vpack.c.bf16 %v1826_v26, %v1825_v6  ;;  %v6073_v55 = vadd.f32 %v4911_v27, %v5958_v57  ;;  %2559 = vadd.xlane.f32.xlu0 %v6069_v59  ;;  %v1691_v15 = vadd.f32 %v5997_v52, %v1690_v39  ;;  %v1831_v8 = vmax.f32 %v1699_v24, 0.0 }
 0x2df   :  { %v4871_v10 = vpop.f32.mrf.mxu1  ;;  %v2085_v42 = vpop.f32.mrf.mxu0 }
 0x2e0   :  { %v1702_v58 = vadd.f32 %v5997_v52, %v4871_v10  ;;  %5008 = vmatprep.mubr.bf16.mxu0 %v1893_v47  ;;  %2561 = vadd.xlane.f32.xlu1 %v6073_v55  ;;  %v6084_v18 = vadd.f32 %v5958_v57, %v2085_v42  ;;  %v1829_v38 = vmax.f32 %v1691_v15, 0.0 }
 0x2e1   :  { %v1693_v49 = vpop.f32.mrf.mxu1  ;;  %v4914_v13 = vpop.f32.mrf.mxu0  ;;  %5009 = vmatmul.mubr.bf16.gmra.mxu0 %v1894_v16 }
 0x2e2   :  { %v1694_v23 = vadd.f32 %v5997_v52, %v1693_v49  ;;  %2555 = vadd.xlane.f32.xlu0 %v6077_v56  ;;  %v1832_v37 = vmax.f32 %v1702_v58, 0.0  ;;  %v6089_v62 = vadd.f32 %v4914_v13, %v5958_v57 }
 0x2e3   :  { %v2098_v3 = vpop.f32.mrf.mxu0 }
 0x2e4   :  { %v1830_v43 = vmax.f32 %v1694_v23, 0.0  ;;  %2557 = vadd.xlane.f32.xlu1 %v6084_v18  ;;  %v1896_v52 = vpack.c.bf16 %v1832_v37, %v1831_v8  ;;  %v6097_v4 = vadd.f32 %v5958_v57, %v2098_v3 }
 0x2e5   :  { %v4915_v7 = vpop.f32.mrf.mxu0 }
 0x2e6   :  { %v1895_v33 = vpack.c.bf16 %v1830_v43, %v1829_v38  ;;  %v6093_v9 = vadd.f32 %v4915_v7, %v5958_v57  ;;  %2567 = vadd.xlane.f32.xlu0 %v6089_v62 }
 0x2e7   :  { %v2101_v29 = vpop.f32.mrf.mxu0 }
 0x2e8   :  { %5012 = vmatprep.mubr.bf16.mxu0 %v1895_v33  ;;  %2569 = vadd.xlane.f32.xlu1 %v6093_v9  ;;  %v6101_v1 = vadd.f32 %v5958_v57, %v2101_v29 }
 0x2e9   :  { %v4918_v60 = vpop.f32.mrf.mxu0  ;;  %5013 = vmatmul.mubr.bf16.gmra.mxu0 %v1896_v52 }
 0x2ea   :  { %2563 = vadd.xlane.f32.xlu0 %v6097_v4  ;;  %v6105_v25 = vadd.f32 %v4918_v60, %v5958_v57 }
 0x2eb   :  { %v2114_v21 = vpop.f32.mrf.mxu0 }
 0x2ec   :  { %2565 = vadd.xlane.f32.xlu1 %v6101_v1  ;;  %v6113_v53 = vadd.f32 %v5958_v57, %v2114_v21 }
 0x2ed   :  { %v4919_v46 = vpop.f32.mrf.mxu0 }
 0x2ee   :  { %v6109_v61 = vadd.f32 %v4919_v46, %v5958_v57  ;;  %2575 = vadd.xlane.f32.xlu0 %v6105_v25 }
 0x2ef   :  { %v2117_v30 = vpop.f32.mrf.mxu0 }
 0x2f0   :  { %2577 = vadd.xlane.f32.xlu1 %v6109_v61  ;;  %v6117_v17 = vadd.f32 %v5958_v57, %v2117_v30 }
 0x2f1   :  { %v4922_v28 = vpop.f32.mrf.mxu0 }
 0x2f2   :  { %2571 = vadd.xlane.f32.xlu0 %v6113_v53  ;;  %v6121_v20 = vadd.f32 %v4922_v28, %v5958_v57 }
 0x2f3   :  { %v2130_v5 = vpop.f32.mrf.mxu0 }
 0x2f4   :  { %2573 = vadd.xlane.f32.xlu1 %v6117_v17  ;;  %v6129_v39 = vadd.f32 %v5958_v57, %v2130_v5 }
 0x2f5   :  { %v4923_v6 = vpop.f32.mrf.mxu0 }
 0x2f6   :  { %v6125_v26 = vadd.f32 %v4923_v6, %v5958_v57  ;;  %2583 = vadd.xlane.f32.xlu0 %v6121_v20 }
 0x2f7   :  { %v2133_v22 = vpop.f32.mrf.mxu0 }
 0x2f8   :  { %2585 = vadd.xlane.f32.xlu1 %v6125_v26  ;;  %v6133_v47 = vadd.f32 %v5958_v57, %v2133_v22 }
 0x2f9   :  { %v4926_v27 = vpop.f32.mrf.mxu0 }
 0x2fa   :  { %2579 = vadd.xlane.f32.xlu0 %v6129_v39  ;;  %v6137_v10 = vadd.f32 %v4926_v27, %v5958_v57 }
 0x2fb   :  { %v2146_v16 = vpop.f32.mrf.mxu0 }
 0x2fc   :  { %2581 = vadd.xlane.f32.xlu1 %v6133_v47  ;;  %v6145_v24 = vadd.f32 %v5958_v57, %v2146_v16 }
 0x2fd   :  { %v4927_v42 = vpop.f32.mrf.mxu0 }
 0x2fe   :  { %v6141_v15 = vadd.f32 %v4927_v42, %v5958_v57  ;;  %2591 = vadd.xlane.f32.xlu0 %v6137_v10 }
 0x2ff   :  { %v2149_v58 = vpop.f32.mrf.mxu0 }
 0x300   :  { %2593 = vadd.xlane.f32.xlu1 %v6141_v15  ;;  %v6149_v13 = vadd.f32 %v5958_v57, %v2149_v58 }
 0x301   :  { %v4930_v49 = vpop.f32.mrf.mxu0 }
 0x302   :  { %2587 = vadd.xlane.f32.xlu0 %v6145_v24  ;;  %v6153_v37 = vadd.f32 %v4930_v49, %v5958_v57 }
 0x303   :  { %v2162_v23 = vpop.f32.mrf.mxu0 }
 0x304   :  { %2589 = vadd.xlane.f32.xlu1 %v6149_v13  ;;  %v6161_v8 = vadd.f32 %v5958_v57, %v2162_v23 }
 0x305   :  { %v4931_v3 = vpop.f32.mrf.mxu0 }
 0x306   :  { %v6157_v38 = vadd.f32 %v4931_v3, %v5958_v57  ;;  %2599 = vadd.xlane.f32.xlu0 %v6153_v37 }
 0x307   :  { %v2165_v43 = vpop.f32.mrf.mxu0 }
 0x308   :  { %2601 = vadd.xlane.f32.xlu1 %v6157_v38  ;;  %v6165_v33 = vadd.f32 %v5958_v57, %v2165_v43 }
 0x309   :  { %v4934_v7 = vpop.f32.mrf.mxu0 }
 0x30a   :  { %2595 = vadd.xlane.f32.xlu0 %v6161_v8  ;;  %v6169_v29 = vadd.f32 %v4934_v7, %v5958_v57 }
 0x30b   :  { %v2178_v52 = vpop.f32.mrf.mxu0 }
 0x30c   :  { %8049 = vst [vmem:[#allocation15_spill] sm:$0xff] %v6169_v29  ;;  %2597 = vadd.xlane.f32.xlu1 %v6165_v33  ;;  %v6177_v30 = vadd.f32 %v5958_v57, %v2178_v52 }
 0x30d   :  { %v4935_v60 = vpop.f32.mrf.mxu0 }
 0x30e   :  { %v6173_v21 = vadd.f32 %v4935_v60, %v5958_v57  ;;  %2607 = vadd.xlane.f32.xlu0 %v6169_v29  ;;  %8051 = vst [vmem:[#allocation17_spill] sm:$0xff] %v6177_v30 }
 0x30f   :  { %v2181_v46 = vpop.f32.mrf.mxu0 }
 0x310   :  { %8050 = vst [vmem:[#allocation16_spill] sm:$0xff] %v6173_v21  ;;  %2609 = vadd.xlane.f32.xlu1 %v6173_v21  ;;  %v6181_v5 = vadd.f32 %v5958_v57, %v2181_v46 }
 0x311   :  { %v4938_v28 = vpop.f32.mrf.mxu0 }
 0x312   :  { %8052 = vst [vmem:[#allocation18_spill] sm:$0xff] %v6181_v5  ;;  %2603 = vadd.xlane.f32.xlu0 %v6177_v30  ;;  %v6185_v22 = vadd.f32 %v4938_v28, %v5958_v57 }
 0x313   :  { %v2194_v6 = vpop.f32.mrf.mxu0 }
 0x314   :  { %8053 = vst [vmem:[#allocation19_spill] sm:$0xff] %v6185_v22  ;;  %2605 = vadd.xlane.f32.xlu1 %v6181_v5  ;;  %v6193_v58 = vadd.f32 %v5958_v57, %v2194_v6 }
 0x315   :  { %v4939_v27 = vpop.f32.mrf.mxu0 }
 0x316   :  { %v6189_v16 = vadd.f32 %v4939_v27, %v5958_v57  ;;  %2615 = vadd.xlane.f32.xlu0 %v6185_v22  ;;  %8055 = vst [vmem:[#allocation21_spill] sm:$0xff] %v6193_v58 }
 0x317   :  { %v2197_v42 = vpop.f32.mrf.mxu0 }
 0x318   :  { %8054 = vst [vmem:[#allocation20_spill] sm:$0xff] %v6189_v16  ;;  %2617 = vadd.xlane.f32.xlu1 %v6189_v16  ;;  %v6197_v23 = vadd.f32 %v5958_v57, %v2197_v42 }
 0x319   :  { %v4942_v49 = vpop.f32.mrf.mxu0 }
 0x31a   :  { %8056 = vst [vmem:[#allocation22_spill] sm:$0xff] %v6197_v23  ;;  %2611 = vadd.xlane.f32.xlu0 %v6193_v58  ;;  %v6201_v43 = vadd.f32 %v4942_v49, %v5958_v57 }
 0x31b   :  { %v2210_v3 = vpop.f32.mrf.mxu0 }
 0x31c   :  { %8057 = vst [vmem:[#allocation23_spill] sm:$0xff] %v6201_v43  ;;  %2613 = vadd.xlane.f32.xlu1 %v6197_v23  ;;  %v6209_v46 = vadd.f32 %v5958_v57, %v2210_v3 }
 0x31d   :  { %v4943_v7 = vpop.f32.mrf.mxu0 }
 0x31e   :  { %v6205_v52 = vadd.f32 %v4943_v7, %v5958_v57  ;;  %2623 = vadd.xlane.f32.xlu0 %v6201_v43  ;;  %8059 = vst [vmem:[#allocation25_spill] sm:$0xff] %v6209_v46 }
 0x31f   :  { %v2213_v60 = vpop.f32.mrf.mxu0 }
 0x320   :  { %8058 = vst [vmem:[#allocation24_spill] sm:$0xff] %v6205_v52  ;;  %2625 = vadd.xlane.f32.xlu1 %v6205_v52  ;;  %v6213_v6 = vadd.f32 %v5958_v57, %v2213_v60 }
 0x321   :  { %v4946_v28 = vpop.f32.mrf.mxu0 }
 0x322   :  { %8060 = vst [vmem:[#allocation26_spill] sm:$0xff] %v6213_v6  ;;  %2619 = vadd.xlane.f32.xlu0 %v6209_v46  ;;  %v6217_v42 = vadd.f32 %v4946_v28, %v5958_v57 }
 0x323   :  { %v2226_v27 = vpop.f32.mrf.mxu0 }
 0x324   :  { %8061 = vst [vmem:[#allocation27_spill] sm:$0xff] %v6217_v42  ;;  %2621 = vadd.xlane.f32.xlu1 %v6213_v6  ;;  %v6225_v52 = vadd.f32 %v5958_v57, %v2226_v27 }
 0x325   :  { %v4947_v49 = vpop.f32.mrf.mxu0 }
 0x326   :  { %v6221_v7 = vadd.f32 %v4947_v49, %v5958_v57  ;;  %2631 = vadd.xlane.f32.xlu0 %v6217_v42  ;;  %8063 = vst [vmem:[#allocation29_spill] sm:$0xff] %v6225_v52 }
 0x327   :  { %v2229_v3 = vpop.f32.mrf.mxu0 }
 0x328   :  { %8062 = vst [vmem:[#allocation28_spill] sm:$0xff] %v6221_v7  ;;  %2633 = vadd.xlane.f32.xlu1 %v6221_v7  ;;  %v6229_v46 = vadd.f32 %v5958_v57, %v2229_v3 }
 0x329   :  { %v4950_v60 = vpop.f32.mrf.mxu0 }
 0x32a   :  { %8064 = vst [vmem:[#allocation30_spill] sm:$0xff] %v6229_v46  ;;  %2627 = vadd.xlane.f32.xlu0 %v6225_v52  ;;  %v6233_v6 = vadd.f32 %v4950_v60, %v5958_v57 }
 0x32b   :  { %v2242_v28 = vpop.f32.mrf.mxu0 }
 0x32c   :  { %8065 = vst [vmem:[#allocation31_spill] sm:$0xff] %v6233_v6  ;;  %2629 = vadd.xlane.f32.xlu1 %v6229_v46  ;;  %v6241_v7 = vadd.f32 %v5958_v57, %v2242_v28 }
 0x32d   :  { %v4951_v49 = vpop.f32.mrf.mxu0 }
 0x32e   :  { %v6237_v42 = vadd.f32 %v4951_v49, %v5958_v57  ;;  %2639 = vadd.xlane.f32.xlu0 %v6233_v6  ;;  %8067 = vst [vmem:[#allocation33_spill] sm:$0xff] %v6241_v7 }
 0x32f   :  { %v2245_v27 = vpop.f32.mrf.mxu0 }
 0x330   :  { %8066 = vst [vmem:[#allocation32_spill] sm:$0xff] %v6237_v42  ;;  %2641 = vadd.xlane.f32.xlu1 %v6237_v42  ;;  %v6245_v52 = vadd.f32 %v5958_v57, %v2245_v27 }
 0x331   :  { %v4954_v3 = vpop.f32.mrf.mxu0 }
 0x332   :  { %8068 = vst [vmem:[#allocation34_spill] sm:$0xff] %v6245_v52  ;;  %2635 = vadd.xlane.f32.xlu0 %v6241_v7  ;;  %v6249_v46 = vadd.f32 %v4954_v3, %v5958_v57 }
 0x333   :  { %v2258_v60 = vpop.f32.mrf.mxu0 }
 0x334   :  { %8069 = vst [vmem:[#allocation35_spill] sm:$0xff] %v6249_v46  ;;  %2637 = vadd.xlane.f32.xlu1 %v6245_v52  ;;  %v6257_v42 = vadd.f32 %v5958_v57, %v2258_v60 }
 0x335   :  { %v4955_v49 = vpop.f32.mrf.mxu0 }
 0x336   :  { %v6253_v6 = vadd.f32 %v4955_v49, %v5958_v57  ;;  %2647 = vadd.xlane.f32.xlu0 %v6249_v46  ;;  %8071 = vst [vmem:[#allocation37_spill] sm:$0xff] %v6257_v42 }
 0x337   :  { %v2261_v28 = vpop.f32.mrf.mxu0 }
 0x338   :  { %8070 = vst [vmem:[#allocation36_spill] sm:$0xff] %v6253_v6  ;;  %2649 = vadd.xlane.f32.xlu1 %v6253_v6  ;;  %v6261_v7 = vadd.f32 %v5958_v57, %v2261_v28 }
 0x339   :  { %v4958_v27 = vpop.f32.mrf.mxu0 }
 0x33a   :  { %8072 = vst [vmem:[#allocation38_spill] sm:$0xff] %v6261_v7  ;;  %2643 = vadd.xlane.f32.xlu0 %v6257_v42  ;;  %v6265_v52 = vadd.f32 %v4958_v27, %v5958_v57 }
 0x33b   :  { %v2274_v3 = vpop.f32.mrf.mxu0 }
 0x33c   :  { %8073 = vst [vmem:[#allocation39_spill] sm:$0xff] %v6265_v52  ;;  %2645 = vadd.xlane.f32.xlu1 %v6261_v7  ;;  %v6273_v28 = vadd.f32 %v5958_v57, %v2274_v3 }
 0x33d   :  { %v2520_v49 = vpop.xlane.xlu1 %2519  ;;  %v4959_v46 = vpop.f32.mrf.mxu0 }
 0x33e   :  { %v6269_v43 = vadd.f32 %v4959_v46, %v5958_v57  ;;  %2655 = vadd.xlane.f32.xlu0 %v6265_v52  ;;  %8075 = vst [vmem:[#allocation41_spill] sm:$0xff] %v6273_v28  ;;  %v2774_v23 = vmul.f32 0.0078125, %v2520_v49 }
 0x33f   :  { %v2277_v60 = vpop.f32.mrf.mxu0  ;;  %v2516_v6 = vpop.xlane.xlu0 %2515 }
 0x340   :  { %8074 = vst [vmem:[#allocation40_spill] sm:$0xff] %v6269_v43  ;;  %2657 = vadd.xlane.f32.xlu1 %v6269_v43  ;;  %v6277_v58 = vadd.f32 %v5958_v57, %v2277_v60  ;;  %v6285_v3 = vsub.f32 %v5965_v54, %v2774_v23  ;;  %v2772_v22 = vmul.f32 0.0078125, %v2516_v6 }
 0x341   :  { %v2522_v42 = vpop.xlane.xlu1 %2521  ;;  %v4962_v27 = vpop.f32.mrf.mxu0 }
 0x342   :  { %8076 = vst [vmem:[#allocation42_spill] sm:$0xff] %v6277_v58  ;;  %v2775_v7 = vmul.f32 0.0078125, %v2522_v42  ;;  %2651 = vadd.xlane.f32.xlu0 %v6273_v28  ;;  %v6281_v52 = vadd.f32 %v4962_v27, %v5958_v57  ;;  %v3030_v27 = vmul.f32 %v6285_v3, %v6285_v3 }
 0x343   :  { %v2290_v46 = vpop.f32.mrf.mxu0  ;;  %v2518_v16 = vpop.xlane.xlu0 %2517 }
 0x344   :  { %8077 = vst [vmem:[#allocation43_spill] sm:$0xff] %v6281_v52  ;;  %2653 = vadd.xlane.f32.xlu1 %v6277_v58  ;;  %v6292_v42 = vsub.f32 %v5972_v48, %v2775_v7  ;;  %v2773_v54 = vmul.f32 0.0078125, %v2518_v16  ;;  %v6303_v48 = vsub.f32 %v5968_v14, %v2772_v22 }
 0x345   :  { %v4963_v49 = vpop.f32.mrf.mxu0 }
 0x346   :  { %v6288_v43 = vadd.f32 %v4963_v49, %v5958_v57  ;;  %2663 = vadd.xlane.f32.xlu0 %v6281_v52  ;;  %v3031_v23 = vmul.f32 %v6292_v42, %v6292_v42  ;;  %v6300_v52 = vadd.f32 %v5958_v57, %v2290_v46  ;;  %v6310_v16 = vsub.f32 %v5979_v51, %v2773_v54 }
 0x347   :  { %v2293_v60 = vpop.f32.mrf.mxu0  ;;  %v2528_v28 = vpop.xlane.xlu0 %2527  ;;  %v3028_v46 = vmul.f32 %v6303_v48, %v6303_v48 }
 0x348   :  { %8078 = vst [vmem:[#allocation44_spill] sm:$0xff] %v6288_v43  ;;  %2665 = vadd.xlane.f32.xlu1 %v6288_v43  ;;  %8079 = vst [vmem:[#allocation45_spill] sm:$0xff] %v6300_v52  ;;  %v6306_v7 = vadd.f32 %v5958_v57, %v2293_v60  ;;  %v2778_v30 = vmul.f32 0.0078125, %v2528_v28  ;;  %v3029_v22 = vmul.f32 %v6310_v16, %v6310_v16 }
 0x349   :  { %v2530_v58 = vpop.xlane.xlu1 %2529  ;;  %v4966_v49 = vpop.f32.mrf.mxu0  ;;  %8081 = vst [vmem:[#allocation47_spill] sm:$0xff] %v6310_v16 }
 0x34a   :  { %3160 = vadd.xlane.f32.xlu0 %v3030_v27  ;;  %8080 = vst [vmem:[#allocation46_spill] sm:$0xff] %v6306_v7  ;;  %v2779_v14 = vmul.f32 0.0078125, %v2530_v58  ;;  %v6321_v51 = vsub.f32 %v5985_v63, %v2778_v30 }
 0x34b   :  { %v2524_v5 = vpop.xlane.xlu0 %2523  ;;  %v2306_v27 = vpop.f32.mrf.mxu0 }
 0x34c   :  { %3162 = vadd.xlane.f32.xlu1 %v3031_v23  ;;  %v6328_v58 = vsub.f32 %v5988_v35, %v2779_v14  ;;  %v2776_v29 = vmul.f32 0.0078125, %v2524_v5  ;;  %v6338_v35 = vadd.f32 %v5958_v57, %v2306_v27 }
 0x34d   :  { %v2526_v6 = vpop.xlane.xlu1 %2525  ;;  %v4967_v60 = vpop.f32.mrf.mxu0 }
 0x34e   :  { %2659 = vadd.xlane.f32.xlu0 %v6300_v52  ;;  %v6318_v52 = vadd.f32 %v4966_v49, %v5958_v57  ;;  %v6324_v54 = vadd.f32 %v4967_v60, %v5958_v57  ;;  %8084 = vst [vmem:[#allocation50_spill] sm:$0xff] %v6328_v58  ;;  %v3034_v49 = vmul.f32 %v6321_v51, %v6321_v51  ;;  %v2777_v63 = vmul.f32 0.0078125, %v2526_v6 }
 0x34f   :  { %v2536_v43 = vpop.xlane.xlu0 %2535  ;;  %v3035_v30 = vmul.f32 %v6328_v58, %v6328_v58  ;;  %8085 = vst [vmem:[#allocation51_spill] sm:$0xff] %v6338_v35  ;;  %v6341_v5 = vsub.f32 %v5992_v12, %v2776_v29 }
 0x350   :  { %2661 = vadd.xlane.f32.xlu1 %v6306_v7  ;;  %8082 = vst [vmem:[#allocation48_spill] sm:$0xff] %v6318_v52  ;;  %8083 = vst [vmem:[#allocation49_spill] sm:$0xff] %v6324_v54  ;;  %v6350_v6 = vsub.f32 %v6006_v44, %v2777_v63  ;;  %v2782_v58 = vmul.f32 0.0078125, %v2536_v43 }
 0x351   :  { %v2538_v23 = vpop.xlane.xlu1 %2537  ;;  %8086 = vst [vmem:[#allocation52_spill] sm:$0xff] %v6341_v5  ;;  %v3032_v12 = vmul.f32 %v6341_v5, %v6341_v5 }
 0x352   :  { %3156 = vadd.xlane.f32.xlu0 %v3028_v46  ;;  %v2309_v46 = vpop.f32.mrf.mxu0  ;;  %8088 = vst [vmem:[#allocation54_spill] sm:$0xff] %v6350_v6  ;;  %v2783_v27 = vmul.f32 0.0078125, %v2538_v23  ;;  %v6367_v43 = vsub.f32 %v6009_v50, %v2782_v58 }
 0x353   :  { %v2532_v21 = vpop.xlane.xlu0 %2531 }
 0x354   :  { %3158 = vadd.xlane.f32.xlu1 %v3029_v22  ;;  %v4970_v60 = vpop.f32.mrf.mxu0  ;;  %8090 = vst [vmem:[#allocation56_spill] sm:$0xff] %v6367_v43  ;;  %v6376_v23 = vsub.f32 %v6013_v32, %v2783_v27  ;;  %v2780_v5 = vmul.f32 0.0078125, %v2532_v21  ;;  %v3038_v50 = vmul.f32 %v6367_v43, %v6367_v43 }
 0x355   :  { %v2534_v28 = vpop.xlane.xlu1 %2533  ;;  %v6364_v44 = vadd.f32 %v4970_v60, %v5958_v57 }
 0x356   :  { %2671 = vadd.xlane.f32.xlu0 %v6318_v52  ;;  %8092 = vst [vmem:[#allocation58_spill] sm:$0xff] %v6376_v23  ;;  %v2781_v60 = vmul.f32 0.0078125, %v2534_v28  ;;  %v6393_v21 = vsub.f32 %v6017_v0, %v2780_v5 }
 0x357   :  { %v2544_v7 = vpop.xlane.xlu0 %2543  ;;  %8089 = vst [vmem:[#allocation55_spill] sm:$0xff] %v6364_v44 }
 0x358   :  { %2673 = vadd.xlane.f32.xlu1 %v6324_v54  ;;  %v6346_v54 = vadd.f32 %v5958_v57, %v2309_v46  ;;  %v3033_v46 = vmul.f32 %v6350_v6, %v6350_v6  ;;  %v6402_v28 = vsub.f32 %v6026_v45, %v2781_v60  ;;  %v2786_v43 = vmul.f32 0.0078125, %v2544_v7 }
 0x359   :  { %v2546_v22 = vpop.xlane.xlu1 %2545  ;;  %v3036_v0 = vmul.f32 %v6393_v21, %v6393_v21 }
 0x35a   :  { %3168 = vadd.xlane.f32.xlu0 %v3034_v49  ;;  %8087 = vst [vmem:[#allocation53_spill] sm:$0xff] %v6346_v54  ;;  %v2322_v49 = vpop.f32.mrf.mxu0  ;;  %8095 = vst [vmem:[#allocation61_spill] sm:$0xff] %v6402_v28  ;;  %v6416_v45 = vsub.f32 %v6029_v41, %v2786_v43 }
 0x35b   :  { %v6335_v16 = vpop.xlane.xlu0 %2539  ;;  %v6390_v32 = vadd.f32 %v5958_v57, %v2322_v49  ;;  %v2787_v49 = vmul.f32 0.0078125, %v2546_v22 }
 0x35c   :  { %3170 = vadd.xlane.f32.xlu1 %v3035_v30  ;;  %v4971_v30 = vpop.f32.mrf.mxu0  ;;  %8096 = vst [vmem:[#allocation62_spill] sm:$0xff] %v6416_v45  ;;  %v2784_v41 = vmul.f32 0.0078125, %v6335_v16  ;;  %v3042_v43 = vmul.f32 %v6416_v45, %v6416_v45 }
 0x35d   :  { %v6343_v14 = vpop.xlane.xlu1 %2541  ;;  %8093 = vst [vmem:[#allocation59_spill] sm:$0xff] %v6390_v32 }
 0x35e   :  { %2667 = vadd.xlane.f32.xlu0 %v6338_v35  ;;  %v6447_v16 = vsub.f32 %v6037_v2, %v2784_v41 }
 0x35f   :  { %v6352_v52 = vpop.xlane.xlu0 %2551 }
 0x360   :  { %2669 = vadd.xlane.f32.xlu1 %v6346_v54  ;;  %v6372_v54 = vadd.f32 %v4971_v30, %v5958_v57  ;;  %8101 = vst [vmem:[#allocation67_spill] sm:$0xff] %v6447_v16  ;;  %v3040_v2 = vmul.f32 %v6447_v16, %v6447_v16 }
 0x361   :  { %v6357_v29 = vpop.xlane.xlu1 %2553 }
 0x362   :  { %3164 = vadd.xlane.f32.xlu0 %v3032_v12  ;;  %8091 = vst [vmem:[#allocation57_spill] sm:$0xff] %v6372_v54  ;;  %v2325_v12 = vpop.f32.mrf.mxu0 }
 0x363   :  { %v6361_v35 = vpop.xlane.xlu0 %2547 }
 0x364   :  { %3166 = vadd.xlane.f32.xlu1 %v3033_v46  ;;  %v3039_v46 = vmul.f32 %v6376_v23, %v6376_v23  ;;  %v4974_v30 = vpop.f32.mrf.mxu0 }
 0x365   :  { %v6369_v63 = vpop.xlane.xlu1 %2549  ;;  %v6419_v7 = vadd.f32 %v4974_v30, %v5958_v57 }
 0x366   :  { %2679 = vadd.xlane.f32.xlu0 %v6364_v44 }
 0x367   :  { %v6378_v6 = vpop.xlane.xlu0 %2559  ;;  %8097 = vst [vmem:[#allocation63_spill] sm:$0xff] %v6419_v7 }
 0x368   :  { %2681 = vadd.xlane.f32.xlu1 %v6372_v54  ;;  %v6398_v54 = vadd.f32 %v5958_v57, %v2325_v12  ;;  %v3037_v12 = vmul.f32 %v6402_v28, %v6402_v28 }
 0x369   :  { %v6383_v58 = vpop.xlane.xlu1 %2561 }
 0x36a   :  { %3176 = vadd.xlane.f32.xlu0 %v3038_v50  ;;  %8094 = vst [vmem:[#allocation60_spill] sm:$0xff] %v6398_v54  ;;  %v2338_v50 = vpop.f32.mrf.mxu0 }
 0x36b   :  { %v6387_v44 = vpop.xlane.xlu0 %2555 }
 0x36c   :  { %3178 = vadd.xlane.f32.xlu1 %v3039_v46  ;;  %v4975_v46 = vpop.f32.mrf.mxu0 }
 0x36d   :  { %v6395_v27 = vpop.xlane.xlu1 %2557  ;;  %v6427_v22 = vadd.f32 %v4975_v46, %v5958_v57 }
 0x36e   :  { %2675 = vadd.xlane.f32.xlu0 %v6390_v32 }
 0x36f   :  { %v6404_v23 = vpop.xlane.xlu0 %2567  ;;  %8099 = vst [vmem:[#allocation65_spill] sm:$0xff] %v6427_v22 }
 0x370   :  { %2677 = vadd.xlane.f32.xlu1 %v6398_v54  ;;  %v6424_v54 = vsub.f32 %v6033_v19, %v2787_v49  ;;  %v2785_v19 = vmul.f32 0.0078125, %v6343_v14 }
 0x371   :  { %v6409_v5 = vpop.xlane.xlu1 %2569 }
 0x372   :  { %3172 = vadd.xlane.f32.xlu0 %v3036_v0  ;;  %8098 = vst [vmem:[#allocation64_spill] sm:$0xff] %v6424_v54  ;;  %v2341_v0 = vpop.f32.mrf.mxu0  ;;  %v3043_v49 = vmul.f32 %v6424_v54, %v6424_v54  ;;  %v6452_v45 = vsub.f32 %v6046_v31, %v2785_v19  ;;  %v2791_v31 = vmul.f32 0.0078125, %v6357_v29 }
 0x373   :  { %v6413_v32 = vpop.xlane.xlu0 %2563  ;;  %v6455_v14 = vadd.f32 %v5958_v57, %v2341_v0 }
 0x374   :  { %3174 = vadd.xlane.f32.xlu1 %v3037_v12  ;;  %v4978_v12 = vpop.f32.mrf.mxu0  ;;  %8102 = vst [vmem:[#allocation68_spill] sm:$0xff] %v6452_v45  ;;  %v3041_v0 = vmul.f32 %v6452_v45, %v6452_v45  ;;  %v6480_v16 = vsub.f32 %v6053_v11, %v2791_v31  ;;  %v2789_v11 = vmul.f32 0.0078125, %v6369_v63 }
 0x375   :  { %v6421_v60 = vpop.xlane.xlu1 %2565  ;;  %8103 = vst [vmem:[#allocation69_spill] sm:$0xff] %v6455_v14 }
 0x376   :  { %2687 = vadd.xlane.f32.xlu0 %v6419_v7  ;;  %v6444_v7 = vadd.f32 %v5958_v57, %v2338_v50  ;;  %v2790_v50 = vmul.f32 0.0078125, %v6352_v52  ;;  %v6475_v52 = vadd.f32 %v4978_v12, %v5958_v57  ;;  %8106 = vst [vmem:[#allocation72_spill] sm:$0xff] %v6480_v16  ;;  %v3047_v31 = vmul.f32 %v6480_v16, %v6480_v16 }
 0x377   :  { %v6430_v28 = vpop.xlane.xlu0 %2575 }
 0x378   :  { %2689 = vadd.xlane.f32.xlu1 %v6427_v22  ;;  %8100 = vst [vmem:[#allocation66_spill] sm:$0xff] %v6444_v7  ;;  %8105 = vst [vmem:[#allocation71_spill] sm:$0xff] %v6475_v52 }
 0x379   :  { %v6436_v30 = vpop.xlane.xlu1 %2577 }
 0x37a   :  { %3184 = vadd.xlane.f32.xlu0 %v3042_v43  ;;  %v2354_v43 = vpop.f32.mrf.mxu0 }
 0x37b   :  { %v6441_v46 = vpop.xlane.xlu0 %2571 }
 0x37c   :  { %3186 = vadd.xlane.f32.xlu1 %v3043_v49  ;;  %v4979_v19 = vpop.f32.mrf.mxu0 }
 0x37d   :  { %v6449_v22 = vpop.xlane.xlu1 %2573  ;;  %v6483_v29 = vadd.f32 %v4979_v19, %v5958_v57 }
 0x37e   :  { %2683 = vadd.xlane.f32.xlu0 %v6444_v7  ;;  %v6472_v7 = vsub.f32 %v6049_v40, %v2790_v50  ;;  %v2788_v40 = vmul.f32 0.0078125, %v6361_v35 }
 0x37f   :  { %v6458_v54 = vpop.xlane.xlu0 %2583  ;;  %8107 = vst [vmem:[#allocation73_spill] sm:$0xff] %v6483_v29 }
 0x380   :  { %2685 = vadd.xlane.f32.xlu1 %v6455_v14  ;;  %8104 = vst [vmem:[#allocation70_spill] sm:$0xff] %v6472_v7  ;;  %v3046_v12 = vmul.f32 %v6472_v7, %v6472_v7  ;;  %v6503_v35 = vsub.f32 %v6057_v34, %v2788_v40  ;;  %v6508_v7 = vsub.f32 %v6064_v36, %v2789_v11  ;;  %v2795_v36 = vmul.f32 0.0078125, %v6383_v58 }
 0x381   :  { %v6464_v41 = vpop.xlane.xlu1 %2585 }
 0x382   :  { %3180 = vadd.xlane.f32.xlu0 %v3040_v2  ;;  %v2357_v2 = vpop.f32.mrf.mxu0  ;;  %8109 = vst [vmem:[#allocation75_spill] sm:$0xff] %v6503_v35  ;;  %8110 = vst [vmem:[#allocation76_spill] sm:$0xff] %v6508_v7  ;;  %v3044_v34 = vmul.f32 %v6503_v35, %v6503_v35 }
 0x383   :  { %v6469_v49 = vpop.xlane.xlu0 %2579  ;;  %v6511_v63 = vadd.f32 %v5958_v57, %v2357_v2 }
 0x384   :  { %3182 = vadd.xlane.f32.xlu1 %v3041_v0  ;;  %v4982_v0 = vpop.f32.mrf.mxu0 }
 0x385   :  { %v6477_v14 = vpop.xlane.xlu1 %2581  ;;  %8111 = vst [vmem:[#allocation77_spill] sm:$0xff] %v6511_v63 }
 0x386   :  { %2695 = vadd.xlane.f32.xlu0 %v6475_v52  ;;  %v6500_v52 = vadd.f32 %v5958_v57, %v2354_v43  ;;  %v2794_v43 = vmul.f32 0.0078125, %v6378_v6  ;;  %v3045_v57 = vmul.f32 %v6508_v7, %v6508_v7  ;;  %v6533_v6 = vld [vmem:[%s7890_s6] ss:$0 sm:$0xff]  ;;  %v2792_v7 = vmul.f32 0.0078125, %v6387_v44 }
 0x387   :  { %v6486_v45 = vpop.xlane.xlu0 %2591 }
 0x388   :  { %2697 = vadd.xlane.f32.xlu1 %v6483_v29  ;;  %8108 = vst [vmem:[#allocation74_spill] sm:$0xff] %v6500_v52  ;;  %v6564_v44 = vsub.f32 %v6077_v56, %v2792_v7 }
 0x389   :  { %v6492_v50 = vpop.xlane.xlu1 %2593 }
 0x38a   :  { %3192 = vadd.xlane.f32.xlu0 %v3046_v12  ;;  %v2370_v12 = vpop.f32.mrf.mxu0  ;;  %8117 = vst [vmem:[#allocation83_spill] sm:$0xff] %v6564_v44  ;;  %v3048_v56 = vmul.f32 %v6564_v44, %v6564_v44 }
 0x38b   :  { %v6497_v19 = vpop.xlane.xlu0 %2587  ;;  %v6561_v35 = vadd.f32 %v6533_v6, %v2370_v12  ;;  %v2798_v12 = vmul.f32 0.0078125, %v6404_v23 }
 0x38c   :  { %3194 = vadd.xlane.f32.xlu1 %v3047_v31  ;;  %v4983_v2 = vpop.f32.mrf.mxu0  ;;  %v6528_v31 = vsub.f32 %v6069_v59, %v2794_v43 }
 0x38d   :  { %v6505_v29 = vpop.xlane.xlu1 %2589  ;;  %8116 = vst [vmem:[#allocation82_spill] sm:$0xff] %v6561_v35 }
 0x38e   :  { %2691 = vadd.xlane.f32.xlu0 %v6500_v52  ;;  %8112 = vst [vmem:[#allocation78_spill] sm:$0xff] %v6528_v31  ;;  %v6544_v52 = vadd.f32 %v6533_v6, %v4983_v2  ;;  %v2373_v59 = vpop.f32.mrf.mxu0 }
 0x38f   :  { %v6514_v16 = vpop.xlane.xlu0 %2599 }
 0x390   :  { %2693 = vadd.xlane.f32.xlu1 %v6511_v63  ;;  %v6536_v63 = vadd.f32 %v6533_v6, %v4982_v0  ;;  %8115 = vst [vmem:[#allocation81_spill] sm:$0xff] %v6544_v52  ;;  %v3050_v0 = vmul.f32 %v6528_v31, %v6528_v31  ;;  %v4986_v2 = vpop.f32.mrf.mxu0 }
 0x391   :  { %v6520_v40 = vpop.xlane.xlu1 %2601  ;;  %v6592_v23 = vadd.f32 %v6533_v6, %v4986_v2 }
 0x392   :  { %3188 = vadd.xlane.f32.xlu0 %v3044_v34  ;;  %8113 = vst [vmem:[#allocation79_spill] sm:$0xff] %v6536_v63  ;;  %v6541_v34 = vsub.f32 %v6073_v55, %v2795_v36  ;;  %v2793_v55 = vmul.f32 0.0078125, %v6395_v27  ;;  %v6572_v27 = vadd.f32 %v6533_v6, %v2373_v59 }
 0x393   :  { %v6525_v11 = vpop.xlane.xlu0 %2595  ;;  %8121 = vst [vmem:[#allocation87_spill] sm:$0xff] %v6592_v23 }
 0x394   :  { %3190 = vadd.xlane.f32.xlu1 %v3045_v57  ;;  %8114 = vst [vmem:[#allocation80_spill] sm:$0xff] %v6541_v34  ;;  %v3051_v36 = vmul.f32 %v6541_v34, %v6541_v34  ;;  %v6569_v31 = vsub.f32 %v6084_v18, %v2793_v55  ;;  %8119 = vst [vmem:[#allocation85_spill] sm:$0xff] %v6572_v27  ;;  %v2799_v18 = vmul.f32 0.0078125, %v6409_v5 }
 0x395   :  { %v6538_v58 = vpop.xlane.xlu1 %2597 }
 0x396   :  { %2703 = vadd.xlane.f32.xlu0 %v6536_v63  ;;  %8118 = vst [vmem:[#allocation84_spill] sm:$0xff] %v6569_v31  ;;  %v3049_v59 = vmul.f32 %v6569_v31, %v6569_v31  ;;  %v6597_v44 = vsub.f32 %v6093_v9, %v2799_v18  ;;  %v2797_v9 = vmul.f32 0.0078125, %v6421_v60 }
 0x397   :  { %v6547_v43 = vpop.xlane.xlu0 %2607 }
 0x398   :  { %2705 = vadd.xlane.f32.xlu1 %v6544_v52  ;;  %8122 = vst [vmem:[#allocation88_spill] sm:$0xff] %v6597_v44  ;;  %v3055_v18 = vmul.f32 %v6597_v44, %v6597_v44 }
 0x399   :  { %v6553_v57 = vpop.xlane.xlu1 %2609 }
 0x39a   :  { %3200 = vadd.xlane.f32.xlu0 %v3050_v0  ;;  %v2386_v0 = vpop.f32.mrf.mxu0 }
 0x39b   :  { %v6558_v63 = vpop.xlane.xlu0 %2603 }
 0x39c   :  { %3202 = vadd.xlane.f32.xlu1 %v3051_v36  ;;  %v4987_v55 = vpop.f32.mrf.mxu0 }
 0x39d   :  { %v6566_v52 = vpop.xlane.xlu1 %2605  ;;  %v6600_v5 = vadd.f32 %v6533_v6, %v4987_v55 }
 0x39e   :  { %2699 = vadd.xlane.f32.xlu0 %v6561_v35  ;;  %v6589_v35 = vsub.f32 %v6089_v62, %v2798_v12  ;;  %v2796_v62 = vmul.f32 0.0078125, %v6413_v32 }
 0x39f   :  { %v6575_v34 = vpop.xlane.xlu0 %2615  ;;  %8123 = vst [vmem:[#allocation89_spill] sm:$0xff] %v6600_v5 }
 0x3a0   :  { %2701 = vadd.xlane.f32.xlu1 %v6572_v27  ;;  %8120 = vst [vmem:[#allocation86_spill] sm:$0xff] %v6589_v35  ;;  %v3054_v2 = vmul.f32 %v6589_v35, %v6589_v35  ;;  %v6620_v32 = vsub.f32 %v6097_v4, %v2796_v62  ;;  %v6625_v35 = vsub.f32 %v6101_v1, %v2797_v9  ;;  %v2803_v1 = vmul.f32 0.0078125, %v6436_v30 }
 0x3a1   :  { %v6581_v7 = vpop.xlane.xlu1 %2617 }
 0x3a2   :  { %3196 = vadd.xlane.f32.xlu0 %v3048_v56  ;;  %v2389_v56 = vpop.f32.mrf.mxu0  ;;  %8125 = vst [vmem:[#allocation91_spill] sm:$0xff] %v6620_v32  ;;  %8126 = vst [vmem:[#allocation92_spill] sm:$0xff] %v6625_v35  ;;  %v3052_v4 = vmul.f32 %v6620_v32, %v6620_v32  ;;  %v6653_v32 = vsub.f32 %v6109_v61, %v2803_v1  ;;  %v2801_v61 = vmul.f32 0.0078125, %v6449_v22 }
 0x3a3   :  { %v6586_v36 = vpop.xlane.xlu0 %2611  ;;  %v6628_v60 = vadd.f32 %v6533_v6, %v2389_v56  ;;  %v3053_v56 = vmul.f32 %v6625_v35, %v6625_v35 }
 0x3a4   :  { %3198 = vadd.xlane.f32.xlu1 %v3049_v59  ;;  %v4990_v59 = vpop.f32.mrf.mxu0  ;;  %8130 = vst [vmem:[#allocation96_spill] sm:$0xff] %v6653_v32  ;;  %v3059_v1 = vmul.f32 %v6653_v32, %v6653_v32 }
 0x3a5   :  { %v6594_v27 = vpop.xlane.xlu1 %2613  ;;  %8127 = vst [vmem:[#allocation93_spill] sm:$0xff] %v6628_v60 }
 0x3a6   :  { %2711 = vadd.xlane.f32.xlu0 %v6592_v23  ;;  %v6617_v23 = vadd.f32 %v6533_v6, %v2386_v0  ;;  %v2802_v0 = vmul.f32 0.0078125, %v6430_v28  ;;  %v6648_v28 = vadd.f32 %v6533_v6, %v4990_v59 }
 0x3a7   :  { %v6603_v31 = vpop.xlane.xlu0 %2623 }
 0x3a8   :  { %2713 = vadd.xlane.f32.xlu1 %v6600_v5  ;;  %8124 = vst [vmem:[#allocation90_spill] sm:$0xff] %v6617_v23  ;;  %8129 = vst [vmem:[#allocation95_spill] sm:$0xff] %v6648_v28 }
 0x3a9   :  { %v6609_v12 = vpop.xlane.xlu1 %2625 }
 0x3aa   :  { %3208 = vadd.xlane.f32.xlu0 %v3054_v2  ;;  %v2402_v2 = vpop.f32.mrf.mxu0 }
 0x3ab   :  { %v6614_v55 = vpop.xlane.xlu0 %2619 }
 0x3ac   :  { %3210 = vadd.xlane.f32.xlu1 %v3055_v18  ;;  %v4991_v9 = vpop.f32.mrf.mxu0 }
 0x3ad   :  { %v6622_v5 = vpop.xlane.xlu1 %2621  ;;  %v6656_v30 = vadd.f32 %v6533_v6, %v4991_v9 }
 0x3ae   :  { %2707 = vadd.xlane.f32.xlu0 %v6617_v23  ;;  %v6645_v23 = vsub.f32 %v6105_v25, %v2802_v0  ;;  %v2800_v25 = vmul.f32 0.0078125, %v6441_v46 }
 0x3af   :  { %v6631_v44 = vpop.xlane.xlu0 %2631  ;;  %8131 = vst [vmem:[#allocation97_spill] sm:$0xff] %v6656_v30 }
 0x3b0   :  { %2709 = vadd.xlane.f32.xlu1 %v6628_v60  ;;  %8128 = vst [vmem:[#allocation94_spill] sm:$0xff] %v6645_v23  ;;  %v3058_v59 = vmul.f32 %v6645_v23, %v6645_v23  ;;  %v6676_v46 = vsub.f32 %v6113_v53, %v2800_v25  ;;  %v6681_v23 = vsub.f32 %v6117_v17, %v2801_v61  ;;  %v2807_v17 = vmul.f32 0.0078125, %v6464_v41 }
 0x3b1   :  { %v6637_v62 = vpop.xlane.xlu1 %2633 }
 0x3b2   :  { %3204 = vadd.xlane.f32.xlu0 %v3052_v4  ;;  %v2405_v4 = vpop.f32.mrf.mxu0  ;;  %8133 = vst [vmem:[#allocation99_spill] sm:$0xff] %v6676_v46  ;;  %8134 = vst [vmem:[#allocation100_spill] sm:$0xff] %v6681_v23  ;;  %v3056_v53 = vmul.f32 %v6676_v46, %v6676_v46  ;;  %v6709_v46 = vsub.f32 %v6125_v26, %v2807_v17  ;;  %v2805_v26 = vmul.f32 0.0078125, %v6477_v14 }
 0x3b3   :  { %v6642_v18 = vpop.xlane.xlu0 %2627  ;;  %v6684_v22 = vadd.f32 %v6533_v6, %v2405_v4  ;;  %v3057_v4 = vmul.f32 %v6681_v23, %v6681_v23 }
 0x3b4   :  { %3206 = vadd.xlane.f32.xlu1 %v3053_v56  ;;  %v4994_v56 = vpop.f32.mrf.mxu0  ;;  %8138 = vst [vmem:[#allocation104_spill] sm:$0xff] %v6709_v46  ;;  %v3063_v17 = vmul.f32 %v6709_v46, %v6709_v46 }
 0x3b5   :  { %v6650_v60 = vpop.xlane.xlu1 %2629  ;;  %8135 = vst [vmem:[#allocation101_spill] sm:$0xff] %v6684_v22 }
 0x3b6   :  { %2719 = vadd.xlane.f32.xlu0 %v6648_v28  ;;  %v6673_v28 = vadd.f32 %v6533_v6, %v2402_v2  ;;  %v2806_v2 = vmul.f32 0.0078125, %v6458_v54  ;;  %v6704_v54 = vadd.f32 %v6533_v6, %v4994_v56 }
 0x3b7   :  { %v6659_v35 = vpop.xlane.xlu0 %2639 }
 0x3b8   :  { %2721 = vadd.xlane.f32.xlu1 %v6656_v30  ;;  %8132 = vst [vmem:[#allocation98_spill] sm:$0xff] %v6673_v28  ;;  %8137 = vst [vmem:[#allocation103_spill] sm:$0xff] %v6704_v54 }
 0x3b9   :  { %v6665_v0 = vpop.xlane.xlu1 %2641 }
 0x3ba   :  { %3216 = vadd.xlane.f32.xlu0 %v3058_v59  ;;  %v2418_v59 = vpop.f32.mrf.mxu0 }
 0x3bb   :  { %v6670_v9 = vpop.xlane.xlu0 %2635 }
 0x3bc   :  { %3218 = vadd.xlane.f32.xlu1 %v3059_v1  ;;  %v4995_v61 = vpop.f32.mrf.mxu0 }
 0x3bd   :  { %v6678_v30 = vpop.xlane.xlu1 %2637  ;;  %v6712_v41 = vadd.f32 %v6533_v6, %v4995_v61 }
 0x3be   :  { %2715 = vadd.xlane.f32.xlu0 %v6673_v28  ;;  %v6701_v28 = vsub.f32 %v6121_v20, %v2806_v2  ;;  %v2804_v20 = vmul.f32 0.0078125, %v6469_v49 }
 0x3bf   :  { %v6687_v32 = vpop.xlane.xlu0 %2647  ;;  %8139 = vst [vmem:[#allocation105_spill] sm:$0xff] %v6712_v41 }
 0x3c0   :  { %2717 = vadd.xlane.f32.xlu1 %v6684_v22  ;;  %8136 = vst [vmem:[#allocation102_spill] sm:$0xff] %v6701_v28  ;;  %v3062_v56 = vmul.f32 %v6701_v28, %v6701_v28  ;;  %v6732_v49 = vsub.f32 %v6129_v39, %v2804_v20  ;;  %v6737_v28 = vsub.f32 %v6133_v47, %v2805_v26  ;;  %v2811_v47 = vmul.f32 0.0078125, %v6492_v50 }
 0x3c1   :  { %v6693_v25 = vpop.xlane.xlu1 %2649 }
 0x3c2   :  { %3212 = vadd.xlane.f32.xlu0 %v3056_v53  ;;  %v2421_v53 = vpop.f32.mrf.mxu0  ;;  %8141 = vst [vmem:[#allocation107_spill] sm:$0xff] %v6732_v49  ;;  %8143 = vst [vmem:[#allocation109_spill] sm:$0xff] %v6737_v28  ;;  %v3060_v39 = vmul.f32 %v6732_v49, %v6732_v49  ;;  %v6761_v49 = vsub.f32 %v6141_v15, %v2811_v47  ;;  %v2809_v47 = vmul.f32 0.0078125, %v6505_v29 }
 0x3c3   :  { %v6698_v1 = vpop.xlane.xlu0 %2643  ;;  %v6740_v14 = vadd.f32 %v6533_v6, %v2421_v53  ;;  %v3061_v53 = vmul.f32 %v6737_v28, %v6737_v28 }
 0x3c4   :  { %3214 = vadd.xlane.f32.xlu1 %v3057_v4  ;;  %v4998_v4 = vpop.f32.mrf.mxu0 }
 0x3c5   :  { %v6706_v22 = vpop.xlane.xlu1 %2645  ;;  %8144 = vst [vmem:[#allocation110_spill] sm:$0xff] %v6740_v14 }
 0x3c6   :  { %2727 = vadd.xlane.f32.xlu0 %v6704_v54  ;;  %v6729_v54 = vadd.f32 %v6533_v6, %v2418_v59  ;;  %v2810_v59 = vmul.f32 0.0078125, %v6486_v45  ;;  %v6758_v45 = vadd.f32 %v6533_v6, %v4998_v4 }
 0x3c7   :  { %v6715_v23 = vpop.xlane.xlu0 %2655 }
 0x3c8   :  { %2729 = vadd.xlane.f32.xlu1 %v6712_v41  ;;  %8140 = vst [vmem:[#allocation106_spill] sm:$0xff] %v6729_v54  ;;  %8147 = vst [vmem:[#allocation113_spill] sm:$0xff] %v6758_v45 }
 0x3c9   :  { %v6721_v2 = vpop.xlane.xlu1 %2657 }
 0x3ca   :  { %3224 = vadd.xlane.f32.xlu0 %v3062_v56  ;;  %v2434_v56 = vpop.f32.mrf.mxu0 }
 0x3cb   :  { %v6726_v61 = vpop.xlane.xlu0 %2651 }
 0x3cc   :  { %3226 = vadd.xlane.f32.xlu1 %v3063_v17  ;;  %v4999_v26 = vpop.f32.mrf.mxu0 }
 0x3cd   :  { %v6734_v41 = vpop.xlane.xlu1 %2653  ;;  %v6764_v50 = vadd.f32 %v6533_v6, %v4999_v26 }
 0x3ce   :  { %8142 = vst [vmem:[#allocation108_spill] sm:$0xff] %v6734_v41  ;;  %2723 = vadd.xlane.f32.xlu0 %v6729_v54  ;;  %v6755_v54 = vsub.f32 %v6137_v10, %v2810_v59  ;;  %v2437_v28 = vpop.f32.mrf.mxu0  ;;  %v2808_v10 = vmul.f32 0.0078125, %v6497_v19  ;;  %v6779_v19 = vadd.f32 %v6533_v6, %v2434_v56 }
 0x3cf   :  { %v6743_v46 = vpop.xlane.xlu0 %2663  ;;  %8148 = vst [vmem:[#allocation114_spill] sm:$0xff] %v6764_v50  ;;  %v6788_v29 = vadd.f32 %v6533_v6, %v2437_v28 }
 0x3d0   :  { %8145 = vst [vmem:[#allocation111_spill] sm:$0xff] %v6743_v46  ;;  %2725 = vadd.xlane.f32.xlu1 %v6740_v14  ;;  %v3066_v15 = vmul.f32 %v6755_v54, %v6755_v54  ;;  %8149 = vst [vmem:[#allocation115_spill] sm:$0xff] %v6779_v19 }
 0x3d1   :  { %v6749_v20 = vpop.xlane.xlu1 %2665  ;;  %8150 = vst [vmem:[#allocation116_spill] sm:$0xff] %v6788_v29 }
 0x3d2   :  { %8146 = vst [vmem:[#allocation112_spill] sm:$0xff] %v6749_v20  ;;  %3220 = vadd.xlane.f32.xlu0 %v3060_v39 }
 0x3d3   :  { %v3161_v17 = vpop.xlane.xlu0 %3160 }
 0x3d4   :  { %v3414_v14 = vmul.f32 0.0078125, %v3161_v17  ;;  %3222 = vadd.xlane.f32.xlu1 %v3061_v53 }
 0x3d5   :  { %v3163_v46 = vpop.xlane.xlu1 %3162 }
 0x3d6   :  { %v3542_v39 = vadd.f32 1e-05, %v3414_v14  ;;  %v3415_v20 = vmul.f32 0.0078125, %v3163_v46  ;;  %2735 = vadd.xlane.f32.xlu0 %v6758_v45  ;;  %v3067_v46 = vmul.f32 %v6761_v49, %v6761_v49  ;;  %v5002_v14 = vpop.f32.mrf.mxu0 }
 0x3d7   :  { %v6767_v41 = vpop.xlane.xlu0 %2659 }
 0x3d8   :  { %5065 = vrsqrt.f32 %v3542_v39  ;;  %v3543_v4 = vadd.f32 1e-05, %v3415_v20  ;;  %2737 = vadd.xlane.f32.xlu1 %v6764_v50  ;;  %v6782_v20 = vsub.f32 %v6145_v24, %v2808_v10  ;;  %v6785_v39 = vsub.f32 %v6149_v13, %v2809_v47  ;;  %v2450_v56 = vpop.f32.mrf.mxu0 }
 0x3d9   :  { %v6773_v59 = vpop.xlane.xlu1 %2661  ;;  %v2814_v50 = vmul.f32 0.0078125, %v6514_v16  ;;  %v2815_v10 = vmul.f32 0.0078125, %v6520_v40 }
 0x3da   :  { %5067 = vrsqrt.f32 %v3543_v4  ;;  %3232 = vadd.xlane.f32.xlu0 %v3066_v15  ;;  %v3064_v13 = vmul.f32 %v6782_v20, %v6782_v20  ;;  %v3065_v47 = vmul.f32 %v6785_v39, %v6785_v39 }
 0x3db   :  { %v3157_v53 = vpop.xlane.xlu0 %3156  ;;  %v6803_v16 = vsub.f32 %v6153_v37, %v2814_v50  ;;  %v6809_v40 = vsub.f32 %v6157_v38, %v2815_v10  ;;  %v6825_v10 = vld [vmem:[%s7892_s8] ss:$0 sm:$0xff] }
 0x3dc   :  { %v3412_v26 = vmul.f32 0.0078125, %v3157_v53  ;;  %3234 = vadd.xlane.f32.xlu1 %v3067_v46  ;;  %v5003_v46 = vpop.f32.mrf.mxu0 }
 0x3dd   :  { %v3159_v17 = vpop.xlane.xlu1 %3158  ;;  %8151 = vst [vmem:[#allocation117_spill] sm:$0xff] %v6803_v16  ;;  %v6817_v37 = vadd.f32 %v6533_v6, %v5003_v46  ;;  %v3070_v46 = vmul.f32 %v6803_v16, %v6803_v16  ;;  %v3071_v16 = vmul.f32 %v6809_v40, %v6809_v40 }
 0x3de   :  { %v3540_v4 = vadd.f32 1e-05, %v3412_v26  ;;  %v3413_v15 = vmul.f32 0.0078125, %v3159_v17  ;;  %2731 = vadd.xlane.f32.xlu0 %v6779_v19  ;;  %v6806_v26 = vadd.f32 %v6533_v6, %v5002_v14  ;;  %v2453_v38 = vpop.f32.mrf.mxu0 }
 0x3df   :  { %v6792_v45 = vpop.xlane.xlu0 %2671  ;;  %8153 = vst [vmem:[#allocation119_spill] sm:$0xff] %v6817_v37 }
 0x3e0   :  { %5069 = vrsqrt.f32 %v3540_v4  ;;  %v3541_v24 = vadd.f32 1e-05, %v3413_v15  ;;  %2733 = vadd.xlane.f32.xlu1 %v6788_v29  ;;  %8152 = vst [vmem:[#allocation118_spill] sm:$0xff] %v6806_v26  ;;  %v6814_v15 = vld [vmem:[%s7891_s7] ss:$0 sm:$0xff] }
 0x3e1   :  { %v6798_v28 = vpop.xlane.xlu1 %2673 }
 0x3e2   :  { %5071 = vrsqrt.f32 %v3541_v24  ;;  %3228 = vadd.xlane.f32.xlu0 %v3064_v13 }
 0x3e3   :  { %v3169_v53 = vpop.xlane.xlu0 %3168 }
 0x3e4   :  { %v3418_v17 = vmul.f32 0.0078125, %v3169_v53  ;;  %3230 = vadd.xlane.f32.xlu1 %v3065_v47  ;;  %v2812_v53 = vmul.f32 0.0078125, %v6525_v11  ;;  %v2813_v11 = vmul.f32 0.0078125, %v6538_v58 }
 0x3e5   :  { %v5066_v4 = vpop.eup %5065  ;;  %v3171_v24 = vpop.xlane.xlu1 %3170 }
 0x3e6   :  { %v3798_v50 = vmul.f32 %v5066_v4, %v6285_v3  ;;  %v3546_v13 = vadd.f32 1e-05, %v3418_v17  ;;  %v3419_v14 = vmul.f32 0.0078125, %v3171_v24  ;;  %2743 = vadd.xlane.f32.xlu0 %v6806_v26 }
 0x3e7   :  { %v5068_v47 = vpop.eup %5067  ;;  %v6827_v29 = vpop.xlane.xlu0 %2667 }
 0x3e8   :  { %v3932_v3 = vmul.f32 %v6814_v15, %v3798_v50  ;;  %v3799_v17 = vmul.f32 %v5068_v47, %v6292_v42  ;;  %5073 = vrsqrt.f32 %v3546_v13  ;;  %v3547_v4 = vadd.f32 1e-05, %v3419_v14  ;;  %2745 = vadd.xlane.f32.xlu1 %v6817_v37  ;;  %v5006_v42 = vpop.f32.mrf.mxu0 }
 0x3e9   :  { %v6835_v24 = vpop.xlane.xlu1 %2669  ;;  %v6842_v50 = vsub.f32 %v6161_v8, %v2812_v53  ;;  %v6845_v14 = vadd.f32 %v6533_v6, %v2450_v56 }
 0x3ea   :  { %v4066_v26 = vadd.f32 %v6825_v10, %v3932_v3  ;;  %v3933_v19 = vmul.f32 %v6814_v15, %v3799_v17  ;;  %5075 = vrsqrt.f32 %v3547_v4  ;;  %3240 = vadd.xlane.f32.xlu0 %v3070_v46  ;;  %v6849_v17 = vsub.f32 %v6165_v33, %v2813_v11 }
 0x3eb   :  { %v3165_v13 = vpop.xlane.xlu0 %3164  ;;  %8154 = vst [vmem:[#allocation120_spill] sm:$0xff] %v6845_v14  ;;  %v6852_v4 = vadd.f32 %v6533_v6, %v2453_v38  ;;  %v3068_v33 = vmul.f32 %v6842_v50, %v6842_v50  ;;  %v8157_v38 = vld [vmem:[#allocation47_spill] sm:$0xff] }
 0x3ec   :  { %4194 = vst [vmem:[#allocation10 + $0x10] sm:$0xff] %v4066_v26  ;;  %v4067_v58 = vadd.f32 %v6825_v10, %v3933_v19  ;;  %v3416_v47 = vmul.f32 0.0078125, %v3165_v13  ;;  %3242 = vadd.xlane.f32.xlu1 %v3071_v16  ;;  %8155 = vst [vmem:[#allocation121_spill] sm:$0xff] %v6849_v17  ;;  %v2818_v19 = vmul.f32 0.0078125, %v6547_v43  ;;  %v2466_v26 = vpop.f32.mrf.mxu0 }
 0x3ed   :  { %v5070_v3 = vpop.eup %5069  ;;  %v3167_v46 = vpop.xlane.xlu1 %3166  ;;  %8156 = vst [vmem:[#allocation122_spill] sm:$0xff] %v6852_v4 }
 0x3ee   :  { %4195 = vst [vmem:[#allocation10 + $0x18] sm:$0xff] %v4067_v58  ;;  %v3796_v8 = vmul.f32 %v5070_v3, %v6303_v48  ;;  %v3544_v53 = vadd.f32 1e-05, %v3416_v47  ;;  %v3417_v37 = vmul.f32 0.0078125, %v3167_v46  ;;  %2739 = vadd.xlane.f32.xlu0 %v6845_v14  ;;  %v2819_v48 = vmul.f32 0.0078125, %v6553_v57 }
 0x3ef   :  { %v5072_v56 = vpop.eup %5071  ;;  %v6857_v16 = vpop.xlane.xlu0 %2679  ;;  %v3069_v46 = vmul.f32 %v6849_v17, %v6849_v17 }
 0x3f0   :  { %v3930_v11 = vmul.f32 %v6814_v15, %v3796_v8  ;;  %v3797_v13 = vmul.f32 %v5072_v56, %v8157_v38  ;;  %5077 = vrsqrt.f32 %v3544_v53  ;;  %v3545_v58 = vadd.f32 1e-05, %v3417_v37  ;;  %2741 = vadd.xlane.f32.xlu1 %v6852_v4  ;;  %v8158_v8 = vld [vmem:[#allocation15_spill] sm:$0xff]  ;;  %v5007_v53 = vpop.f32.mrf.mxu0 }
 0x3f1   :  { %v6865_v47 = vpop.xlane.xlu1 %2681  ;;  %v6872_v14 = vsub.f32 %v8158_v8, %v2818_v19  ;;  %v6875_v56 = vadd.f32 %v6533_v6, %v5006_v42  ;;  %v6882_v4 = vadd.f32 %v6533_v6, %v5007_v53  ;;  %v8164_v53 = vld [vmem:[#allocation50_spill] sm:$0xff] }
 0x3f2   :  { %v4064_v43 = vadd.f32 %v6825_v10, %v3930_v11  ;;  %v3931_v3 = vmul.f32 %v6814_v15, %v3797_v13  ;;  %5079 = vrsqrt.f32 %v3545_v58  ;;  %3236 = vadd.xlane.f32.xlu0 %v3068_v33  ;;  %v8161_v13 = vld [vmem:[#allocation16_spill] sm:$0xff] }
 0x3f3   :  { %8159 = vst [vmem:[#allocation47_spill] sm:$0xff] %v6872_v14  ;;  %v3177_v37 = vpop.xlane.xlu0 %3176  ;;  %8160 = vst [vmem:[#allocation15_spill] sm:$0xff] %v6875_v56  ;;  %v6879_v58 = vsub.f32 %v8161_v13, %v2819_v48  ;;  %v3074_v48 = vmul.f32 %v6872_v14, %v6872_v14 }
 0x3f4   :  { %4192 = vst [vmem:[#allocation10] sm:$0xff] %v4064_v43  ;;  %v4065_v57 = vadd.f32 %v6825_v10, %v3931_v3  ;;  %v3422_v38 = vmul.f32 0.0078125, %v3177_v37  ;;  %3238 = vadd.xlane.f32.xlu1 %v3069_v46  ;;  %8163 = vst [vmem:[#allocation123_spill] sm:$0xff] %v6882_v4  ;;  %v2816_v43 = vmul.f32 0.0078125, %v6558_v63  ;;  %v2469_v3 = vpop.f32.mrf.mxu0 }
 0x3f5   :  { %v5074_v11 = vpop.eup %5073  ;;  %8162 = vst [vmem:[#allocation16_spill] sm:$0xff] %v6879_v58  ;;  %v3179_v33 = vpop.xlane.xlu1 %3178 }
 0x3f6   :  { %4193 = vst [vmem:[#allocation10 + $0x8] sm:$0xff] %v4065_v57  ;;  %v3802_v19 = vmul.f32 %v5074_v11, %v6321_v51  ;;  %v3550_v8 = vadd.f32 1e-05, %v3422_v38  ;;  %v3423_v17 = vmul.f32 0.0078125, %v3179_v33  ;;  %2751 = vadd.xlane.f32.xlu0 %v6875_v56  ;;  %v2817_v51 = vmul.f32 0.0078125, %v6566_v52 }
 0x3f7   :  { %v5076_v42 = vpop.eup %5075  ;;  %v6887_v46 = vpop.xlane.xlu0 %2675  ;;  %v3075_v33 = vmul.f32 %v6879_v58, %v6879_v58 }
 0x3f8   :  { %v3936_v37 = vmul.f32 %v6814_v15, %v3802_v19  ;;  %v3803_v13 = vmul.f32 %v5076_v42, %v8164_v53  ;;  %5081 = vrsqrt.f32 %v3550_v8  ;;  %v3551_v57 = vadd.f32 1e-05, %v3423_v17  ;;  %2753 = vadd.xlane.f32.xlu1 %v6882_v4  ;;  %v8165_v19 = vld [vmem:[#allocation17_spill] sm:$0xff]  ;;  %v5010_v8 = vpop.f32.mrf.mxu0 }
 0x3f9   :  { %v6895_v38 = vpop.xlane.xlu1 %2677  ;;  %v6902_v56 = vsub.f32 %v8165_v19, %v2816_v43  ;;  %v6905_v42 = vadd.f32 %v6533_v6, %v2466_v26  ;;  %v6912_v4 = vadd.f32 %v6533_v6, %v2469_v3  ;;  %v8171_v43 = vld [vmem:[#allocation52_spill] sm:$0xff]  ;;  %v8172_v3 = vld [vmem:[#allocation54_spill] sm:$0xff] }
 0x3fa   :  { %v4070_v63 = vadd.f32 %v6825_v10, %v3936_v37  ;;  %v3937_v11 = vmul.f32 %v6814_v15, %v3803_v13  ;;  %5083 = vrsqrt.f32 %v3551_v57  ;;  %3248 = vadd.xlane.f32.xlu0 %v3074_v48  ;;  %v8168_v13 = vld [vmem:[#allocation18_spill] sm:$0xff] }
 0x3fb   :  { %8166 = vst [vmem:[#allocation50_spill] sm:$0xff] %v6902_v56  ;;  %v3173_v17 = vpop.xlane.xlu0 %3172  ;;  %8167 = vst [vmem:[#allocation17_spill] sm:$0xff] %v6905_v42  ;;  %v6909_v57 = vsub.f32 %v8168_v13, %v2817_v51  ;;  %v3072_v51 = vmul.f32 %v6902_v56, %v6902_v56 }
 0x3fc   :  { %4198 = vst [vmem:[#allocation10 + $0x30] sm:$0xff] %v4070_v63  ;;  %v4071_v52 = vadd.f32 %v6825_v10, %v3937_v11  ;;  %v3420_v53 = vmul.f32 0.0078125, %v3173_v17  ;;  %3250 = vadd.xlane.f32.xlu1 %v3075_v33  ;;  %8170 = vst [vmem:[#allocation124_spill] sm:$0xff] %v6912_v4  ;;  %v2822_v63 = vmul.f32 0.0078125, %v6575_v34  ;;  %v2482_v11 = vpop.f32.mrf.mxu0 }
 0x3fd   :  { %v5078_v37 = vpop.eup %5077  ;;  %8169 = vst [vmem:[#allocation18_spill] sm:$0xff] %v6909_v57  ;;  %v3175_v48 = vpop.xlane.xlu1 %3174 }
 0x3fe   :  { %4199 = vst [vmem:[#allocation10 + $0x38] sm:$0xff] %v4071_v52  ;;  %v3800_v19 = vmul.f32 %v5078_v37, %v8171_v43  ;;  %v3548_v58 = vadd.f32 1e-05, %v3420_v53  ;;  %v3421_v14 = vmul.f32 0.0078125, %v3175_v48  ;;  %2747 = vadd.xlane.f32.xlu0 %v6905_v42  ;;  %v2823_v53 = vmul.f32 0.0078125, %v6581_v7 }
 0x3ff   :  { %v5080_v26 = vpop.eup %5079  ;;  %v6917_v33 = vpop.xlane.xlu0 %2687  ;;  %v3073_v43 = vmul.f32 %v6909_v57, %v6909_v57 }
 0x400   :  { %v3934_v17 = vmul.f32 %v6814_v15, %v3800_v19  ;;  %v3801_v13 = vmul.f32 %v5080_v26, %v8172_v3  ;;  %5085 = vrsqrt.f32 %v3548_v58  ;;  %v3549_v52 = vadd.f32 1e-05, %v3421_v14  ;;  %2749 = vadd.xlane.f32.xlu1 %v6912_v4  ;;  %v8173_v19 = vld [vmem:[#allocation19_spill] sm:$0xff]  ;;  %v5011_v58 = vpop.f32.mrf.mxu0 }
 0x401   :  { %v6925_v37 = vpop.xlane.xlu1 %2689  ;;  %v6932_v56 = vsub.f32 %v8173_v19, %v2822_v63  ;;  %v6935_v26 = vadd.f32 %v6533_v6, %v5010_v8  ;;  %v6942_v57 = vadd.f32 %v6533_v6, %v5011_v58  ;;  %v8178_v63 = vld [vmem:[#allocation56_spill] sm:$0xff]  ;;  %v8179_v58 = vld [vmem:[#allocation58_spill] sm:$0xff] }
 0x402   :  { %v4068_v34 = vadd.f32 %v6825_v10, %v3934_v17  ;;  %v3935_v48 = vmul.f32 %v6814_v15, %v3801_v13  ;;  %5087 = vrsqrt.f32 %v3549_v52  ;;  %3244 = vadd.xlane.f32.xlu0 %v3072_v51  ;;  %v8175_v13 = vld [vmem:[#allocation20_spill] sm:$0xff] }
 0x403   :  { %8174 = vst [vmem:[#allocation52_spill] sm:$0xff] %v6932_v56  ;;  %v3185_v14 = vpop.xlane.xlu0 %3184  ;;  %v6939_v52 = vsub.f32 %v8175_v13, %v2823_v53  ;;  %8177 = vst [vmem:[#allocation19_spill] sm:$0xff] %v6942_v57  ;;  %v3078_v53 = vmul.f32 %v6932_v56, %v6932_v56 }
 0x404   :  { %4196 = vst [vmem:[#allocation10 + $0x20] sm:$0xff] %v4068_v34  ;;  %v4069_v7 = vadd.f32 %v6825_v10, %v3935_v48  ;;  %v3426_v3 = vmul.f32 0.0078125, %v3185_v14  ;;  %3246 = vadd.xlane.f32.xlu1 %v3073_v43  ;;  %v2820_v34 = vmul.f32 0.0078125, %v6586_v36  ;;  %v2485_v48 = vpop.f32.mrf.mxu0 }
 0x405   :  { %v5082_v17 = vpop.eup %5081  ;;  %8176 = vst [vmem:[#allocation54_spill] sm:$0xff] %v6939_v52  ;;  %v3187_v51 = vpop.xlane.xlu1 %3186 }
 0x406   :  { %4197 = vst [vmem:[#allocation10 + $0x28] sm:$0xff] %v4069_v7  ;;  %v3806_v19 = vmul.f32 %v5082_v17, %v8178_v63  ;;  %v3554_v4 = vadd.f32 1e-05, %v3426_v3  ;;  %v3427_v42 = vmul.f32 0.0078125, %v3187_v51  ;;  %2759 = vadd.xlane.f32.xlu0 %v6935_v26  ;;  %v2821_v3 = vmul.f32 0.0078125, %v6594_v27 }
 0x407   :  { %v5084_v8 = vpop.eup %5083  ;;  %v6947_v43 = vpop.xlane.xlu0 %2683  ;;  %v3079_v63 = vmul.f32 %v6939_v52, %v6939_v52  ;;  %v6972_v52 = vadd.f32 %v6533_v6, %v2485_v48  ;;  %v8186_v48 = vld [vmem:[#allocation61_spill] sm:$0xff] }
 0x408   :  { %v3940_v14 = vmul.f32 %v6814_v15, %v3806_v19  ;;  %v3807_v13 = vmul.f32 %v5084_v8, %v8179_v58  ;;  %5089 = vrsqrt.f32 %v3554_v4  ;;  %v3555_v7 = vadd.f32 1e-05, %v3427_v42  ;;  %2761 = vadd.xlane.f32.xlu1 %v6942_v57  ;;  %v8180_v19 = vld [vmem:[#allocation21_spill] sm:$0xff]  ;;  %v5014_v4 = vpop.f32.mrf.mxu0 }
 0x409   :  { %v6955_v17 = vpop.xlane.xlu1 %2685  ;;  %v6962_v56 = vsub.f32 %v8180_v19, %v2820_v34  ;;  %v6965_v8 = vadd.f32 %v6533_v6, %v2482_v11  ;;  %8185 = vst [vmem:[#allocation21_spill] sm:$0xff] %v6972_v52 }
 0x40a   :  { %v4074_v36 = vadd.f32 %v6825_v10, %v3940_v14  ;;  %v3941_v51 = vmul.f32 %v6814_v15, %v3807_v13  ;;  %5091 = vrsqrt.f32 %v3555_v7  ;;  %3256 = vadd.xlane.f32.xlu0 %v3078_v53  ;;  %v8183_v13 = vld [vmem:[#allocation22_spill] sm:$0xff] }
 0x40b   :  { %8181 = vst [vmem:[#allocation20_spill] sm:$0xff] %v6962_v56  ;;  %v3181_v42 = vpop.xlane.xlu0 %3180  ;;  %8182 = vst [vmem:[#allocation56_spill] sm:$0xff] %v6965_v8  ;;  %v6969_v7 = vsub.f32 %v8183_v13, %v2821_v3  ;;  %v3076_v3 = vmul.f32 %v6962_v56, %v6962_v56 }
 0x40c   :  { %4202 = vst [vmem:[#allocation10 + $0x50] sm:$0xff] %v4074_v36  ;;  %v4075_v27 = vadd.f32 %v6825_v10, %v3941_v51  ;;  %v3424_v58 = vmul.f32 0.0078125, %v3181_v42  ;;  %3258 = vadd.xlane.f32.xlu1 %v3079_v63  ;;  %v2826_v36 = vmul.f32 0.0078125, %v6603_v31  ;;  %v2498_v51 = vpop.f32.mrf.mxu0 }
 0x40d   :  { %v5086_v14 = vpop.eup %5085  ;;  %8184 = vst [vmem:[#allocation58_spill] sm:$0xff] %v6969_v7  ;;  %v3183_v53 = vpop.xlane.xlu1 %3182 }
 0x40e   :  { %4203 = vst [vmem:[#allocation10 + $0x58] sm:$0xff] %v4075_v27  ;;  %v3804_v34 = vmul.f32 %v5086_v14, %v6393_v21  ;;  %v3552_v19 = vadd.f32 1e-05, %v3424_v58  ;;  %v3425_v57 = vmul.f32 0.0078125, %v3183_v53  ;;  %2755 = vadd.xlane.f32.xlu0 %v6965_v8  ;;  %v2827_v21 = vmul.f32 0.0078125, %v6609_v12 }
 0x40f   :  { %v5088_v11 = vpop.eup %5087  ;;  %v6977_v63 = vpop.xlane.xlu0 %2695  ;;  %v3077_v53 = vmul.f32 %v6969_v7, %v6969_v7 }
 0x410   :  { %v3938_v42 = vmul.f32 %v6814_v15, %v3804_v34  ;;  %v3805_v13 = vmul.f32 %v5088_v11, %v8186_v48  ;;  %5093 = vrsqrt.f32 %v3552_v19  ;;  %v3553_v27 = vadd.f32 1e-05, %v3425_v57  ;;  %2757 = vadd.xlane.f32.xlu1 %v6972_v52  ;;  %v8187_v34 = vld [vmem:[#allocation23_spill] sm:$0xff]  ;;  %v5015_v19 = vpop.f32.mrf.mxu0 }
 0x411   :  { %v6985_v58 = vpop.xlane.xlu1 %2697  ;;  %v6992_v56 = vsub.f32 %v8187_v34, %v2826_v36  ;;  %v6995_v11 = vadd.f32 %v6533_v6, %v5014_v4  ;;  %v7002_v7 = vadd.f32 %v6533_v6, %v5015_v19  ;;  %v8192_v36 = vld [vmem:[#allocation62_spill] sm:$0xff] }
 0x412   :  { %v4072_v31 = vadd.f32 %v6825_v10, %v3938_v42  ;;  %v3939_v14 = vmul.f32 %v6814_v15, %v3805_v13  ;;  %5095 = vrsqrt.f32 %v3553_v27  ;;  %3252 = vadd.xlane.f32.xlu0 %v3076_v3  ;;  %v8189_v13 = vld [vmem:[#allocation24_spill] sm:$0xff] }
 0x413   :  { %8188 = vst [vmem:[#allocation22_spill] sm:$0xff] %v6992_v56  ;;  %v3193_v57 = vpop.xlane.xlu0 %3192  ;;  %v6999_v27 = vsub.f32 %v8189_v13, %v2827_v21  ;;  %8191 = vst [vmem:[#allocation23_spill] sm:$0xff] %v7002_v7  ;;  %v3082_v21 = vmul.f32 %v6992_v56, %v6992_v56 }
 0x414   :  { %4200 = vst [vmem:[#allocation10 + $0x40] sm:$0xff] %v4072_v31  ;;  %v4073_v12 = vadd.f32 %v6825_v10, %v3939_v14  ;;  %v3430_v48 = vmul.f32 0.0078125, %v3193_v57  ;;  %3254 = vadd.xlane.f32.xlu1 %v3077_v53  ;;  %v2824_v31 = vmul.f32 0.0078125, %v6614_v55  ;;  %v8193_v57 = vld [vmem:[#allocation64_spill] sm:$0xff] }
 0x415   :  { %v5090_v42 = vpop.eup %5089  ;;  %8190 = vst [vmem:[#allocation61_spill] sm:$0xff] %v6999_v27  ;;  %v3195_v3 = vpop.xlane.xlu1 %3194 }
 0x416   :  { %4201 = vst [vmem:[#allocation10 + $0x48] sm:$0xff] %v4073_v12  ;;  %v3810_v34 = vmul.f32 %v5090_v42, %v8192_v36  ;;  %v3558_v52 = vadd.f32 1e-05, %v3430_v48  ;;  %v3431_v8 = vmul.f32 0.0078125, %v3195_v3  ;;  %2767 = vadd.xlane.f32.xlu0 %v6995_v11  ;;  %v2825_v48 = vmul.f32 0.0078125, %v6622_v5  ;;  %v8194_v36 = vld [vmem:[#allocation25_spill] sm:$0xff] }
 0x417   :  { %v5092_v4 = vpop.eup %5091  ;;  %v7007_v14 = vpop.xlane.xlu0 %2691  ;;  %v3083_v3 = vmul.f32 %v6999_v27, %v6999_v27  ;;  %v7026_v5 = vadd.f32 %v6533_v6, %v2498_v51  ;;  %v2831_v27 = vmul.f32 0.0078125, %v6637_v62 }
 0x418   :  { %v3944_v53 = vmul.f32 %v6814_v15, %v3810_v34  ;;  %v3811_v19 = vmul.f32 %v5092_v4, %v8193_v57  ;;  %5097 = vrsqrt.f32 %v3558_v52  ;;  %v3559_v12 = vadd.f32 1e-05, %v3431_v8  ;;  %2769 = vadd.xlane.f32.xlu1 %v7002_v7  ;;  %v2501_v52 = vpop.f32.mrf.mxu0 }
 0x419   :  { %v7015_v42 = vpop.xlane.xlu1 %2693  ;;  %v7022_v34 = vsub.f32 %v8194_v36, %v2824_v31  ;;  %v2830_v8 = vmul.f32 0.0078125, %v6631_v44  ;;  %v7034_v36 = vadd.f32 %v6533_v6, %v2501_v52  ;;  %v8197_v44 = vld [vmem:[#allocation67_spill] sm:$0xff]  ;;  %v8200_v52 = vld [vmem:[#allocation68_spill] sm:$0xff] }
 0x41a   :  { %v4078_v13 = vadd.f32 %v6825_v10, %v3944_v53  ;;  %v3945_v55 = vmul.f32 %v6814_v15, %v3811_v19  ;;  %5099 = vrsqrt.f32 %v3559_v12  ;;  %3264 = vadd.xlane.f32.xlu0 %v3082_v21  ;;  %v8195_v21 = vld [vmem:[#allocation26_spill] sm:$0xff] }
 0x41b   :  { %v3189_v4 = vpop.xlane.xlu0 %3188  ;;  %v7030_v12 = vsub.f32 %v8195_v21, %v2825_v48  ;;  %v2828_v48 = vmul.f32 0.0078125, %v6642_v18  ;;  %v3080_v62 = vmul.f32 %v7022_v34, %v7022_v34 }
 0x41c   :  { %4206 = vst [vmem:[#allocation10 + $0x70] sm:$0xff] %v4078_v13  ;;  %v4079_v53 = vadd.f32 %v6825_v10, %v3945_v55  ;;  %v3428_v57 = vmul.f32 0.0078125, %v3189_v4  ;;  %3266 = vadd.xlane.f32.xlu1 %v3083_v3  ;;  %v8198_v55 = vld [vmem:[#allocation27_spill] sm:$0xff] }
 0x41d   :  { %v5094_v19 = vpop.eup %5093  ;;  %8196 = vst [vmem:[#allocation24_spill] sm:$0xff] %v7030_v12  ;;  %v3191_v31 = vpop.xlane.xlu1 %3190  ;;  %v7039_v3 = vsub.f32 %v8198_v55, %v2830_v8  ;;  %v2829_v8 = vmul.f32 0.0078125, %v6650_v60 }
 0x41e   :  { %4207 = vst [vmem:[#allocation10 + $0x78] sm:$0xff] %v4079_v53  ;;  %v3808_v56 = vmul.f32 %v5094_v19, %v8197_v44  ;;  %v3556_v51 = vadd.f32 1e-05, %v3428_v57  ;;  %v3429_v7 = vmul.f32 0.0078125, %v3191_v31  ;;  %2763 = vadd.xlane.f32.xlu0 %v7026_v5  ;;  %v8201_v19 = vld [vmem:[#allocation28_spill] sm:$0xff] }
 0x41f   :  { %v5096_v13 = vpop.eup %5095  ;;  %8199 = vst [vmem:[#allocation62_spill] sm:$0xff] %v7039_v3  ;;  %v7042_v4 = vpop.xlane.xlu0 %2703  ;;  %v7050_v21 = vsub.f32 %v8201_v19, %v2831_v27  ;;  %v2835_v19 = vmul.f32 0.0078125, %v6665_v0  ;;  %v8208_v0 = vld [vmem:[#allocation72_spill] sm:$0xff] }
 0x420   :  { %v3942_v6 = vmul.f32 %v6814_v15, %v3808_v56  ;;  %v3809_v53 = vmul.f32 %v5096_v13, %v8200_v52  ;;  %5101 = vrsqrt.f32 %v3556_v51  ;;  %v3557_v57 = vadd.f32 1e-05, %v3429_v7  ;;  %2765 = vadd.xlane.f32.xlu1 %v7034_v36  ;;  %v8203_v51 = vld [vmem:[#allocation29_spill] sm:$0xff] }
 0x421   :  { %8202 = vst [vmem:[#allocation64_spill] sm:$0xff] %v7050_v21  ;;  %v7053_v31 = vpop.xlane.xlu1 %2705  ;;  %v3081_v56 = vmul.f32 %v7030_v12, %v7030_v12  ;;  %v7060_v7 = vsub.f32 %v8203_v51, %v2828_v48  ;;  %v2834_v13 = vmul.f32 0.0078125, %v6659_v35  ;;  %v3087_v48 = vmul.f32 %v7050_v21, %v7050_v21  ;;  %v8205_v35 = vld [vmem:[#allocation70_spill] sm:$0xff] }
 0x422   :  { %v4076_v18 = vadd.f32 %v6825_v10, %v3942_v6  ;;  %v3943_v44 = vmul.f32 %v6814_v15, %v3809_v53  ;;  %5103 = vrsqrt.f32 %v3557_v57  ;;  %3260 = vadd.xlane.f32.xlu0 %v3080_v62  ;;  %v3086_v6 = vmul.f32 %v7039_v3, %v7039_v3  ;;  %v8204_v53 = vld [vmem:[#allocation30_spill] sm:$0xff] }
 0x423   :  { %v3201_v27 = vpop.xlane.xlu0 %3200  ;;  %v7067_v62 = vsub.f32 %v8204_v53, %v2829_v8  ;;  %v2832_v3 = vmul.f32 0.0078125, %v6670_v9  ;;  %v3084_v53 = vmul.f32 %v7060_v7, %v7060_v7  ;;  %v8209_v9 = vld [vmem:[#allocation32_spill] sm:$0xff] }
 0x424   :  { %4204 = vst [vmem:[#allocation10 + $0x60] sm:$0xff] %v4076_v18  ;;  %v4077_v60 = vadd.f32 %v6825_v10, %v3943_v44  ;;  %v3434_v55 = vmul.f32 0.0078125, %v3201_v27  ;;  %3262 = vadd.xlane.f32.xlu1 %v3081_v56  ;;  %v8206_v27 = vld [vmem:[#allocation31_spill] sm:$0xff] }
 0x425   :  { %v5098_v52 = vpop.eup %5097  ;;  %v3203_v57 = vpop.xlane.xlu1 %3202  ;;  %v7074_v12 = vsub.f32 %v8206_v27, %v2834_v13  ;;  %v3085_v13 = vmul.f32 %v7067_v62, %v7067_v62 }
 0x426   :  { %4205 = vst [vmem:[#allocation10 + $0x68] sm:$0xff] %v4077_v60  ;;  %v3814_v18 = vmul.f32 %v5098_v52, %v8205_v35  ;;  %v3562_v51 = vadd.f32 1e-05, %v3434_v55  ;;  %v3435_v44 = vmul.f32 0.0078125, %v3203_v57  ;;  %3272 = vadd.xlane.f32.xlu0 %v3086_v6  ;;  %v2833_v55 = vmul.f32 0.0078125, %v6678_v30 }
 0x427   :  { %v5100_v56 = vpop.eup %5099  ;;  %8207 = vst [vmem:[#allocation25_spill] sm:$0xff] %v7074_v12  ;;  %v7077_v8 = vpop.xlane.xlu0 %2699  ;;  %v7089_v57 = vsub.f32 %v8209_v9, %v2835_v19  ;;  %v3090_v19 = vmul.f32 %v7074_v12, %v7074_v12  ;;  %v2836_v12 = vmul.f32 0.0078125, %v6698_v1 }
 0x428   :  { %v3948_v21 = vmul.f32 %v6814_v15, %v3814_v18  ;;  %v3815_v60 = vmul.f32 %v5100_v56, %v8208_v0  ;;  %5105 = vrsqrt.f32 %v3562_v51  ;;  %v3563_v52 = vadd.f32 1e-05, %v3435_v44  ;;  %3274 = vadd.xlane.f32.xlu1 %v3087_v48  ;;  %v8210_v18 = vld [vmem:[#allocation33_spill] sm:$0xff] }
 0x429   :  { %v7084_v6 = vpop.xlane.xlu1 %2701  ;;  %v7094_v51 = vsub.f32 %v8210_v18, %v2832_v3  ;;  %v2838_v48 = vmul.f32 0.0078125, %v6687_v32  ;;  %v8214_v3 = vld [vmem:[#allocation75_spill] sm:$0xff] }
 0x42a   :  { %v4082_v35 = vadd.f32 %v6825_v10, %v3948_v21  ;;  %v3949_v27 = vmul.f32 %v6814_v15, %v3815_v60  ;;  %5107 = vrsqrt.f32 %v3563_v52  ;;  %3268 = vadd.xlane.f32.xlu0 %v3084_v53  ;;  %v8212_v21 = vld [vmem:[#allocation34_spill] sm:$0xff]  ;;  %v2839_v53 = vmul.f32 0.0078125, %v6693_v25 }
 0x42b   :  { %8211 = vst [vmem:[#allocation26_spill] sm:$0xff] %v7094_v51  ;;  %v3197_v30 = vpop.xlane.xlu0 %3196  ;;  %v7101_v9 = vsub.f32 %v8212_v21, %v2833_v55  ;;  %v3088_v25 = vmul.f32 %v7094_v51, %v7094_v51  ;;  %v8218_v21 = vld [vmem:[#allocation36_spill] sm:$0xff] }
 0x42c   :  { %4210 = vst [vmem:[#allocation10 + $0x90] sm:$0xff] %v4082_v35  ;;  %v4083_v44 = vadd.f32 %v6825_v10, %v3949_v27  ;;  %v3432_v56 = vmul.f32 0.0078125, %v3197_v30  ;;  %3270 = vadd.xlane.f32.xlu1 %v3085_v13  ;;  %v3091_v35 = vmul.f32 %v7089_v57, %v7089_v57  ;;  %v8215_v27 = vld [vmem:[#allocation35_spill] sm:$0xff] }
 0x42d   :  { %v5102_v0 = vpop.eup %5101  ;;  %8213 = vst [vmem:[#allocation67_spill] sm:$0xff] %v7101_v9  ;;  %v3199_v60 = vpop.xlane.xlu1 %3198  ;;  %v7108_v30 = vsub.f32 %v8215_v27, %v2838_v48  ;;  %v3089_v1 = vmul.f32 %v7101_v9, %v7101_v9  ;;  %v2837_v48 = vmul.f32 0.0078125, %v6706_v22 }
 0x42e   :  { %4211 = vst [vmem:[#allocation10 + $0x98] sm:$0xff] %v4083_v44  ;;  %v3812_v52 = vmul.f32 %v5102_v0, %v8214_v3  ;;  %v3560_v32 = vadd.f32 1e-05, %v3432_v56  ;;  %v3433_v18 = vmul.f32 0.0078125, %v3199_v60  ;;  %3280 = vadd.xlane.f32.xlu0 %v3090_v19  ;;  %v8217_v0 = vld [vmem:[#allocation76_spill] sm:$0xff]  ;;  %v7118_v60 = vsub.f32 %v8218_v21, %v2839_v53 }
 0x42f   :  { %v5104_v13 = vpop.eup %5103  ;;  %8216 = vst [vmem:[#allocation27_spill] sm:$0xff] %v7108_v30  ;;  %v7111_v55 = vpop.xlane.xlu0 %2711  ;;  %v3094_v22 = vmul.f32 %v7108_v30, %v7108_v30  ;;  %v2840_v30 = vmul.f32 0.0078125, %v6726_v61 }
 0x430   :  { %v3946_v44 = vmul.f32 %v6814_v15, %v3812_v52  ;;  %v3813_v56 = vmul.f32 %v5104_v13, %v8217_v0  ;;  %5109 = vrsqrt.f32 %v3560_v32  ;;  %v3561_v19 = vadd.f32 1e-05, %v3433_v18  ;;  %3282 = vadd.xlane.f32.xlu1 %v3091_v35  ;;  %8219 = vst [vmem:[#allocation68_spill] sm:$0xff] %v7118_v60  ;;  %v8220_v52 = vld [vmem:[#allocation37_spill] sm:$0xff] }
 0x431   :  { %v7120_v3 = vpop.xlane.xlu1 %2713  ;;  %v7128_v32 = vsub.f32 %v8220_v52, %v2836_v12  ;;  %v2842_v18 = vmul.f32 0.0078125, %v6715_v23  ;;  %v8222_v12 = vld [vmem:[#allocation38_spill] sm:$0xff]  ;;  %v8225_v52 = vld [vmem:[#allocation39_spill] sm:$0xff] }
 0x432   :  { %v4080_v27 = vadd.f32 %v6825_v10, %v3946_v44  ;;  %v3947_v51 = vmul.f32 %v6814_v15, %v3813_v56  ;;  %5111 = vrsqrt.f32 %v3561_v19  ;;  %3276 = vadd.xlane.f32.xlu0 %v3088_v25  ;;  %v2843_v44 = vmul.f32 0.0078125, %v6721_v2  ;;  %v8224_v23 = vld [vmem:[#allocation78_spill] sm:$0xff] }
 0x433   :  { %8221 = vst [vmem:[#allocation28_spill] sm:$0xff] %v7128_v32  ;;  %v3209_v53 = vpop.xlane.xlu0 %3208  ;;  %v3095_v25 = vmul.f32 %v7118_v60, %v7118_v60  ;;  %v7138_v19 = vsub.f32 %v8222_v12, %v2837_v48  ;;  %v3092_v60 = vmul.f32 %v7128_v32, %v7128_v32  ;;  %v8227_v12 = vld [vmem:[#allocation80_spill] sm:$0xff] }
 0x434   :  { %4208 = vst [vmem:[#allocation10 + $0x80] sm:$0xff] %v4080_v27  ;;  %v4081_v35 = vadd.f32 %v6825_v10, %v3947_v51  ;;  %v3438_v13 = vmul.f32 0.0078125, %v3209_v53  ;;  %3278 = vadd.xlane.f32.xlu1 %v3089_v1  ;;  %v7142_v53 = vsub.f32 %v8225_v52, %v2842_v18 }
 0x435   :  { %v5106_v0 = vpop.eup %5105  ;;  %v3211_v56 = vpop.xlane.xlu1 %3210  ;;  %8223 = vst [vmem:[#allocation29_spill] sm:$0xff] %v7138_v19 }
 0x436   :  { %4209 = vst [vmem:[#allocation10 + $0x88] sm:$0xff] %v4081_v35  ;;  %v3818_v21 = vmul.f32 %v5106_v0, %v8224_v23  ;;  %v3566_v27 = vadd.f32 1e-05, %v3438_v13  ;;  %v3439_v51 = vmul.f32 0.0078125, %v3211_v56  ;;  %3288 = vadd.xlane.f32.xlu0 %v3094_v22  ;;  %8226 = vst [vmem:[#allocation30_spill] sm:$0xff] %v7142_v53  ;;  %v8228_v13 = vld [vmem:[#allocation40_spill] sm:$0xff] }
 0x437   :  { %v5108_v1 = vpop.eup %5107  ;;  %v7145_v2 = vpop.xlane.xlu0 %2707  ;;  %v7152_v22 = vsub.f32 %v8228_v13, %v2843_v44  ;;  %v8230_v56 = vld [vmem:[#allocation108_spill] sm:$0xff] }
 0x438   :  { %v3952_v48 = vmul.f32 %v6814_v15, %v3818_v21  ;;  %v3819_v35 = vmul.f32 %v5108_v1, %v8227_v12  ;;  %5113 = vrsqrt.f32 %v3566_v27  ;;  %v3567_v0 = vadd.f32 1e-05, %v3439_v51  ;;  %3290 = vadd.xlane.f32.xlu1 %v3095_v25  ;;  %v8231_v1 = vld [vmem:[#allocation41_spill] sm:$0xff]  ;;  %v8232_v25 = vld [vmem:[#allocation111_spill] sm:$0xff] }
 0x439   :  { %8229 = vst [vmem:[#allocation70_spill] sm:$0xff] %v7152_v22  ;;  %v2841_v18 = vmul.f32 0.0078125, %v8230_v56  ;;  %v7155_v23 = vpop.xlane.xlu1 %2709  ;;  %v3093_v21 = vmul.f32 %v7138_v19, %v7138_v19  ;;  %v7162_v27 = vsub.f32 %v8231_v1, %v2840_v30  ;;  %v2846_v51 = vmul.f32 0.0078125, %v8232_v25  ;;  %v8234_v1 = vld [vmem:[#allocation112_spill] sm:$0xff]  ;;  %v8235_v25 = vld [vmem:[#allocation83_spill] sm:$0xff] }
 0x43a   :  { %v4086_v61 = vadd.f32 %v6825_v10, %v3952_v48  ;;  %v3953_v52 = vmul.f32 %v6814_v15, %v3819_v35  ;;  %5115 = vrsqrt.f32 %v3567_v0  ;;  %3284 = vadd.xlane.f32.xlu0 %v3092_v60  ;;  %v3098_v48 = vmul.f32 %v7142_v53, %v7142_v53  ;;  %v8233_v0 = vld [vmem:[#allocation42_spill] sm:$0xff] }
 0x43b   :  { %v3205_v44 = vpop.xlane.xlu0 %3204  ;;  %v7169_v60 = vsub.f32 %v8233_v0, %v2841_v18  ;;  %v3099_v30 = vmul.f32 %v7152_v22, %v7152_v22  ;;  %v2847_v19 = vmul.f32 0.0078125, %v8234_v1  ;;  %v2844_v53 = vmul.f32 0.0078125, %v6767_v41  ;;  %v8238_v1 = vld [vmem:[#allocation84_spill] sm:$0xff] }
 0x43c   :  { %4214 = vst [vmem:[#allocation10 + $0xb0] sm:$0xff] %v4086_v61  ;;  %v4087_v12 = vadd.f32 %v6825_v10, %v3953_v52  ;;  %v3436_v13 = vmul.f32 0.0078125, %v3205_v44  ;;  %3286 = vadd.xlane.f32.xlu1 %v3093_v21  ;;  %v8236_v44 = vld [vmem:[#allocation43_spill] sm:$0xff]  ;;  %v3096_v0 = vmul.f32 %v7162_v27, %v7162_v27  ;;  %v8239_v41 = vld [vmem:[#allocation44_spill] sm:$0xff] }
 0x43d   :  { %v5110_v35 = vpop.eup %5109  ;;  %v3207_v56 = vpop.xlane.xlu1 %3206  ;;  %v7176_v9 = vsub.f32 %v8236_v44, %v2846_v51  ;;  %v3097_v51 = vmul.f32 %v7169_v60, %v7169_v60 }
 0x43e   :  { %4215 = vst [vmem:[#allocation10 + $0xb8] sm:$0xff] %v4087_v12  ;;  %v3816_v61 = vmul.f32 %v5110_v35, %v8235_v25  ;;  %v3564_v32 = vadd.f32 1e-05, %v3436_v13  ;;  %v3437_v52 = vmul.f32 0.0078125, %v3207_v56  ;;  %3296 = vadd.xlane.f32.xlu0 %v3098_v48  ;;  %v2845_v13 = vmul.f32 0.0078125, %v6773_v59 }
 0x43f   :  { %v5112_v21 = vpop.eup %5111  ;;  %8237 = vst [vmem:[#allocation31_spill] sm:$0xff] %v7176_v9  ;;  %v7179_v18 = vpop.xlane.xlu0 %2719  ;;  %v7191_v56 = vsub.f32 %v8239_v41, %v2847_v19  ;;  %v3102_v19 = vmul.f32 %v7176_v9, %v7176_v9  ;;  %v2848_v9 = vmul.f32 0.0078125, %v6827_v29 }
 0x440   :  { %v3950_v22 = vmul.f32 %v6814_v15, %v3816_v61  ;;  %v3817_v12 = vmul.f32 %v5112_v21, %v8238_v1  ;;  %5117 = vrsqrt.f32 %v3564_v32  ;;  %v3565_v35 = vadd.f32 1e-05, %v3437_v52  ;;  %3298 = vadd.xlane.f32.xlu1 %v3099_v30  ;;  %v8240_v61 = vld [vmem:[#allocation45_spill] sm:$0xff] }
 0x441   :  { %v7186_v48 = vpop.xlane.xlu1 %2721  ;;  %v7196_v32 = vsub.f32 %v8240_v61, %v2844_v53  ;;  %v2850_v30 = vmul.f32 0.0078125, %v6792_v45  ;;  %v8243_v53 = vld [vmem:[#allocation86_spill] sm:$0xff] }
 0x442   :  { %v4084_v25 = vadd.f32 %v6825_v10, %v3950_v22  ;;  %v3951_v44 = vmul.f32 %v6814_v15, %v3817_v12  ;;  %5119 = vrsqrt.f32 %v3565_v35  ;;  %3292 = vadd.xlane.f32.xlu0 %v3096_v0  ;;  %v8242_v22 = vld [vmem:[#allocation46_spill] sm:$0xff]  ;;  %v2851_v0 = vmul.f32 0.0078125, %v6798_v28 }
 0x443   :  { %8241 = vst [vmem:[#allocation72_spill] sm:$0xff] %v7196_v32  ;;  %v3217_v59 = vpop.xlane.xlu0 %3216  ;;  %v7203_v41 = vsub.f32 %v8242_v22, %v2845_v13  ;;  %v3100_v28 = vmul.f32 %v7196_v32, %v7196_v32  ;;  %v8247_v22 = vld [vmem:[#allocation49_spill] sm:$0xff] }
 0x444   :  { %4212 = vst [vmem:[#allocation10 + $0xa0] sm:$0xff] %v4084_v25  ;;  %v4085_v52 = vadd.f32 %v6825_v10, %v3951_v44  ;;  %v3442_v21 = vmul.f32 0.0078125, %v3217_v59  ;;  %3294 = vadd.xlane.f32.xlu1 %v3097_v51  ;;  %v3103_v25 = vmul.f32 %v7191_v56, %v7191_v56  ;;  %v8244_v44 = vld [vmem:[#allocation48_spill] sm:$0xff] }
 0x445   :  { %v5114_v1 = vpop.eup %5113  ;;  %v3219_v12 = vpop.xlane.xlu1 %3218  ;;  %v7210_v59 = vsub.f32 %v8244_v44, %v2850_v30  ;;  %v3101_v29 = vmul.f32 %v7203_v41, %v7203_v41  ;;  %v2849_v30 = vmul.f32 0.0078125, %v6835_v24 }
 0x446   :  { %4213 = vst [vmem:[#allocation10 + $0xa8] sm:$0xff] %v4085_v52  ;;  %v3822_v35 = vmul.f32 %v5114_v1, %v8243_v53  ;;  %v3570_v45 = vadd.f32 1e-05, %v3442_v21  ;;  %v3443_v61 = vmul.f32 0.0078125, %v3219_v12  ;;  %3304 = vadd.xlane.f32.xlu0 %v3102_v19  ;;  %v8246_v1 = vld [vmem:[#allocation88_spill] sm:$0xff]  ;;  %v7220_v12 = vsub.f32 %v8247_v22, %v2851_v0 }
 0x447   :  { %v5116_v51 = vpop.eup %5115  ;;  %8245 = vst [vmem:[#allocation32_spill] sm:$0xff] %v7210_v59  ;;  %v7213_v13 = vpop.xlane.xlu0 %2715  ;;  %v3106_v24 = vmul.f32 %v7210_v59, %v7210_v59  ;;  %v2852_v59 = vmul.f32 0.0078125, %v6887_v46 }
 0x448   :  { %v3956_v52 = vmul.f32 %v6814_v15, %v3822_v35  ;;  %v3823_v21 = vmul.f32 %v5116_v51, %v8246_v1  ;;  %5121 = vrsqrt.f32 %v3570_v45  ;;  %v3571_v19 = vadd.f32 1e-05, %v3443_v61  ;;  %3306 = vadd.xlane.f32.xlu1 %v3103_v25  ;;  %8248 = vst [vmem:[#allocation33_spill] sm:$0xff] %v7220_v12  ;;  %v8249_v35 = vld [vmem:[#allocation51_spill] sm:$0xff] }
 0x449   :  { %v7222_v53 = vpop.xlane.xlu1 %2717  ;;  %v7230_v45 = vsub.f32 %v8249_v35, %v2848_v9  ;;  %v2854_v61 = vmul.f32 0.0078125, %v6857_v16  ;;  %v8250_v9 = vld [vmem:[#allocation53_spill] sm:$0xff]  ;;  %v8251_v16 = vld [vmem:[#allocation91_spill] sm:$0xff] }
 0x44a   :  { %v4090_v44 = vadd.f32 %v6825_v10, %v3956_v52  ;;  %v3957_v32 = vmul.f32 %v6814_v15, %v3823_v21  ;;  %5123 = vrsqrt.f32 %v3571_v19  ;;  %3300 = vadd.xlane.f32.xlu0 %v3100_v28  ;;  %v2855_v52 = vmul.f32 0.0078125, %v6865_v47  ;;  %v8252_v35 = vld [vmem:[#allocation55_spill] sm:$0xff] }
 0x44b   :  { %v3213_v0 = vpop.xlane.xlu0 %3212  ;;  %v3107_v28 = vmul.f32 %v7220_v12, %v7220_v12  ;;  %v7240_v19 = vsub.f32 %v8250_v9, %v2849_v30  ;;  %v3104_v12 = vmul.f32 %v7230_v45, %v7230_v45  ;;  %v8254_v9 = vld [vmem:[#allocation92_spill] sm:$0xff] }
 0x44c   :  { %4218 = vst [vmem:[#allocation10 + $0xd0] sm:$0xff] %v4090_v44  ;;  %v4091_v25 = vadd.f32 %v6825_v10, %v3957_v32  ;;  %v3440_v51 = vmul.f32 0.0078125, %v3213_v0  ;;  %3302 = vadd.xlane.f32.xlu1 %v3101_v29  ;;  %v7244_v0 = vsub.f32 %v8252_v35, %v2854_v61  ;;  %v2853_v61 = vmul.f32 0.0078125, %v6895_v38 }
 0x44d   :  { %v5118_v1 = vpop.eup %5117  ;;  %v3215_v21 = vpop.xlane.xlu1 %3214 }
 0x44e   :  { %4219 = vst [vmem:[#allocation10 + $0xd8] sm:$0xff] %v4091_v25  ;;  %v3820_v22 = vmul.f32 %v5118_v1, %v8251_v16  ;;  %v3568_v44 = vadd.f32 1e-05, %v3440_v51  ;;  %v3441_v32 = vmul.f32 0.0078125, %v3215_v21  ;;  %3312 = vadd.xlane.f32.xlu0 %v3106_v24  ;;  %8253 = vst [vmem:[#allocation34_spill] sm:$0xff] %v7244_v0  ;;  %v8255_v51 = vld [vmem:[#allocation57_spill] sm:$0xff]  ;;  %v3110_v35 = vmul.f32 %v7244_v0, %v7244_v0 }
 0x44f   :  { %v5120_v29 = vpop.eup %5119  ;;  %v7247_v47 = vpop.xlane.xlu0 %2727  ;;  %v7254_v24 = vsub.f32 %v8255_v51, %v2855_v52  ;;  %v2856_v0 = vmul.f32 0.0078125, %v6947_v43  ;;  %v8262_v43 = vld [vmem:[#allocation65_spill] sm:$0xff] }
 0x450   :  { %v3954_v30 = vmul.f32 %v6814_v15, %v3820_v22  ;;  %v3821_v25 = vmul.f32 %v5120_v29, %v8254_v9  ;;  %5125 = vrsqrt.f32 %v3568_v44  ;;  %v3569_v1 = vadd.f32 1e-05, %v3441_v32  ;;  %3314 = vadd.xlane.f32.xlu1 %v3107_v28  ;;  %v8257_v29 = vld [vmem:[#allocation59_spill] sm:$0xff]  ;;  %v8258_v9 = vld [vmem:[#allocation60_spill] sm:$0xff] }
 0x451   :  { %8256 = vst [vmem:[#allocation75_spill] sm:$0xff] %v7254_v24  ;;  %v7257_v21 = vpop.xlane.xlu1 %2729  ;;  %v3105_v22 = vmul.f32 %v7240_v19, %v7240_v19  ;;  %v7264_v44 = vsub.f32 %v8257_v29, %v2852_v59  ;;  %v2858_v28 = vmul.f32 0.0078125, %v6917_v33  ;;  %v3111_v59 = vmul.f32 %v7254_v24, %v7254_v24  ;;  %v8259_v33 = vld [vmem:[#allocation94_spill] sm:$0xff]  ;;  %v8260_v29 = vld [vmem:[#allocation63_spill] sm:$0xff] }
 0x452   :  { %v4088_v46 = vadd.f32 %v6825_v10, %v3954_v30  ;;  %v3955_v16 = vmul.f32 %v6814_v15, %v3821_v25  ;;  %5127 = vrsqrt.f32 %v3569_v1  ;;  %3308 = vadd.xlane.f32.xlu0 %v3104_v12  ;;  %v7271_v12 = vsub.f32 %v8258_v9, %v2853_v61 }
 0x453   :  { %v3225_v52 = vpop.xlane.xlu0 %3224  ;;  %v2859_v1 = vmul.f32 0.0078125, %v6925_v37  ;;  %v3108_v9 = vmul.f32 %v7264_v44, %v7264_v44  ;;  %v8261_v37 = vld [vmem:[#allocation96_spill] sm:$0xff] }
 0x454   :  { %4216 = vst [vmem:[#allocation10 + $0xc0] sm:$0xff] %v4088_v46  ;;  %v4089_v38 = vadd.f32 %v6825_v10, %v3955_v16  ;;  %v3446_v32 = vmul.f32 0.0078125, %v3225_v52  ;;  %3310 = vadd.xlane.f32.xlu1 %v3105_v22  ;;  %v7278_v52 = vsub.f32 %v8260_v29, %v2858_v28  ;;  %v3109_v28 = vmul.f32 %v7271_v12, %v7271_v12 }
 0x455   :  { %v5122_v30 = vpop.eup %5121  ;;  %v3227_v25 = vpop.xlane.xlu1 %3226 }
 0x456   :  { %4217 = vst [vmem:[#allocation10 + $0xc8] sm:$0xff] %v4089_v38  ;;  %v3826_v51 = vmul.f32 %v5122_v30, %v8259_v33  ;;  %v3574_v46 = vadd.f32 1e-05, %v3446_v32  ;;  %v3447_v16 = vmul.f32 0.0078125, %v3227_v25  ;;  %3320 = vadd.xlane.f32.xlu0 %v3110_v35  ;;  %v2857_v32 = vmul.f32 0.0078125, %v6955_v17  ;;  %v8263_v17 = vld [vmem:[#allocation66_spill] sm:$0xff] }
 0x457   :  { %v5124_v22 = vpop.eup %5123  ;;  %v7281_v61 = vpop.xlane.xlu0 %2723  ;;  %v7293_v25 = vsub.f32 %v8262_v43, %v2859_v1 }
 0x458   :  { %v3960_v24 = vmul.f32 %v6814_v15, %v3826_v51  ;;  %v3827_v38 = vmul.f32 %v5124_v22, %v8261_v37  ;;  %5129 = vrsqrt.f32 %v3574_v46  ;;  %v3575_v30 = vadd.f32 1e-05, %v3447_v16  ;;  %3322 = vadd.xlane.f32.xlu1 %v3111_v59  ;;  %v7299_v15 = vld [vmem:[%s7891_s7] ss:$0 sm:$0xff]  ;;  %v8265_v37 = vld [vmem:[#allocation69_spill] sm:$0xff] }
 0x459   :  { %v7288_v35 = vpop.xlane.xlu1 %2725  ;;  %v7303_v59 = vsub.f32 %v8263_v17, %v2856_v0  ;;  %v2862_v46 = vmul.f32 0.0078125, %v6977_v63  ;;  %v7310_v43 = vsub.f32 %v8265_v37, %v2857_v32  ;;  %v8267_v0 = vld [vmem:[#allocation99_spill] sm:$0xff]  ;;  %v8271_v37 = vld [vmem:[#allocation73_spill] sm:$0xff] }
 0x45a   :  { %v4094_v33 = vadd.f32 %v6825_v10, %v3960_v24  ;;  %v3961_v51 = vmul.f32 %v7299_v15, %v3827_v38  ;;  %5131 = vrsqrt.f32 %v3575_v30  ;;  %3316 = vadd.xlane.f32.xlu0 %v3108_v9  ;;  %v3114_v24 = vmul.f32 %v7278_v52, %v7278_v52 }
 0x45b   :  { %8264 = vst [vmem:[#allocation35_spill] sm:$0xff] %v7303_v59  ;;  %v3221_v16 = vpop.xlane.xlu0 %3220  ;;  %8266 = vst [vmem:[#allocation76_spill] sm:$0xff] %v7310_v43  ;;  %v2863_v9 = vmul.f32 0.0078125, %v6985_v58  ;;  %v3112_v58 = vmul.f32 %v7303_v59, %v7303_v59 }
 0x45c   :  { %4222 = vst [vmem:[#allocation10 + $0xf0] sm:$0xff] %v4094_v33  ;;  %v4095_v1 = vadd.f32 %v6825_v10, %v3961_v51  ;;  %v3444_v22 = vmul.f32 0.0078125, %v3221_v16  ;;  %3318 = vadd.xlane.f32.xlu1 %v3109_v28  ;;  %v3115_v10 = vmul.f32 %v7293_v25, %v7293_v25  ;;  %v8268_v33 = vld [vmem:[#allocation71_spill] sm:$0xff]  ;;  %v2860_v16 = vmul.f32 0.0078125, %v7007_v14 }
 0x45d   :  { %v5126_v29 = vpop.eup %5125  ;;  %v3223_v38 = vpop.xlane.xlu1 %3222  ;;  %v7317_v51 = vsub.f32 %v8268_v33, %v2862_v46  ;;  %v3113_v14 = vmul.f32 %v7310_v43, %v7310_v43  ;;  %v2861_v46 = vmul.f32 0.0078125, %v7015_v42  ;;  %v7337_v33 = vld [vmem:[%s7892_s8] ss:$0 sm:$0xff] }
 0x45e   :  { %4223 = vst [vmem:[#allocation10 + $0xf8] sm:$0xff] %v4095_v1  ;;  %v3824_v30 = vmul.f32 %v5126_v29, %v8267_v0  ;;  %v3572_v63 = vadd.f32 1e-05, %v3444_v22  ;;  %v3445_v17 = vmul.f32 0.0078125, %v3223_v38  ;;  %3328 = vadd.xlane.f32.xlu0 %v3114_v24  ;;  %v8270_v29 = vld [vmem:[#allocation100_spill] sm:$0xff]  ;;  %v7327_v38 = vsub.f32 %v8271_v37, %v2863_v9  ;;  %v8273_v9 = vld [vmem:[#allocation74_spill] sm:$0xff] }
 0x45f   :  { %v5128_v28 = vpop.eup %5127  ;;  %8269 = vst [vmem:[#allocation36_spill] sm:$0xff] %v7317_v51  ;;  %v7320_v32 = vpop.xlane.xlu0 %2735  ;;  %v3118_v37 = vmul.f32 %v7317_v51, %v7317_v51  ;;  %v2864_v51 = vmul.f32 0.0078125, %v7077_v8 }
 0x460   :  { %v3958_v1 = vmul.f32 %v7299_v15, %v3824_v30  ;;  %v3825_v22 = vmul.f32 %v5128_v28, %v8270_v29  ;;  %5133 = vrsqrt.f32 %v3572_v63  ;;  %v3573_v24 = vadd.f32 1e-05, %v3445_v17  ;;  %3330 = vadd.xlane.f32.xlu1 %v3115_v10  ;;  %8272 = vst [vmem:[#allocation37_spill] sm:$0xff] %v7327_v38 }
 0x461   :  { %v7329_v0 = vpop.xlane.xlu1 %2737  ;;  %v7342_v17 = vsub.f32 %v8273_v9, %v2860_v16  ;;  %v2866_v10 = vmul.f32 0.0078125, %v7042_v4  ;;  %v8274_v16 = vld [vmem:[#allocation77_spill] sm:$0xff]  ;;  %v8275_v4 = vld [vmem:[#allocation102_spill] sm:$0xff] }
 0x462   :  { %v4092_v30 = vadd.f32 %v7337_v33, %v3958_v1  ;;  %v3959_v63 = vmul.f32 %v7299_v15, %v3825_v22  ;;  %5135 = vrsqrt.f32 %v3573_v24  ;;  %3324 = vadd.xlane.f32.xlu0 %v3112_v58  ;;  %v2867_v1 = vmul.f32 0.0078125, %v7053_v31 }
 0x463   :  { %v3233_v28 = vpop.xlane.xlu0 %3232  ;;  %v3119_v58 = vmul.f32 %v7327_v38, %v7327_v38  ;;  %v7352_v24 = vsub.f32 %v8274_v16, %v2861_v46  ;;  %v3116_v38 = vmul.f32 %v7342_v17, %v7342_v17  ;;  %v8278_v16 = vld [vmem:[#allocation104_spill] sm:$0xff] }
 0x464   :  { %4220 = vst [vmem:[#allocation10 + $0xe0] sm:$0xff] %v4092_v30  ;;  %v4093_v42 = vadd.f32 %v7337_v33, %v3959_v63  ;;  %v3450_v29 = vmul.f32 0.0078125, %v3233_v28  ;;  %3326 = vadd.xlane.f32.xlu1 %v3113_v14  ;;  %v8276_v28 = vld [vmem:[#allocation79_spill] sm:$0xff] }
 0x465   :  { %v5130_v43 = vpop.eup %5129  ;;  %v3235_v22 = vpop.xlane.xlu1 %3234  ;;  %v7356_v59 = vsub.f32 %v8276_v28, %v2866_v10  ;;  %v2865_v10 = vmul.f32 0.0078125, %v7084_v6 }
 0x466   :  { %4221 = vst [vmem:[#allocation10 + $0xe8] sm:$0xff] %v4093_v42  ;;  %v3830_v30 = vmul.f32 %v5130_v43, %v8275_v4  ;;  %v3578_v9 = vadd.f32 1e-05, %v3450_v29  ;;  %v3451_v63 = vmul.f32 0.0078125, %v3235_v22  ;;  %3336 = vadd.xlane.f32.xlu0 %v3118_v37  ;;  %v8279_v29 = vld [vmem:[#allocation81_spill] sm:$0xff] }
 0x467   :  { %v5132_v14 = vpop.eup %5131  ;;  %8277 = vst [vmem:[#allocation38_spill] sm:$0xff] %v7356_v59  ;;  %v7359_v31 = vpop.xlane.xlu0 %2731  ;;  %v7366_v37 = vsub.f32 %v8279_v29, %v2867_v1  ;;  %v3122_v28 = vmul.f32 %v7356_v59, %v7356_v59  ;;  %v2868_v59 = vmul.f32 0.0078125, %v7145_v2  ;;  %v8286_v2 = vld [vmem:[#allocation89_spill] sm:$0xff] }
 0x468   :  { %v3964_v46 = vmul.f32 %v7299_v15, %v3830_v30  ;;  %v3831_v42 = vmul.f32 %v5132_v14, %v8278_v16  ;;  %5137 = vrsqrt.f32 %v3578_v9  ;;  %v3579_v43 = vadd.f32 1e-05, %v3451_v63  ;;  %3338 = vadd.xlane.f32.xlu1 %v3119_v58  ;;  %v8281_v14 = vld [vmem:[#allocation82_spill] sm:$0xff]  ;;  %v8282_v16 = vld [vmem:[#allocation85_spill] sm:$0xff] }
 0x469   :  { %8280 = vst [vmem:[#allocation78_spill] sm:$0xff] %v7366_v37  ;;  %v7369_v22 = vpop.xlane.xlu1 %2733  ;;  %v3117_v30 = vmul.f32 %v7352_v24, %v7352_v24  ;;  %v7376_v9 = vsub.f32 %v8281_v14, %v2864_v51  ;;  %v2870_v58 = vmul.f32 0.0078125, %v7111_v55  ;;  %v3123_v51 = vmul.f32 %v7366_v37, %v7366_v37  ;;  %v8283_v55 = vld [vmem:[#allocation107_spill] sm:$0xff] }
 0x46a   :  { %v4098_v8 = vadd.f32 %v7337_v33, %v3964_v46  ;;  %v3965_v4 = vmul.f32 %v7299_v15, %v3831_v42  ;;  %5139 = vrsqrt.f32 %v3579_v43  ;;  %3332 = vadd.xlane.f32.xlu0 %v3116_v38  ;;  %v7383_v38 = vsub.f32 %v8282_v16, %v2865_v10  ;;  %v8284_v14 = vld [vmem:[#allocation87_spill] sm:$0xff] }
 0x46b   :  { %v3229_v1 = vpop.xlane.xlu0 %3228  ;;  %v2871_v43 = vmul.f32 0.0078125, %v7120_v3  ;;  %v3120_v16 = vmul.f32 %v7376_v9, %v7376_v9  ;;  %v8285_v3 = vld [vmem:[#allocation109_spill] sm:$0xff] }
 0x46c   :  { %4226 = vst [vmem:[#allocation10 + $0x110] sm:$0xff] %v4098_v8  ;;  %v4099_v6 = vadd.f32 %v7337_v33, %v3965_v4  ;;  %v3448_v63 = vmul.f32 0.0078125, %v3229_v1  ;;  %3334 = vadd.xlane.f32.xlu1 %v3117_v30  ;;  %v7390_v1 = vsub.f32 %v8284_v14, %v2870_v58  ;;  %v3121_v58 = vmul.f32 %v7383_v38, %v7383_v38 }
 0x46d   :  { %v5134_v46 = vpop.eup %5133  ;;  %v3231_v42 = vpop.xlane.xlu1 %3230 }
 0x46e   :  { %4227 = vst [vmem:[#allocation10 + $0x118] sm:$0xff] %v4099_v6  ;;  %v3828_v29 = vmul.f32 %v5134_v46, %v8283_v55  ;;  %v3576_v8 = vadd.f32 1e-05, %v3448_v63  ;;  %v3449_v4 = vmul.f32 0.0078125, %v3231_v42  ;;  %3344 = vadd.xlane.f32.xlu0 %v3122_v28  ;;  %v2869_v63 = vmul.f32 0.0078125, %v7155_v23 }
 0x46f   :  { %v5136_v30 = vpop.eup %5135  ;;  %v7393_v10 = vpop.xlane.xlu0 %2743  ;;  %v7405_v42 = vsub.f32 %v8286_v2, %v2871_v43  ;;  %v3126_v43 = vmul.f32 %v7390_v1, %v7390_v1 }
 0x470   :  { %v3962_v37 = vmul.f32 %v7299_v15, %v3828_v29  ;;  %v3829_v6 = vmul.f32 %v5136_v30, %v8285_v3  ;;  %5141 = vrsqrt.f32 %v3576_v8  ;;  %v3577_v46 = vadd.f32 1e-05, %v3449_v4  ;;  %3346 = vadd.xlane.f32.xlu1 %v3123_v51  ;;  %v8287_v29 = vld [vmem:[#allocation90_spill] sm:$0xff] }
 0x471   :  { %v7400_v28 = vpop.xlane.xlu1 %2745  ;;  %v7410_v8 = vsub.f32 %v8287_v29, %v2868_v59  ;;  %v2874_v51 = vmul.f32 0.0078125, %v7179_v18 }
 0x472   :  { %v4096_v55 = vadd.f32 %v7337_v33, %v3962_v37  ;;  %v3963_v14 = vmul.f32 %v7299_v15, %v3829_v6  ;;  %5143 = vrsqrt.f32 %v3577_v46  ;;  %3340 = vadd.xlane.f32.xlu0 %v3120_v16  ;;  %v8288_v37 = vld [vmem:[#allocation93_spill] sm:$0xff]  ;;  %v2875_v16 = vmul.f32 0.0078125, %v7186_v48 }
 0x473   :  { %v3241_v23 = vpop.xlane.xlu0 %3240  ;;  %v7417_v2 = vsub.f32 %v8288_v37, %v2869_v63  ;;  %v3124_v48 = vmul.f32 %v7410_v8, %v7410_v8 }
 0x474   :  { %4224 = vst [vmem:[#allocation10 + $0x100] sm:$0xff] %v4096_v55  ;;  %v4097_v4 = vadd.f32 %v7337_v33, %v3963_v14  ;;  %v3454_v30 = vmul.f32 0.0078125, %v3241_v23  ;;  %3342 = vadd.xlane.f32.xlu1 %v3121_v58  ;;  %v3127_v55 = vmul.f32 %v7405_v42, %v7405_v42  ;;  %v8289_v14 = vld [vmem:[#allocation95_spill] sm:$0xff]  ;;  %v2872_v23 = vmul.f32 0.0078125, %v7213_v13 }
 0x475   :  { %v5138_v3 = vpop.eup %5137  ;;  %v3243_v6 = vpop.xlane.xlu1 %3242  ;;  %v7424_v29 = vsub.f32 %v8289_v14, %v2874_v51  ;;  %v3125_v13 = vmul.f32 %v7417_v2, %v7417_v2  ;;  %v2873_v51 = vmul.f32 0.0078125, %v7222_v53 }
 0x476   :  { %4225 = vst [vmem:[#allocation10 + $0x108] sm:$0xff] %v4097_v4  ;;  %v3834_v59 = vmul.f32 %v5138_v3, %v6755_v54  ;;  %v3582_v18 = vadd.f32 1e-05, %v3454_v30  ;;  %v3455_v46 = vmul.f32 0.0078125, %v3243_v6  ;;  %3352 = vadd.xlane.f32.xlu0 %v3126_v43  ;;  %v8290_v43 = vld [vmem:[#allocation97_spill] sm:$0xff] }
 0x477   :  { %v5140_v58 = vpop.eup %5139  ;;  %v7427_v63 = vpop.xlane.xlu0 %2739  ;;  %v7434_v3 = vsub.f32 %v8290_v43, %v2875_v16  ;;  %v3130_v53 = vmul.f32 %v7424_v29, %v7424_v29 }
 0x478   :  { %v3968_v4 = vmul.f32 %v7299_v15, %v3834_v59  ;;  %v3835_v54 = vmul.f32 %v5140_v58, %v6761_v49  ;;  %5145 = vrsqrt.f32 %v3582_v18  ;;  %v3583_v30 = vadd.f32 1e-05, %v3455_v46  ;;  %3354 = vadd.xlane.f32.xlu1 %v3127_v55  ;;  %v8292_v49 = vld [vmem:[#allocation98_spill] sm:$0xff] }
 0x479   :  { %8291 = vst [vmem:[#allocation39_spill] sm:$0xff] %v7434_v3  ;;  %v7436_v37 = vpop.xlane.xlu1 %2741  ;;  %v7444_v59 = vsub.f32 %v8292_v49, %v2872_v23  ;;  %v2878_v18 = vmul.f32 0.0078125, %v7247_v47  ;;  %v8293_v23 = vld [vmem:[#allocation101_spill] sm:$0xff] }
 0x47a   :  { %v4102_v6 = vadd.f32 %v7337_v33, %v3968_v4  ;;  %v3969_v14 = vmul.f32 %v7299_v15, %v3835_v54  ;;  %5147 = vrsqrt.f32 %v3583_v30  ;;  %3348 = vadd.xlane.f32.xlu0 %v3124_v48  ;;  %v2879_v4 = vmul.f32 0.0078125, %v7257_v21 }
 0x47b   :  { %v3237_v16 = vpop.xlane.xlu0 %3236  ;;  %v3131_v48 = vmul.f32 %v7434_v3, %v7434_v3  ;;  %v7454_v30 = vsub.f32 %v8293_v23, %v2873_v51  ;;  %v3128_v3 = vmul.f32 %v7444_v59, %v7444_v59 }
 0x47c   :  { %4230 = vst [vmem:[#allocation10 + $0x130] sm:$0xff] %v4102_v6  ;;  %v4103_v46 = vadd.f32 %v7337_v33, %v3969_v14  ;;  %v3452_v55 = vmul.f32 0.0078125, %v3237_v16  ;;  %3350 = vadd.xlane.f32.xlu1 %v3125_v13  ;;  %v8294_v14 = vld [vmem:[#allocation103_spill] sm:$0xff]  ;;  %v2876_v16 = vmul.f32 0.0078125, %v7281_v61 }
 0x47d   :  { %v5142_v58 = vpop.eup %5141  ;;  %v3239_v54 = vpop.xlane.xlu1 %3238  ;;  %v7458_v49 = vsub.f32 %v8294_v14, %v2878_v18  ;;  %v2877_v18 = vmul.f32 0.0078125, %v7288_v35  ;;  %v3129_v23 = vmul.f32 %v7454_v30, %v7454_v30  ;;  %v8298_v14 = vld [vmem:[#allocation110_spill] sm:$0xff] }
 0x47e   :  { %4231 = vst [vmem:[#allocation10 + $0x138] sm:$0xff] %v4103_v46  ;;  %v3832_v47 = vmul.f32 %v5142_v58, %v6782_v20  ;;  %v3580_v43 = vadd.f32 1e-05, %v3452_v55  ;;  %v3453_v6 = vmul.f32 0.0078125, %v3239_v54  ;;  %3360 = vadd.xlane.f32.xlu0 %v3130_v53  ;;  %v8295_v55 = vld [vmem:[#allocation105_spill] sm:$0xff] }
 0x47f   :  { %v5144_v13 = vpop.eup %5143  ;;  %v7461_v21 = vpop.xlane.xlu0 %2751  ;;  %v7468_v53 = vsub.f32 %v8295_v55, %v2879_v4 }
 0x480   :  { %v3966_v51 = vmul.f32 %v7299_v15, %v3832_v47  ;;  %v3833_v46 = vmul.f32 %v5144_v13, %v6785_v39  ;;  %5149 = vrsqrt.f32 %v3580_v43  ;;  %v3581_v20 = vadd.f32 1e-05, %v3453_v6  ;;  %3362 = vadd.xlane.f32.xlu1 %v3131_v48  ;;  %v8297_v39 = vld [vmem:[#allocation106_spill] sm:$0xff] }
 0x481   :  { %8296 = vst [vmem:[#allocation80_spill] sm:$0xff] %v7468_v53  ;;  %v7471_v58 = vpop.xlane.xlu1 %2753  ;;  %v7478_v47 = vsub.f32 %v8297_v39, %v2876_v16  ;;  %v2882_v48 = vmul.f32 0.0078125, %v7320_v32  ;;  %v3134_v6 = vmul.f32 %v7458_v49, %v7458_v49  ;;  %v3135_v16 = vmul.f32 %v7468_v53, %v7468_v53  ;;  %v8299_v32 = vld [vmem:[#allocation117_spill] sm:$0xff] }
 0x482   :  { %v4100_v61 = vadd.f32 %v7337_v33, %v3966_v51  ;;  %v3967_v54 = vmul.f32 %v7299_v15, %v3833_v46  ;;  %5151 = vrsqrt.f32 %v3581_v20  ;;  %3356 = vadd.xlane.f32.xlu0 %v3128_v3  ;;  %v7485_v3 = vsub.f32 %v8298_v14, %v2877_v18 }
 0x483   :  { %v3249_v4 = vpop.xlane.xlu0 %3248  ;;  %v2883_v46 = vmul.f32 0.0078125, %v7329_v0  ;;  %v3132_v14 = vmul.f32 %v7478_v47, %v7478_v47 }
 0x484   :  { %4228 = vst [vmem:[#allocation10 + $0x120] sm:$0xff] %v4100_v61  ;;  %v4101_v35 = vadd.f32 %v7337_v33, %v3967_v54  ;;  %v3458_v43 = vmul.f32 0.0078125, %v3249_v4  ;;  %3358 = vadd.xlane.f32.xlu1 %v3129_v23  ;;  %v8300_v23 = vld [vmem:[#allocation113_spill] sm:$0xff]  ;;  %v2880_v4 = vmul.f32 0.0078125, %v7359_v31  ;;  %v8301_v31 = vld [vmem:[#allocation114_spill] sm:$0xff] }
 0x485   :  { %v5146_v13 = vpop.eup %5145  ;;  %v3251_v51 = vpop.xlane.xlu1 %3250  ;;  %v7492_v39 = vsub.f32 %v8300_v23, %v2882_v48  ;;  %v3133_v48 = vmul.f32 %v7485_v3, %v7485_v3 }
 0x486   :  { %4229 = vst [vmem:[#allocation10 + $0x128] sm:$0xff] %v4101_v35  ;;  %v3838_v20 = vmul.f32 %v5146_v13, %v8299_v32  ;;  %v3586_v55 = vadd.f32 1e-05, %v3458_v43  ;;  %v3459_v61 = vmul.f32 0.0078125, %v3251_v51  ;;  %3368 = vadd.xlane.f32.xlu0 %v3134_v6  ;;  %v2881_v43 = vmul.f32 0.0078125, %v7369_v22 }
 0x487   :  { %v5148_v54 = vpop.eup %5147  ;;  %v7495_v18 = vpop.xlane.xlu0 %2747  ;;  %v7507_v13 = vsub.f32 %v8301_v31, %v2883_v46  ;;  %v3138_v46 = vmul.f32 %v7492_v39, %v7492_v39 }
 0x488   :  { %v3972_v53 = vmul.f32 %v7299_v15, %v3838_v20  ;;  %v3839_v0 = vmul.f32 %v5148_v54, %v6809_v40  ;;  %5153 = vrsqrt.f32 %v3586_v55  ;;  %v3587_v35 = vadd.f32 1e-05, %v3459_v61  ;;  %3370 = vadd.xlane.f32.xlu1 %v3135_v16  ;;  %v8302_v40 = vld [vmem:[#allocation115_spill] sm:$0xff] }
 0x489   :  { %v7502_v6 = vpop.xlane.xlu1 %2749  ;;  %v7512_v20 = vsub.f32 %v8302_v40, %v2880_v4  ;;  %v2886_v16 = vmul.f32 0.0078125, %v7393_v10  ;;  %v3139_v31 = vmul.f32 %v7507_v13, %v7507_v13  ;;  %v2884_v40 = vmul.f32 0.0078125, %v7427_v63 }
 0x48a   :  { %v4106_v51 = vadd.f32 %v7337_v33, %v3972_v53  ;;  %v3973_v32 = vmul.f32 %v7299_v15, %v3839_v0  ;;  %5155 = vrsqrt.f32 %v3587_v35  ;;  %3364 = vadd.xlane.f32.xlu0 %v3132_v14  ;;  %v8303_v53 = vld [vmem:[#allocation116_spill] sm:$0xff]  ;;  %v2887_v14 = vmul.f32 0.0078125, %v7400_v28 }
 0x48b   :  { %v3245_v22 = vpop.xlane.xlu0 %3244  ;;  %v7519_v23 = vsub.f32 %v8303_v53, %v2881_v43  ;;  %v3136_v28 = vmul.f32 %v7512_v20, %v7512_v20  ;;  %v2885_v63 = vmul.f32 0.0078125, %v7436_v37 }
 0x48c   :  { %4234 = vst [vmem:[#allocation10 + $0x150] sm:$0xff] %v4106_v51  ;;  %v4107_v55 = vadd.f32 %v7337_v33, %v3973_v32  ;;  %v3456_v61 = vmul.f32 0.0078125, %v3245_v22  ;;  %3366 = vadd.xlane.f32.xlu1 %v3133_v48  ;;  %v8305_v51 = vld [vmem:[#allocation118_spill] sm:$0xff] }
 0x48d   :  { %v5150_v54 = vpop.eup %5149  ;;  %8304 = vst [vmem:[#allocation40_spill] sm:$0xff] %v7519_v23  ;;  %v3247_v0 = vpop.xlane.xlu1 %3246  ;;  %v7526_v32 = vsub.f32 %v8305_v51, %v2886_v16  ;;  %v3137_v16 = vmul.f32 %v7519_v23, %v7519_v23 }
 0x48e   :  { %4235 = vst [vmem:[#allocation10 + $0x158] sm:$0xff] %v4107_v55  ;;  %v3836_v4 = vmul.f32 %v5150_v54, %v6842_v50  ;;  %v3584_v10 = vadd.f32 1e-05, %v3456_v61  ;;  %v3457_v35 = vmul.f32 0.0078125, %v3247_v0  ;;  %3376 = vadd.xlane.f32.xlu0 %v3138_v46  ;;  %v8307_v55 = vld [vmem:[#allocation121_spill] sm:$0xff]  ;;  %v8308_v46 = vld [vmem:[#allocation119_spill] sm:$0xff] }
 0x48f   :  { %v5152_v48 = vpop.eup %5151  ;;  %8306 = vst [vmem:[#allocation108_spill] sm:$0xff] %v7526_v32  ;;  %v2760_v43 = vpop.xlane.xlu0 %2759  ;;  %v7534_v54 = vsub.f32 %v8308_v46, %v2887_v14  ;;  %v3142_v37 = vmul.f32 %v7526_v32, %v7526_v32  ;;  %v2888_v32 = vmul.f32 0.0078125, %v7495_v18 }
 0x490   :  { %v3970_v22 = vmul.f32 %v7299_v15, %v3836_v4  ;;  %v3837_v50 = vmul.f32 %v5152_v48, %v8307_v55  ;;  %5157 = vrsqrt.f32 %v3584_v10  ;;  %v3585_v61 = vadd.f32 1e-05, %v3457_v35  ;;  %3378 = vadd.xlane.f32.xlu1 %v3139_v31  ;;  %v8310_v4 = vld [vmem:[#allocation120_spill] sm:$0xff] }
 0x491   :  { %8309 = vst [vmem:[#allocation41_spill] sm:$0xff] %v7534_v54  ;;  %v2762_v53 = vpop.xlane.xlu1 %2761  ;;  %v7542_v48 = vsub.f32 %v8310_v4, %v2884_v40  ;;  %v2890_v10 = vmul.f32 0.0078125, %v7461_v21  ;;  %v8311_v40 = vld [vmem:[#allocation122_spill] sm:$0xff]  ;;  %v8312_v21 = vld [vmem:[#allocation47_spill] sm:$0xff] }
 0x492   :  { %v4104_v0 = vadd.f32 %v7337_v33, %v3970_v22  ;;  %v3971_v51 = vmul.f32 %v7299_v15, %v3837_v50  ;;  %5159 = vrsqrt.f32 %v3585_v61  ;;  %3372 = vadd.xlane.f32.xlu0 %v3136_v28  ;;  %v2891_v22 = vmul.f32 0.0078125, %v7471_v58  ;;  %v8313_v4 = vld [vmem:[#allocation15_spill] sm:$0xff] }
 0x493   :  { %v3257_v35 = vpop.xlane.xlu0 %3256  ;;  %v3143_v28 = vmul.f32 %v7534_v54, %v7534_v54  ;;  %v7552_v61 = vsub.f32 %v8311_v40, %v2885_v63  ;;  %v3140_v23 = vmul.f32 %v7542_v48, %v7542_v48  ;;  %v8315_v63 = vld [vmem:[#allocation16_spill] sm:$0xff] }
 0x494   :  { %4232 = vst [vmem:[#allocation10 + $0x140] sm:$0xff] %v4104_v0  ;;  %v4105_v14 = vadd.f32 %v7337_v33, %v3971_v51  ;;  %v3462_v31 = vmul.f32 0.0078125, %v3257_v35  ;;  %3374 = vadd.xlane.f32.xlu1 %v3137_v16  ;;  %v7556_v35 = vsub.f32 %v8313_v4, %v2890_v10  ;;  %v8319_v4 = vld [vmem:[#allocation124_spill] sm:$0xff] }
 0x495   :  { %v5154_v55 = vpop.eup %5153  ;;  %v3259_v50 = vpop.xlane.xlu1 %3258 }
 0x496   :  { %4233 = vst [vmem:[#allocation10 + $0x148] sm:$0xff] %v4105_v14  ;;  %v3842_v46 = vmul.f32 %v5154_v55, %v8312_v21  ;;  %v3590_v0 = vadd.f32 1e-05, %v3462_v31  ;;  %v3463_v51 = vmul.f32 0.0078125, %v3259_v50  ;;  %3384 = vadd.xlane.f32.xlu0 %v3142_v37  ;;  %8314 = vst [vmem:[#allocation111_spill] sm:$0xff] %v7556_v35  ;;  %v8316_v31 = vld [vmem:[#allocation123_spill] sm:$0xff]  ;;  %v3141_v21 = vmul.f32 %v7552_v61, %v7552_v61 }
 0x497   :  { %v5156_v16 = vpop.eup %5155  ;;  %v2756_v58 = vpop.xlane.xlu0 %2755  ;;  %v7564_v55 = vsub.f32 %v8316_v31, %v2891_v22  ;;  %v2889_v37 = vmul.f32 0.0078125, %v7502_v6  ;;  %v3146_v6 = vmul.f32 %v7556_v35, %v7556_v35  ;;  %v8321_v35 = vld [vmem:[#allocation18_spill] sm:$0xff] }
 0x498   :  { %v3976_v54 = vmul.f32 %v7299_v15, %v3842_v46  ;;  %v3843_v40 = vmul.f32 %v5156_v16, %v8315_v63  ;;  %5161 = vrsqrt.f32 %v3590_v0  ;;  %v3591_v14 = vadd.f32 1e-05, %v3463_v51  ;;  %3386 = vadd.xlane.f32.xlu1 %v3143_v28  ;;  %v8318_v46 = vld [vmem:[#allocation17_spill] sm:$0xff] }
 0x499   :  { %8317 = vst [vmem:[#allocation42_spill] sm:$0xff] %v7564_v55  ;;  %v2758_v10 = vpop.xlane.xlu1 %2757  ;;  %v7572_v16 = vsub.f32 %v8318_v46, %v2888_v32  ;;  %v2894_v0 = vmul.f32 0.0078125, %v2760_v43  ;;  %v7578_v63 = vsub.f32 %v8319_v4, %v2889_v37  ;;  %v8320_v32 = vld [vmem:[#allocation50_spill] sm:$0xff]  ;;  %v2892_v46 = vmul.f32 0.0078125, %v2756_v58 }
 0x49a   :  { %v4110_v50 = vadd.f32 %v7337_v33, %v3976_v54  ;;  %v3977_v18 = vmul.f32 %v7299_v15, %v3843_v40  ;;  %5163 = vrsqrt.f32 %v3591_v14  ;;  %3380 = vadd.xlane.f32.xlu0 %v3140_v23  ;;  %v3147_v40 = vmul.f32 %v7564_v55, %v7564_v55 }
 0x49b   :  { %v3253_v28 = vpop.xlane.xlu0 %3252  ;;  %v2895_v14 = vmul.f32 0.0078125, %v2762_v53  ;;  %v3144_v37 = vmul.f32 %v7572_v16, %v7572_v16  ;;  %v2893_v53 = vmul.f32 0.0078125, %v2758_v10 }
 0x49c   :  { %4238 = vst [vmem:[#allocation10 + $0x170] sm:$0xff] %v4110_v50  ;;  %v4111_v22 = vadd.f32 %v7337_v33, %v3977_v18  ;;  %v3460_v51 = vmul.f32 0.0078125, %v3253_v28  ;;  %3382 = vadd.xlane.f32.xlu1 %v3141_v21  ;;  %v7584_v21 = vsub.f32 %v6935_v26, %v2894_v0  ;;  %v8322_v0 = vld [vmem:[#allocation19_spill] sm:$0xff] }
 0x49d   :  { %v5158_v54 = vpop.eup %5157  ;;  %v3255_v23 = vpop.xlane.xlu1 %3254 }
 0x49e   :  { %4239 = vst [vmem:[#allocation10 + $0x178] sm:$0xff] %v4111_v22  ;;  %v3840_v43 = vmul.f32 %v5158_v54, %v8320_v32  ;;  %v3588_v31 = vadd.f32 1e-05, %v3460_v51  ;;  %v3461_v50 = vmul.f32 0.0078125, %v3255_v23  ;;  %3392 = vadd.xlane.f32.xlu0 %v3146_v6  ;;  %v3145_v6 = vmul.f32 %v7578_v63, %v7578_v63  ;;  %v8323_v23 = vld [vmem:[#allocation56_spill] sm:$0xff] }
 0x49f   :  { %v5160_v18 = vpop.eup %5159  ;;  %v2768_v28 = vpop.xlane.xlu0 %2767  ;;  %v7595_v54 = vsub.f32 %v8322_v0, %v2895_v14  ;;  %v7598_v32 = vsub.f32 %v8323_v23, %v2892_v46  ;;  %v8327_v23 = vld [vmem:[#allocation54_spill] sm:$0xff] }
 0x4a0   :  { %v3974_v4 = vmul.f32 %v7299_v15, %v3840_v43  ;;  %v3841_v55 = vmul.f32 %v5160_v18, %v8321_v35  ;;  %5165 = vrsqrt.f32 %v3588_v31  ;;  %v3589_v22 = vadd.f32 1e-05, %v3461_v50  ;;  %3394 = vadd.xlane.f32.xlu1 %v3147_v40  ;;  %v8325_v50 = vld [vmem:[#allocation21_spill] sm:$0xff]  ;;  %v8326_v18 = vld [vmem:[#allocation52_spill] sm:$0xff] }
 0x4a1   :  { %v2770_v51 = vpop.xlane.xlu1 %2769  ;;  %8324 = vst [vmem:[#allocation112_spill] sm:$0xff] %v7598_v32  ;;  %v3150_v43 = vmul.f32 %v7584_v21, %v7584_v21 }
 0x4a2   :  { %v4108_v26 = vadd.f32 %v7337_v33, %v3974_v4  ;;  %v3975_v58 = vmul.f32 %v7299_v15, %v3841_v55  ;;  %5167 = vrsqrt.f32 %v3589_v22  ;;  %3388 = vadd.xlane.f32.xlu0 %v3144_v37  ;;  %v7604_v55 = vsub.f32 %v8325_v50, %v2893_v53 }
 0x4a3   :  { %v3265_v35 = vpop.xlane.xlu0 %3264  ;;  %v3151_v22 = vmul.f32 %v7595_v54, %v7595_v54 }
 0x4a4   :  { %4236 = vst [vmem:[#allocation10 + $0x160] sm:$0xff] %v4108_v26  ;;  %v4109_v10 = vadd.f32 %v7337_v33, %v3975_v58  ;;  %v3466_v40 = vmul.f32 0.0078125, %v3265_v35  ;;  %3390 = vadd.xlane.f32.xlu1 %v3145_v6  ;;  %v3148_v6 = vmul.f32 %v7598_v32, %v7598_v32 }
 0x4a5   :  { %v5162_v31 = vpop.eup %5161  ;;  %v3267_v14 = vpop.xlane.xlu1 %3266 }
 0x4a6   :  { %4237 = vst [vmem:[#allocation10 + $0x168] sm:$0xff] %v4109_v10  ;;  %v3846_v37 = vmul.f32 %v5162_v31, %v8326_v18  ;;  %v3594_v4 = vadd.f32 1e-05, %v3466_v40  ;;  %v3467_v46 = vmul.f32 0.0078125, %v3267_v14  ;;  %3400 = vadd.xlane.f32.xlu0 %v3150_v43  ;;  %v2898_v10 = vmul.f32 0.0078125, %v2768_v28 }
 0x4a7   :  { %v5164_v26 = vpop.eup %5163  ;;  %v2764_v58 = vpop.xlane.xlu0 %2763  ;;  %v2899_v31 = vmul.f32 0.0078125, %v2770_v51  ;;  %v3149_v43 = vmul.f32 %v7604_v55, %v7604_v55 }
 0x4a8   :  { %v3980_v0 = vmul.f32 %v7299_v15, %v3846_v37  ;;  %v3847_v53 = vmul.f32 %v5164_v26, %v8327_v23  ;;  %5169 = vrsqrt.f32 %v3594_v4  ;;  %v3595_v35 = vadd.f32 1e-05, %v3467_v46  ;;  %3402 = vadd.xlane.f32.xlu1 %v3151_v22  ;;  %v8329_v23 = vld [vmem:[#allocation20_spill] sm:$0xff] }
 0x4a9   :  { %v2896_v40 = vmul.f32 0.0078125, %v2764_v58  ;;  %v2766_v50 = vpop.xlane.xlu1 %2765  ;;  %v7625_v26 = vsub.f32 %v6995_v11, %v2898_v10  ;;  %v8328_v58 = vld [vmem:[#allocation23_spill] sm:$0xff]  ;;  %v8330_v10 = vld [vmem:[#allocation58_spill] sm:$0xff] }
 0x4aa   :  { %v4114_v14 = vadd.f32 %v7337_v33, %v3980_v0  ;;  %v3981_v18 = vmul.f32 %v7299_v15, %v3847_v53  ;;  %5171 = vrsqrt.f32 %v3595_v35  ;;  %v2897_v32 = vmul.f32 0.0078125, %v2766_v50  ;;  %3396 = vadd.xlane.f32.xlu0 %v3148_v6 }
 0x4ab   :  { %v7618_v37 = vsub.f32 %v7026_v5, %v2896_v40  ;;  %v3261_v4 = vpop.xlane.xlu0 %3260  ;;  %v7628_v0 = vsub.f32 %v8328_v58, %v2899_v31 }
 0x4ac   :  { %4242 = vst [vmem:[#allocation10 + $0x190] sm:$0xff] %v4114_v14  ;;  %v4115_v28 = vadd.f32 %v7337_v33, %v3981_v18  ;;  %v7622_v51 = vsub.f32 %v7034_v36, %v2897_v32  ;;  %v3464_v46 = vmul.f32 0.0078125, %v3261_v4  ;;  %3398 = vadd.xlane.f32.xlu1 %v3149_v43  ;;  %v3154_v4 = vmul.f32 %v7625_v26, %v7625_v26 }
 0x4ad   :  { %v5166_v22 = vpop.eup %5165  ;;  %v3263_v6 = vpop.xlane.xlu1 %3262  ;;  %v3152_v5 = vmul.f32 %v7618_v37, %v7618_v37 }
 0x4ae   :  { %4243 = vst [vmem:[#allocation10 + $0x198] sm:$0xff] %v4115_v28  ;;  %v3844_v53 = vmul.f32 %v5166_v22, %v8329_v23  ;;  %v3592_v35 = vadd.f32 1e-05, %v3464_v46  ;;  %v3465_v40 = vmul.f32 0.0078125, %v3263_v6  ;;  %v3153_v36 = vmul.f32 %v7622_v51, %v7622_v51 }
 0x4af   :  { %v5168_v32 = vpop.eup %5167  ;;  %3404 = vadd.xlane.f32.xlu0 %v3152_v5  ;;  %v3273_v50 = vpop.xlane.xlu0 %3272  ;;  %v3155_v28 = vmul.f32 %v7628_v0, %v7628_v0 }
 0x4b0   :  { %v3978_v11 = vmul.f32 %v7299_v15, %v3844_v53  ;;  %v3845_v31 = vmul.f32 %v5168_v32, %v8330_v10  ;;  %5173 = vrsqrt.f32 %v3592_v35  ;;  %v3593_v43 = vadd.f32 1e-05, %v3465_v40  ;;  %3406 = vadd.xlane.f32.xlu1 %v3153_v36  ;;  %v8331_v32 = vld [vmem:[#allocation22_spill] sm:$0xff] }
 0x4b1   :  { %v3470_v14 = vmul.f32 0.0078125, %v3273_v50  ;;  %v3275_v18 = vpop.xlane.xlu1 %3274 }
 0x4b2   :  { %v4112_v46 = vadd.f32 %v7337_v33, %v3978_v11  ;;  %v3979_v22 = vmul.f32 %v7299_v15, %v3845_v31  ;;  %5175 = vrsqrt.f32 %v3593_v43  ;;  %v3471_v58 = vmul.f32 0.0078125, %v3275_v18  ;;  %v8332_v18 = vld [vmem:[#allocation61_spill] sm:$0xff] }
 0x4b3   :  { %v3598_v6 = vadd.f32 1e-05, %v3470_v14  ;;  %3408 = vadd.xlane.f32.xlu0 %v3154_v4  ;;  %v3269_v5 = vpop.xlane.xlu0 %3268 }
 0x4b4   :  { %4240 = vst [vmem:[#allocation10 + $0x180] sm:$0xff] %v4112_v46  ;;  %v4113_v23 = vadd.f32 %v7337_v33, %v3979_v22  ;;  %v3599_v53 = vadd.f32 1e-05, %v3471_v58  ;;  %v3468_v35 = vmul.f32 0.0078125, %v3269_v5  ;;  %3410 = vadd.xlane.f32.xlu1 %v3155_v28 }
 0x4b5   :  { %v5170_v40 = vpop.eup %5169  ;;  %5177 = vrsqrt.f32 %v3598_v6  ;;  %v3271_v36 = vpop.xlane.xlu1 %3270 }
 0x4b6   :  { %4241 = vst [vmem:[#allocation10 + $0x188] sm:$0xff] %v4113_v23  ;;  %v3850_v50 = vmul.f32 %v5170_v40, %v8331_v32  ;;  %5179 = vrsqrt.f32 %v3599_v53  ;;  %v3596_v11 = vadd.f32 1e-05, %v3468_v35  ;;  %v3469_v10 = vmul.f32 0.0078125, %v3271_v36 }
 0x4b7   :  { %v5172_v31 = vpop.eup %5171  ;;  %v3281_v43 = vpop.xlane.xlu0 %3280 }
 0x4b8   :  { %v3984_v14 = vmul.f32 %v7299_v15, %v3850_v50  ;;  %v3851_v4 = vmul.f32 %v5172_v31, %v8332_v18  ;;  %5181 = vrsqrt.f32 %v3596_v11  ;;  %v3597_v46 = vadd.f32 1e-05, %v3469_v10 }
 0x4b9   :  { %v3474_v22 = vmul.f32 0.0078125, %v3281_v43  ;;  %v3283_v58 = vpop.xlane.xlu1 %3282 }
 0x4ba   :  { %v4118_v28 = vadd.f32 %v7337_v33, %v3984_v14  ;;  %v3985_v6 = vmul.f32 %v7299_v15, %v3851_v4  ;;  %5183 = vrsqrt.f32 %v3597_v46  ;;  %v3475_v5 = vmul.f32 0.0078125, %v3283_v58  ;;  %v8333_v4 = vld [vmem:[#allocation24_spill] sm:$0xff] }
 0x4bb   :  { %v3602_v23 = vadd.f32 1e-05, %v3474_v22  ;;  %v3277_v53 = vpop.xlane.xlu0 %3276 }
 0x4bc   :  { %4246 = vst [vmem:[#allocation10 + $0x1b0] sm:$0xff] %v4118_v28  ;;  %v4119_v35 = vadd.f32 %v7337_v33, %v3985_v6  ;;  %v3603_v40 = vadd.f32 1e-05, %v3475_v5  ;;  %v3472_v36 = vmul.f32 0.0078125, %v3277_v53 }
 0x4bd   :  { %v5174_v32 = vpop.eup %5173  ;;  %5185 = vrsqrt.f32 %v3602_v23  ;;  %v3279_v50 = vpop.xlane.xlu1 %3278 }
 0x4be   :  { %4247 = vst [vmem:[#allocation10 + $0x1b8] sm:$0xff] %v4119_v35  ;;  %v3848_v11 = vmul.f32 %v5174_v32, %v7022_v34  ;;  %5187 = vrsqrt.f32 %v3603_v40  ;;  %v3600_v10 = vadd.f32 1e-05, %v3472_v36  ;;  %v3473_v31 = vmul.f32 0.0078125, %v3279_v50  ;;  %v8334_v35 = vld [vmem:[#allocation62_spill] sm:$0xff] }
 0x4bf   :  { %v5176_v43 = vpop.eup %5175  ;;  %v3289_v14 = vpop.xlane.xlu0 %3288 }
 0x4c0   :  { %v3982_v18 = vmul.f32 %v7299_v15, %v3848_v11  ;;  %v3849_v46 = vmul.f32 %v5176_v43, %v8333_v4  ;;  %5189 = vrsqrt.f32 %v3600_v10  ;;  %v3601_v22 = vadd.f32 1e-05, %v3473_v31  ;;  %v8335_v11 = vld [vmem:[#allocation64_spill] sm:$0xff] }
 0x4c1   :  { %v3478_v58 = vmul.f32 0.0078125, %v3289_v14  ;;  %v3291_v28 = vpop.xlane.xlu1 %3290 }
 0x4c2   :  { %v5178_v6 = vpop.eup %5177  ;;  %v4116_v5 = vadd.f32 %v7337_v33, %v3982_v18  ;;  %v3983_v23 = vmul.f32 %v7299_v15, %v3849_v46  ;;  %5191 = vrsqrt.f32 %v3601_v22  ;;  %v3479_v34 = vmul.f32 0.0078125, %v3291_v28 }
 0x4c3   :  { %v5180_v53 = vpop.eup %5179  ;;  %v3854_v40 = vmul.f32 %v5178_v6, %v8334_v35  ;;  %v3606_v36 = vadd.f32 1e-05, %v3478_v58  ;;  %v3285_v32 = vpop.xlane.xlu0 %3284 }
 0x4c4   :  { %4244 = vst [vmem:[#allocation10 + $0x1a0] sm:$0xff] %v4116_v5  ;;  %v4117_v50 = vadd.f32 %v7337_v33, %v3983_v23  ;;  %v3855_v10 = vmul.f32 %v5180_v53, %v8335_v11  ;;  %v3607_v31 = vadd.f32 1e-05, %v3479_v34  ;;  %v3476_v43 = vmul.f32 0.0078125, %v3285_v32 }
 0x4c5   :  { %v5182_v14 = vpop.eup %5181  ;;  %v3988_v4 = vmul.f32 %v7299_v15, %v3854_v40  ;;  %5193 = vrsqrt.f32 %v3606_v36  ;;  %v3287_v18 = vpop.xlane.xlu1 %3286 }
 0x4c6   :  { %4245 = vst [vmem:[#allocation10 + $0x1a8] sm:$0xff] %v4117_v50  ;;  %v3989_v46 = vmul.f32 %v7299_v15, %v3855_v10  ;;  %v3852_v22 = vmul.f32 %v5182_v14, %v7060_v7  ;;  %5195 = vrsqrt.f32 %v3607_v31  ;;  %v3604_v58 = vadd.f32 1e-05, %v3476_v43  ;;  %v8336_v43 = vld [vmem:[#allocation25_spill] sm:$0xff] }
 0x4c7   :  { %v5184_v28 = vpop.eup %5183  ;;  %v4122_v6 = vadd.f32 %v7337_v33, %v3988_v4  ;;  %v3477_v5 = vmul.f32 0.0078125, %v3287_v18  ;;  %v3297_v23 = vpop.xlane.xlu0 %3296 }
 0x4c8   :  { %v4123_v34 = vadd.f32 %v7337_v33, %v3989_v46  ;;  %v3986_v53 = vmul.f32 %v7299_v15, %v3852_v22  ;;  %v3853_v35 = vmul.f32 %v5184_v28, %v7067_v62  ;;  %5197 = vrsqrt.f32 %v3604_v58 }
 0x4c9   :  { %4250 = vst [vmem:[#allocation10 + $0x1d0] sm:$0xff] %v4122_v6  ;;  %v3605_v40 = vadd.f32 1e-05, %v3477_v5  ;;  %v3482_v36 = vmul.f32 0.0078125, %v3297_v23  ;;  %v3299_v32 = vpop.xlane.xlu1 %3298 }
 0x4ca   :  { %v5186_v50 = vpop.eup %5185  ;;  %4251 = vst [vmem:[#allocation10 + $0x1d8] sm:$0xff] %v4123_v34  ;;  %v4120_v7 = vadd.f32 %v7337_v33, %v3986_v53  ;;  %v3987_v11 = vmul.f32 %v7299_v15, %v3853_v35  ;;  %v3483_v10 = vmul.f32 0.0078125, %v3299_v32  ;;  %v8337_v34 = vld [vmem:[#allocation26_spill] sm:$0xff] }
 0x4cb   :  { %v5188_v31 = vpop.eup %5187  ;;  %v3858_v14 = vmul.f32 %v5186_v50, %v8336_v43  ;;  %5199 = vrsqrt.f32 %v3605_v40  ;;  %v3610_v4 = vadd.f32 1e-05, %v3482_v36  ;;  %v3293_v18 = vpop.xlane.xlu0 %3292 }
 0x4cc   :  { %4248 = vst [vmem:[#allocation10 + $0x1c0] sm:$0xff] %v4120_v7  ;;  %v4121_v62 = vadd.f32 %v7337_v33, %v3987_v11  ;;  %v3859_v46 = vmul.f32 %v5188_v31, %v7089_v57  ;;  %v3611_v22 = vadd.f32 1e-05, %v3483_v10  ;;  %v3480_v58 = vmul.f32 0.0078125, %v3293_v18  ;;  %v8338_v11 = vld [vmem:[#allocation67_spill] sm:$0xff] }
 0x4cd   :  { %v5190_v28 = vpop.eup %5189  ;;  %v3992_v6 = vmul.f32 %v7299_v15, %v3858_v14  ;;  %5201 = vrsqrt.f32 %v3610_v4  ;;  %v3295_v5 = vpop.xlane.xlu1 %3294 }
 0x4ce   :  { %4249 = vst [vmem:[#allocation10 + $0x1c8] sm:$0xff] %v4121_v62  ;;  %v3993_v23 = vmul.f32 %v7299_v15, %v3859_v46  ;;  %v3856_v53 = vmul.f32 %v5190_v28, %v8337_v34  ;;  %5203 = vrsqrt.f32 %v3611_v22  ;;  %v3608_v35 = vadd.f32 1e-05, %v3480_v58  ;;  %v7681_v62 = vld [vmem:[%s7891_s7] ss:$0 sm:$0xff]  ;;  %v8340_v34 = vld [vmem:[#allocation68_spill] sm:$0xff] }
 0x4cf   :  { %v5192_v40 = vpop.eup %5191  ;;  %v4126_v36 = vadd.f32 %v7337_v33, %v3992_v6  ;;  %v3481_v32 = vmul.f32 0.0078125, %v3295_v5  ;;  %v3305_v50 = vpop.xlane.xlu0 %3304  ;;  %v8339_v58 = vld [vmem:[#allocation27_spill] sm:$0xff] }
 0x4d0   :  { %v4127_v57 = vadd.f32 %v7337_v33, %v3993_v23  ;;  %v3990_v7 = vmul.f32 %v7299_v15, %v3856_v53  ;;  %v3857_v10 = vmul.f32 %v5192_v40, %v8338_v11  ;;  %5205 = vrsqrt.f32 %v3608_v35 }
 0x4d1   :  { %4254 = vst [vmem:[#allocation10 + $0x1f0] sm:$0xff] %v4126_v36  ;;  %v3609_v31 = vadd.f32 1e-05, %v3481_v32  ;;  %v3486_v43 = vmul.f32 0.0078125, %v3305_v50  ;;  %v3307_v14 = vpop.xlane.xlu1 %3306 }
 0x4d2   :  { %v5194_v4 = vpop.eup %5193  ;;  %4255 = vst [vmem:[#allocation10 + $0x1f8] sm:$0xff] %v4127_v57  ;;  %v4124_v18 = vadd.f32 %v7337_v33, %v3990_v7  ;;  %v3991_v46 = vmul.f32 %v7681_v62, %v3857_v10  ;;  %v3487_v22 = vmul.f32 0.0078125, %v3307_v14  ;;  %v8341_v7 = vld [vmem:[#allocation28_spill] sm:$0xff] }
 0x4d3   :  { %v5196_v15 = vpop.eup %5195  ;;  %v3862_v28 = vmul.f32 %v5194_v4, %v8339_v58  ;;  %5207 = vrsqrt.f32 %v3609_v31  ;;  %v3614_v6 = vadd.f32 1e-05, %v3486_v43  ;;  %v3301_v5 = vpop.xlane.xlu0 %3300 }
 0x4d4   :  { %4252 = vst [vmem:[#allocation10 + $0x1e0] sm:$0xff] %v4124_v18  ;;  %v4125_v23 = vadd.f32 %v7337_v33, %v3991_v46  ;;  %v3863_v53 = vmul.f32 %v5196_v15, %v8340_v34  ;;  %v3615_v35 = vadd.f32 1e-05, %v3487_v22  ;;  %v3484_v40 = vmul.f32 0.0078125, %v3301_v5  ;;  %v8342_v15 = vld [vmem:[#allocation29_spill] sm:$0xff] }
 0x4d5   :  { %v5198_v36 = vpop.eup %5197  ;;  %v3996_v32 = vmul.f32 %v7681_v62, %v3862_v28  ;;  %5209 = vrsqrt.f32 %v3614_v6  ;;  %v3303_v50 = vpop.xlane.xlu1 %3302 }
 0x4d6   :  { %4253 = vst [vmem:[#allocation10 + $0x1e8] sm:$0xff] %v4125_v23  ;;  %v3997_v57 = vmul.f32 %v7681_v62, %v3863_v53  ;;  %v3860_v11 = vmul.f32 %v5198_v36, %v8341_v7  ;;  %5211 = vrsqrt.f32 %v3615_v35  ;;  %v3612_v10 = vadd.f32 1e-05, %v3484_v40  ;;  %v7697_v23 = vld [vmem:[%s7892_s8] ss:$0 sm:$0xff]  ;;  %v8343_v36 = vld [vmem:[#allocation30_spill] sm:$0xff] }
 0x4d7   :  { %v4130_v31 = vadd.f32 %v7337_v33, %v3996_v32  ;;  %v3485_v43 = vmul.f32 0.0078125, %v3303_v50  ;;  %v3313_v14 = vpop.xlane.xlu0 %3312 }
 0x4d8   :  { %v5200_v4 = vpop.eup %5199  ;;  %v4131_v18 = vadd.f32 %v7337_v33, %v3997_v57  ;;  %v3994_v46 = vmul.f32 %v7681_v62, %v3860_v11  ;;  %5213 = vrsqrt.f32 %v3612_v10  ;;  %v3490_v22 = vmul.f32 0.0078125, %v3313_v14  ;;  %v8344_v57 = vld [vmem:[#allocation70_spill] sm:$0xff] }
 0x4d9   :  { %4258 = vst [vmem:[#allocation10 + $0x210] sm:$0xff] %v4130_v31  ;;  %v3861_v58 = vmul.f32 %v5200_v4, %v8342_v15  ;;  %v3613_v28 = vadd.f32 1e-05, %v3485_v43  ;;  %v3315_v6 = vpop.xlane.xlu1 %3314 }
 0x4da   :  { %v5202_v5 = vpop.eup %5201  ;;  %4259 = vst [vmem:[#allocation10 + $0x218] sm:$0xff] %v4131_v18  ;;  %v4128_v34 = vadd.f32 %v7697_v23, %v3994_v46  ;;  %v3618_v53 = vadd.f32 1e-05, %v3490_v22  ;;  %v3491_v33 = vmul.f32 0.0078125, %v3315_v6 }
 0x4db   :  { %v5204_v35 = vpop.eup %5203  ;;  %v3995_v40 = vmul.f32 %v7681_v62, %v3861_v58  ;;  %v3866_v32 = vmul.f32 %v5202_v5, %v8343_v36  ;;  %5215 = vrsqrt.f32 %v3613_v28  ;;  %v3309_v50 = vpop.xlane.xlu0 %3308 }
 0x4dc   :  { %4256 = vst [vmem:[#allocation10 + $0x200] sm:$0xff] %v4128_v34  ;;  %v3867_v7 = vmul.f32 %v5204_v35, %v8344_v57  ;;  %5217 = vrsqrt.f32 %v3618_v53  ;;  %v3619_v11 = vadd.f32 1e-05, %v3491_v33  ;;  %v3488_v10 = vmul.f32 0.0078125, %v3309_v50 }
 0x4dd   :  { %v5206_v31 = vpop.eup %5205  ;;  %v4129_v43 = vadd.f32 %v7697_v23, %v3995_v40  ;;  %v4000_v14 = vmul.f32 %v7681_v62, %v3866_v32  ;;  %v3311_v4 = vpop.xlane.xlu1 %3310 }
 0x4de   :  { %v4001_v18 = vmul.f32 %v7681_v62, %v3867_v7  ;;  %v3864_v46 = vmul.f32 %v5206_v31, %v7162_v27  ;;  %5219 = vrsqrt.f32 %v3619_v11  ;;  %v3616_v22 = vadd.f32 1e-05, %v3488_v10  ;;  %v8345_v11 = vld [vmem:[#allocation31_spill] sm:$0xff] }
 0x4df   :  { %4257 = vst [vmem:[#allocation10 + $0x208] sm:$0xff] %v4129_v43  ;;  %v4134_v15 = vadd.f32 %v7697_v23, %v4000_v14  ;;  %v3489_v58 = vmul.f32 0.0078125, %v3311_v4  ;;  %v3321_v28 = vpop.xlane.xlu0 %3320 }
 0x4e0   :  { %v5208_v6 = vpop.eup %5207  ;;  %v4135_v5 = vadd.f32 %v7697_v23, %v4001_v18  ;;  %v3998_v34 = vmul.f32 %v7681_v62, %v3864_v46  ;;  %5221 = vrsqrt.f32 %v3616_v22  ;;  %v3494_v53 = vmul.f32 0.0078125, %v3321_v28 }
 0x4e1   :  { %4262 = vst [vmem:[#allocation10 + $0x230] sm:$0xff] %v4134_v15  ;;  %v3865_v33 = vmul.f32 %v5208_v6, %v7169_v60  ;;  %v3617_v35 = vadd.f32 1e-05, %v3489_v58  ;;  %v3323_v40 = vpop.xlane.xlu1 %3322  ;;  %v8346_v58 = vld [vmem:[#allocation72_spill] sm:$0xff] }
 0x4e2   :  { %v5210_v27 = vpop.eup %5209  ;;  %4263 = vst [vmem:[#allocation10 + $0x238] sm:$0xff] %v4135_v5  ;;  %v4132_v36 = vadd.f32 %v7697_v23, %v3998_v34  ;;  %v3622_v32 = vadd.f32 1e-05, %v3494_v53  ;;  %v3495_v50 = vmul.f32 0.0078125, %v3323_v40 }
 0x4e3   :  { %v5212_v57 = vpop.eup %5211  ;;  %v3999_v7 = vmul.f32 %v7681_v62, %v3865_v33  ;;  %v3870_v10 = vmul.f32 %v5210_v27, %v8345_v11  ;;  %5223 = vrsqrt.f32 %v3617_v35  ;;  %v3317_v31 = vpop.xlane.xlu0 %3316 }
 0x4e4   :  { %4260 = vst [vmem:[#allocation10 + $0x220] sm:$0xff] %v4132_v36  ;;  %v3871_v43 = vmul.f32 %v5212_v57, %v7191_v56  ;;  %5225 = vrsqrt.f32 %v3622_v32  ;;  %v3623_v60 = vadd.f32 1e-05, %v3495_v50  ;;  %v3492_v14 = vmul.f32 0.0078125, %v3317_v31 }
 0x4e5   :  { %v5214_v4 = vpop.eup %5213  ;;  %v4133_v18 = vadd.f32 %v7697_v23, %v3999_v7  ;;  %v4004_v46 = vmul.f32 %v7681_v62, %v3870_v10  ;;  %v3319_v22 = vpop.xlane.xlu1 %3318  ;;  %v8347_v7 = vld [vmem:[#allocation32_spill] sm:$0xff] }
 0x4e6   :  { %v4005_v15 = vmul.f32 %v7681_v62, %v3871_v43  ;;  %v3868_v28 = vmul.f32 %v5214_v4, %v8346_v58  ;;  %5227 = vrsqrt.f32 %v3623_v60  ;;  %v3620_v6 = vadd.f32 1e-05, %v3492_v14 }
 0x4e7   :  { %4261 = vst [vmem:[#allocation10 + $0x228] sm:$0xff] %v4133_v18  ;;  %v4138_v5 = vadd.f32 %v7697_v23, %v4004_v46  ;;  %v3493_v34 = vmul.f32 0.0078125, %v3319_v22  ;;  %v3329_v56 = vpop.xlane.xlu0 %3328  ;;  %v8348_v18 = vld [vmem:[#allocation33_spill] sm:$0xff] }
 0x4e8   :  { %v5216_v53 = vpop.eup %5215  ;;  %v4139_v33 = vadd.f32 %v7697_v23, %v4005_v15  ;;  %v4002_v35 = vmul.f32 %v7681_v62, %v3868_v28  ;;  %5229 = vrsqrt.f32 %v3620_v6  ;;  %v3498_v40 = vmul.f32 0.0078125, %v3329_v56 }
 0x4e9   :  { %v5218_v27 = vpop.eup %5217  ;;  %4266 = vst [vmem:[#allocation10 + $0x250] sm:$0xff] %v4138_v5  ;;  %v3869_v36 = vmul.f32 %v5216_v53, %v7203_v41  ;;  %v3621_v32 = vadd.f32 1e-05, %v3493_v34  ;;  %v3331_v50 = vpop.xlane.xlu1 %3330 }
 0x4ea   :  { %4267 = vst [vmem:[#allocation10 + $0x258] sm:$0xff] %v4139_v33  ;;  %v4136_v57 = vadd.f32 %v7697_v23, %v4002_v35  ;;  %v3874_v11 = vmul.f32 %v5218_v27, %v8347_v7  ;;  %v3626_v10 = vadd.f32 1e-05, %v3498_v40  ;;  %v3499_v31 = vmul.f32 0.0078125, %v3331_v50 }
 0x4eb   :  { %v5220_v43 = vpop.eup %5219  ;;  %v4003_v60 = vmul.f32 %v7681_v62, %v3869_v36  ;;  %5231 = vrsqrt.f32 %v3621_v32  ;;  %v3325_v14 = vpop.xlane.xlu0 %3324 }
 0x4ec   :  { %4264 = vst [vmem:[#allocation10 + $0x240] sm:$0xff] %v4136_v57  ;;  %v4008_v4 = vmul.f32 %v7681_v62, %v3874_v11  ;;  %v3875_v46 = vmul.f32 %v5220_v43, %v8348_v18  ;;  %5233 = vrsqrt.f32 %v3626_v10  ;;  %v3627_v41 = vadd.f32 1e-05, %v3499_v31  ;;  %v8349_v11 = vld [vmem:[#allocation34_spill] sm:$0xff] }
 0x4ed   :  { %v5222_v22 = vpop.eup %5221  ;;  %v4137_v15 = vadd.f32 %v7697_v23, %v4003_v60  ;;  %v3496_v58 = vmul.f32 0.0078125, %v3325_v14  ;;  %v3327_v28 = vpop.xlane.xlu1 %3326 }
 0x4ee   :  { %v4142_v6 = vadd.f32 %v7697_v23, %v4008_v4  ;;  %v4009_v5 = vmul.f32 %v7681_v62, %v3875_v46  ;;  %v3872_v34 = vmul.f32 %v5222_v22, %v7230_v45  ;;  %5235 = vrsqrt.f32 %v3627_v41  ;;  %v8350_v46 = vld [vmem:[#allocation75_spill] sm:$0xff] }
 0x4ef   :  { %4265 = vst [vmem:[#allocation10 + $0x248] sm:$0xff] %v4137_v15  ;;  %v3624_v56 = vadd.f32 1e-05, %v3496_v58  ;;  %v3497_v53 = vmul.f32 0.0078125, %v3327_v28  ;;  %v3337_v33 = vpop.xlane.xlu0 %3336 }
 0x4f0   :  { %v5224_v35 = vpop.eup %5223  ;;  %4270 = vst [vmem:[#allocation10 + $0x270] sm:$0xff] %v4142_v6  ;;  %v4143_v40 = vadd.f32 %v7697_v23, %v4009_v5  ;;  %v4006_v27 = vmul.f32 %v7681_v62, %v3872_v34  ;;  %v3502_v36 = vmul.f32 0.0078125, %v3337_v33 }
 0x4f1   :  { %v5226_v32 = vpop.eup %5225  ;;  %v3873_v50 = vmul.f32 %v5224_v35, %v7240_v19  ;;  %5237 = vrsqrt.f32 %v3624_v56  ;;  %v3625_v57 = vadd.f32 1e-05, %v3497_v53  ;;  %v3339_v7 = vpop.xlane.xlu1 %3338 }
 0x4f2   :  { %4271 = vst [vmem:[#allocation10 + $0x278] sm:$0xff] %v4143_v40  ;;  %v4140_v45 = vadd.f32 %v7697_v23, %v4006_v27  ;;  %v3878_v10 = vmul.f32 %v5226_v32, %v8349_v11  ;;  %v3630_v31 = vadd.f32 1e-05, %v3502_v36  ;;  %v3503_v43 = vmul.f32 0.0078125, %v3339_v7 }
 0x4f3   :  { %v5228_v60 = vpop.eup %5227  ;;  %v4007_v14 = vmul.f32 %v7681_v62, %v3873_v50  ;;  %5239 = vrsqrt.f32 %v3625_v57  ;;  %v3333_v4 = vpop.xlane.xlu0 %3332 }
 0x4f4   :  { %4268 = vst [vmem:[#allocation10 + $0x260] sm:$0xff] %v4140_v45  ;;  %v4012_v18 = vmul.f32 %v7681_v62, %v3878_v10  ;;  %v3879_v19 = vmul.f32 %v5228_v60, %v8350_v46  ;;  %5241 = vrsqrt.f32 %v3630_v31  ;;  %v3631_v41 = vadd.f32 1e-05, %v3503_v43 }
 0x4f5   :  { %v5230_v22 = vpop.eup %5229  ;;  %v4141_v15 = vadd.f32 %v7697_v23, %v4007_v14  ;;  %v3500_v58 = vmul.f32 0.0078125, %v3333_v4  ;;  %v3335_v28 = vpop.xlane.xlu1 %3334 }
 0x4f6   :  { %v4146_v6 = vadd.f32 %v7697_v23, %v4012_v18  ;;  %v4013_v5 = vmul.f32 %v7681_v62, %v3879_v19  ;;  %v3876_v34 = vmul.f32 %v5230_v22, %v7264_v44  ;;  %5243 = vrsqrt.f32 %v3631_v41 }
 0x4f7   :  { %4269 = vst [vmem:[#allocation10 + $0x268] sm:$0xff] %v4141_v15  ;;  %v3628_v56 = vadd.f32 1e-05, %v3500_v58  ;;  %v3501_v53 = vmul.f32 0.0078125, %v3335_v28  ;;  %v3345_v33 = vpop.xlane.xlu0 %3344  ;;  %v8351_v58 = vld [vmem:[#allocation35_spill] sm:$0xff] }
 0x4f8   :  { %v5232_v35 = vpop.eup %5231  ;;  %4274 = vst [vmem:[#allocation10 + $0x290] sm:$0xff] %v4146_v6  ;;  %v4147_v40 = vadd.f32 %v7697_v23, %v4013_v5  ;;  %v4010_v27 = vmul.f32 %v7681_v62, %v3876_v34  ;;  %v3506_v36 = vmul.f32 0.0078125, %v3345_v33 }
 0x4f9   :  { %v5234_v32 = vpop.eup %5233  ;;  %v3877_v50 = vmul.f32 %v5232_v35, %v7271_v12  ;;  %5245 = vrsqrt.f32 %v3628_v56  ;;  %v3629_v57 = vadd.f32 1e-05, %v3501_v53  ;;  %v3347_v7 = vpop.xlane.xlu1 %3346 }
 0x4fa   :  { %4275 = vst [vmem:[#allocation10 + $0x298] sm:$0xff] %v4147_v40  ;;  %v4144_v44 = vadd.f32 %v7697_v23, %v4010_v27  ;;  %v3882_v45 = vmul.f32 %v5234_v32, %v7278_v52  ;;  %v3634_v11 = vadd.f32 1e-05, %v3506_v36  ;;  %v3507_v10 = vmul.f32 0.0078125, %v3347_v7  ;;  %v8352_v40 = vld [vmem:[#allocation76_spill] sm:$0xff] }
 0x4fb   :  { %v5236_v31 = vpop.eup %5235  ;;  %v4011_v43 = vmul.f32 %v7681_v62, %v3877_v50  ;;  %5247 = vrsqrt.f32 %v3629_v57  ;;  %v3341_v60 = vpop.xlane.xlu0 %3340  ;;  %v8353_v32 = vld [vmem:[#allocation36_spill] sm:$0xff] }
 0x4fc   :  { %4272 = vst [vmem:[#allocation10 + $0x280] sm:$0xff] %v4144_v44  ;;  %v4016_v14 = vmul.f32 %v7681_v62, %v3882_v45  ;;  %v3883_v12 = vmul.f32 %v5236_v31, %v7293_v25  ;;  %5249 = vrsqrt.f32 %v3634_v11  ;;  %v3635_v4 = vadd.f32 1e-05, %v3507_v10 }
 0x4fd   :  { %v4145_v18 = vadd.f32 %v7697_v23, %v4011_v43  ;;  %v3504_v46 = vmul.f32 0.0078125, %v3341_v60  ;;  %v3343_v19 = vpop.xlane.xlu1 %3342  ;;  %v8354_v43 = vld [vmem:[#allocation37_spill] sm:$0xff] }
 0x4fe   :  { %v5238_v41 = vpop.eup %5237  ;;  %v4150_v52 = vadd.f32 %v7697_v23, %v4016_v14  ;;  %v4017_v22 = vmul.f32 %v7681_v62, %v3883_v12  ;;  %5251 = vrsqrt.f32 %v3635_v4  ;;  %v3505_v15 = vmul.f32 0.0078125, %v3343_v19 }
 0x4ff   :  { %4273 = vst [vmem:[#allocation10 + $0x288] sm:$0xff] %v4145_v18  ;;  %v3880_v28 = vmul.f32 %v5238_v41, %v8351_v58  ;;  %v3632_v6 = vadd.f32 1e-05, %v3504_v46  ;;  %v3353_v5 = vpop.xlane.xlu0 %3352 }
 0x500   :  { %v5240_v34 = vpop.eup %5239  ;;  %4278 = vst [vmem:[#allocation10 + $0x2b0] sm:$0xff] %v4150_v52  ;;  %v4151_v25 = vadd.f32 %v7697_v23, %v4017_v22  ;;  %v3633_v56 = vadd.f32 1e-05, %v3505_v15  ;;  %v3510_v53 = vmul.f32 0.0078125, %v3353_v5 }
 0x501   :  { %v5242_v33 = vpop.eup %5241  ;;  %v4014_v35 = vmul.f32 %v7681_v62, %v3880_v28  ;;  %v3881_v27 = vmul.f32 %v5240_v34, %v8352_v40  ;;  %5253 = vrsqrt.f32 %v3632_v6  ;;  %v3355_v36 = vpop.xlane.xlu1 %3354 }
 0x502   :  { %4279 = vst [vmem:[#allocation10 + $0x2b8] sm:$0xff] %v4151_v25  ;;  %v3886_v50 = vmul.f32 %v5242_v33, %v8353_v32  ;;  %5255 = vrsqrt.f32 %v3633_v56  ;;  %v3638_v57 = vadd.f32 1e-05, %v3510_v53  ;;  %v3511_v7 = vmul.f32 0.0078125, %v3355_v36 }
 0x503   :  { %v5244_v44 = vpop.eup %5243  ;;  %v4148_v45 = vadd.f32 %v7697_v23, %v4014_v35  ;;  %v4015_v11 = vmul.f32 %v7681_v62, %v3881_v27  ;;  %v3349_v10 = vpop.xlane.xlu0 %3348  ;;  %v8355_v35 = vld [vmem:[#allocation38_spill] sm:$0xff] }
 0x504   :  { %v4020_v31 = vmul.f32 %v7681_v62, %v3886_v50  ;;  %v3887_v60 = vmul.f32 %v5244_v44, %v8354_v43  ;;  %5257 = vrsqrt.f32 %v3638_v57  ;;  %v3639_v14 = vadd.f32 1e-05, %v3511_v7  ;;  %v8356_v44 = vld [vmem:[#allocation78_spill] sm:$0xff] }
 0x505   :  { %4276 = vst [vmem:[#allocation10 + $0x2a0] sm:$0xff] %v4148_v45  ;;  %v4149_v12 = vadd.f32 %v7697_v23, %v4015_v11  ;;  %v3508_v4 = vmul.f32 0.0078125, %v3349_v10  ;;  %v3351_v18 = vpop.xlane.xlu1 %3350 }
 0x506   :  { %v5246_v46 = vpop.eup %5245  ;;  %v4154_v19 = vadd.f32 %v7697_v23, %v4020_v31  ;;  %v4021_v41 = vmul.f32 %v7681_v62, %v3887_v60  ;;  %5259 = vrsqrt.f32 %v3639_v14  ;;  %v3509_v52 = vmul.f32 0.0078125, %v3351_v18 }
 0x507   :  { %4277 = vst [vmem:[#allocation10 + $0x2a8] sm:$0xff] %v4149_v12  ;;  %v3884_v22 = vmul.f32 %v5246_v46, %v7342_v17  ;;  %v3636_v15 = vadd.f32 1e-05, %v3508_v4  ;;  %v3361_v58 = vpop.xlane.xlu0 %3360 }
 0x508   :  { %v5248_v28 = vpop.eup %5247  ;;  %4282 = vst [vmem:[#allocation10 + $0x2d0] sm:$0xff] %v4154_v19  ;;  %v4155_v6 = vadd.f32 %v7697_v23, %v4021_v41  ;;  %v3637_v5 = vadd.f32 1e-05, %v3509_v52  ;;  %v3514_v34 = vmul.f32 0.0078125, %v3361_v58 }
 0x509   :  { %v5250_v25 = vpop.eup %5249  ;;  %v4018_v56 = vmul.f32 %v7681_v62, %v3884_v22  ;;  %v3885_v53 = vmul.f32 %v5248_v28, %v7352_v24  ;;  %5261 = vrsqrt.f32 %v3636_v15  ;;  %v3363_v33 = vpop.xlane.xlu1 %3362 }
 0x50a   :  { %4283 = vst [vmem:[#allocation10 + $0x2d8] sm:$0xff] %v4155_v6  ;;  %v3890_v40 = vmul.f32 %v5250_v25, %v8355_v35  ;;  %5263 = vrsqrt.f32 %v3637_v5  ;;  %v3642_v17 = vadd.f32 1e-05, %v3514_v34  ;;  %v3515_v27 = vmul.f32 0.0078125, %v3363_v33 }
 0x50b   :  { %v5252_v36 = vpop.eup %5251  ;;  %v4152_v32 = vadd.f32 %v7697_v23, %v4018_v56  ;;  %v4019_v50 = vmul.f32 %v7681_v62, %v3885_v53  ;;  %v3357_v57 = vpop.xlane.xlu0 %3356 }
 0x50c   :  { %v4024_v7 = vmul.f32 %v7681_v62, %v3890_v40  ;;  %v3891_v45 = vmul.f32 %v5252_v36, %v8356_v44  ;;  %5265 = vrsqrt.f32 %v3642_v17  ;;  %v3643_v24 = vadd.f32 1e-05, %v3515_v27 }
 0x50d   :  { %4280 = vst [vmem:[#allocation10 + $0x2c0] sm:$0xff] %v4152_v32  ;;  %v4153_v11 = vadd.f32 %v7697_v23, %v4019_v50  ;;  %v3512_v10 = vmul.f32 0.0078125, %v3357_v57  ;;  %v3359_v31 = vpop.xlane.xlu1 %3358 }
 0x50e   :  { %v5254_v43 = vpop.eup %5253  ;;  %v4158_v60 = vadd.f32 %v7697_v23, %v4024_v7  ;;  %v4025_v14 = vmul.f32 %v7681_v62, %v3891_v45  ;;  %5267 = vrsqrt.f32 %v3643_v24  ;;  %v3513_v12 = vmul.f32 0.0078125, %v3359_v31 }
 0x50f   :  { %v5256_v4 = vpop.eup %5255  ;;  %4281 = vst [vmem:[#allocation10 + $0x2c8] sm:$0xff] %v4153_v11  ;;  %v3888_v18 = vmul.f32 %v5254_v43, %v7376_v9  ;;  %v3640_v46 = vadd.f32 1e-05, %v3512_v10  ;;  %v3369_v19 = vpop.xlane.xlu0 %3368 }
 0x510   :  { %4286 = vst [vmem:[#allocation10 + $0x2f0] sm:$0xff] %v4158_v60  ;;  %v4159_v41 = vadd.f32 %v7697_v23, %v4025_v14  ;;  %v3889_v52 = vmul.f32 %v5256_v4, %v7383_v38  ;;  %v3641_v22 = vadd.f32 1e-05, %v3513_v12  ;;  %v3518_v15 = vmul.f32 0.0078125, %v3369_v19 }
 0x511   :  { %v5258_v58 = vpop.eup %5257  ;;  %v4022_v28 = vmul.f32 %v7681_v62, %v3888_v18  ;;  %5269 = vrsqrt.f32 %v3640_v46  ;;  %v3371_v6 = vpop.xlane.xlu1 %3370 }
 0x512   :  { %4287 = vst [vmem:[#allocation10 + $0x2f8] sm:$0xff] %v4159_v41  ;;  %v4023_v5 = vmul.f32 %v7681_v62, %v3889_v52  ;;  %v3894_v34 = vmul.f32 %v5258_v58, %v7390_v1  ;;  %5271 = vrsqrt.f32 %v3641_v22  ;;  %v3646_v9 = vadd.f32 1e-05, %v3518_v15  ;;  %v8357_v22 = vld [vmem:[#allocation39_spill] sm:$0xff] }
 0x513   :  { %v5260_v25 = vpop.eup %5259  ;;  %v4156_v56 = vadd.f32 %v7697_v23, %v4022_v28  ;;  %v3519_v53 = vmul.f32 0.0078125, %v3371_v6  ;;  %v3365_v33 = vpop.xlane.xlu0 %3364 }
 0x514   :  { %v4157_v38 = vadd.f32 %v7697_v23, %v4023_v5  ;;  %v4028_v35 = vmul.f32 %v7681_v62, %v3894_v34  ;;  %v3895_v40 = vmul.f32 %v5260_v25, %v7405_v42  ;;  %5273 = vrsqrt.f32 %v3646_v9 }
 0x515   :  { %4284 = vst [vmem:[#allocation10 + $0x2e0] sm:$0xff] %v4156_v56  ;;  %v3647_v17 = vadd.f32 1e-05, %v3519_v53  ;;  %v3516_v27 = vmul.f32 0.0078125, %v3365_v33  ;;  %v3367_v36 = vpop.xlane.xlu1 %3366 }
 0x516   :  { %v5262_v32 = vpop.eup %5261  ;;  %4285 = vst [vmem:[#allocation10 + $0x2e8] sm:$0xff] %v4157_v38  ;;  %v4162_v1 = vadd.f32 %v7697_v23, %v4028_v35  ;;  %v4029_v50 = vmul.f32 %v7681_v62, %v3895_v40  ;;  %v3517_v57 = vmul.f32 0.0078125, %v3367_v36 }
 0x517   :  { %v5264_v7 = vpop.eup %5263  ;;  %v3892_v44 = vmul.f32 %v5262_v32, %v7410_v8  ;;  %5275 = vrsqrt.f32 %v3647_v17  ;;  %v3644_v45 = vadd.f32 1e-05, %v3516_v27  ;;  %v3377_v24 = vpop.xlane.xlu0 %3376 }
 0x518   :  { %4290 = vst [vmem:[#allocation10 + $0x310] sm:$0xff] %v4162_v1  ;;  %v4163_v42 = vadd.f32 %v7697_v23, %v4029_v50  ;;  %v3893_v11 = vmul.f32 %v5264_v7, %v7417_v2  ;;  %v3645_v10 = vadd.f32 1e-05, %v3517_v57  ;;  %v3522_v31 = vmul.f32 0.0078125, %v3377_v24 }
 0x519   :  { %v5266_v43 = vpop.eup %5265  ;;  %v4026_v60 = vmul.f32 %v7681_v62, %v3892_v44  ;;  %5277 = vrsqrt.f32 %v3644_v45  ;;  %v3379_v14 = vpop.xlane.xlu1 %3378 }
 0x51a   :  { %4291 = vst [vmem:[#allocation10 + $0x318] sm:$0xff] %v4163_v42  ;;  %v4027_v12 = vmul.f32 %v7681_v62, %v3893_v11  ;;  %v3898_v8 = vmul.f32 %v5266_v43, %v7424_v29  ;;  %5279 = vrsqrt.f32 %v3645_v10  ;;  %v3650_v4 = vadd.f32 1e-05, %v3522_v31  ;;  %v8358_v11 = vld [vmem:[#allocation80_spill] sm:$0xff] }
 0x51b   :  { %v5268_v18 = vpop.eup %5267  ;;  %v4160_v46 = vadd.f32 %v7697_v23, %v4026_v60  ;;  %v3523_v19 = vmul.f32 0.0078125, %v3379_v14  ;;  %v3373_v41 = vpop.xlane.xlu0 %3372 }
 0x51c   :  { %v4161_v2 = vadd.f32 %v7697_v23, %v4027_v12  ;;  %v4032_v52 = vmul.f32 %v7681_v62, %v3898_v8  ;;  %v3899_v15 = vmul.f32 %v5268_v18, %v8357_v22  ;;  %5281 = vrsqrt.f32 %v3650_v4 }
 0x51d   :  { %4288 = vst [vmem:[#allocation10 + $0x300] sm:$0xff] %v4160_v46  ;;  %v3651_v58 = vadd.f32 1e-05, %v3523_v19  ;;  %v3520_v28 = vmul.f32 0.0078125, %v3373_v41  ;;  %v3375_v6 = vpop.xlane.xlu1 %3374 }
 0x51e   :  { %v5270_v5 = vpop.eup %5269  ;;  %4289 = vst [vmem:[#allocation10 + $0x308] sm:$0xff] %v4161_v2  ;;  %v4166_v29 = vadd.f32 %v7697_v23, %v4032_v52  ;;  %v4033_v34 = vmul.f32 %v7681_v62, %v3899_v15  ;;  %v3521_v9 = vmul.f32 0.0078125, %v3375_v6 }
 0x51f   :  { %v5272_v25 = vpop.eup %5271  ;;  %v3896_v56 = vmul.f32 %v5270_v5, %v7444_v59  ;;  %5283 = vrsqrt.f32 %v3651_v58  ;;  %v3648_v53 = vadd.f32 1e-05, %v3520_v28  ;;  %v3385_v33 = vpop.xlane.xlu0 %3384 }
 0x520   :  { %4294 = vst [vmem:[#allocation10 + $0x330] sm:$0xff] %v4166_v29  ;;  %v4167_v38 = vadd.f32 %v7697_v23, %v4033_v34  ;;  %v3897_v35 = vmul.f32 %v5272_v25, %v7454_v30  ;;  %v3649_v40 = vadd.f32 1e-05, %v3521_v9  ;;  %v3526_v17 = vmul.f32 0.0078125, %v3385_v33 }
 0x521   :  { %v5274_v27 = vpop.eup %5273  ;;  %v4030_v36 = vmul.f32 %v7681_v62, %v3896_v56  ;;  %5285 = vrsqrt.f32 %v3648_v53  ;;  %v3387_v32 = vpop.xlane.xlu1 %3386 }
 0x522   :  { %4295 = vst [vmem:[#allocation10 + $0x338] sm:$0xff] %v4167_v38  ;;  %v4031_v1 = vmul.f32 %v7681_v62, %v3897_v35  ;;  %v3902_v59 = vmul.f32 %v5274_v27, %v7458_v49  ;;  %5287 = vrsqrt.f32 %v3649_v40  ;;  %v3654_v50 = vadd.f32 1e-05, %v3526_v17 }
 0x523   :  { %v4164_v57 = vadd.f32 %v7697_v23, %v4030_v36  ;;  %v3527_v7 = vmul.f32 0.0078125, %v3387_v32  ;;  %v3381_v44 = vpop.xlane.xlu0 %3380 }
 0x524   :  { %v5276_v45 = vpop.eup %5275  ;;  %v4165_v30 = vadd.f32 %v7697_v23, %v4031_v1  ;;  %v4036_v24 = vmul.f32 %v7681_v62, %v3902_v59  ;;  %5289 = vrsqrt.f32 %v3654_v50  ;;  %v3524_v42 = vmul.f32 0.0078125, %v3381_v44  ;;  %v8359_v59 = vld [vmem:[#allocation40_spill] sm:$0xff] }
 0x525   :  { %4292 = vst [vmem:[#allocation10 + $0x320] sm:$0xff] %v4164_v57  ;;  %v3903_v10 = vmul.f32 %v5276_v45, %v8358_v11  ;;  %v3655_v31 = vadd.f32 1e-05, %v3527_v7  ;;  %v3383_v43 = vpop.xlane.xlu1 %3382 }
 0x526   :  { %v5278_v60 = vpop.eup %5277  ;;  %4293 = vst [vmem:[#allocation10 + $0x328] sm:$0xff] %v4165_v30  ;;  %v4170_v49 = vadd.f32 %v7697_v23, %v4036_v24  ;;  %v3652_v14 = vadd.f32 1e-05, %v3524_v42  ;;  %v3525_v12 = vmul.f32 0.0078125, %v3383_v43  ;;  %v8360_v42 = vld [vmem:[#allocation108_spill] sm:$0xff] }
 0x527   :  { %v5280_v8 = vpop.eup %5279  ;;  %v4037_v4 = vmul.f32 %v7681_v62, %v3903_v10  ;;  %v3900_v18 = vmul.f32 %v5278_v60, %v7478_v47  ;;  %5291 = vrsqrt.f32 %v3655_v31  ;;  %v3393_v46 = vpop.xlane.xlu0 %3392 }
 0x528   :  { %4298 = vst [vmem:[#allocation10 + $0x350] sm:$0xff] %v4170_v49  ;;  %v3901_v19 = vmul.f32 %v5280_v8, %v7485_v3  ;;  %5293 = vrsqrt.f32 %v3652_v14  ;;  %v3653_v41 = vadd.f32 1e-05, %v3525_v12  ;;  %v3530_v2 = vmul.f32 0.0078125, %v3393_v46 }
 0x529   :  { %v5282_v52 = vpop.eup %5281  ;;  %v4171_v22 = vadd.f32 %v7697_v23, %v4037_v4  ;;  %v4034_v15 = vmul.f32 %v7681_v62, %v3900_v18  ;;  %v3395_v58 = vpop.xlane.xlu1 %3394  ;;  %v8361_v4 = vld [vmem:[#allocation41_spill] sm:$0xff] }
 0x52a   :  { %v4035_v28 = vmul.f32 %v7681_v62, %v3901_v19  ;;  %v3906_v6 = vmul.f32 %v5282_v52, %v7492_v39  ;;  %5295 = vrsqrt.f32 %v3653_v41  ;;  %v3658_v47 = vadd.f32 1e-05, %v3530_v2 }
 0x52b   :  { %4299 = vst [vmem:[#allocation10 + $0x358] sm:$0xff] %v4171_v22  ;;  %v4168_v5 = vadd.f32 %v7697_v23, %v4034_v15  ;;  %v3531_v29 = vmul.f32 0.0078125, %v3395_v58  ;;  %v3389_v3 = vpop.xlane.xlu0 %3388 }
 0x52c   :  { %v5284_v34 = vpop.eup %5283  ;;  %v4169_v9 = vadd.f32 %v7697_v23, %v4035_v28  ;;  %v4040_v25 = vmul.f32 %v7681_v62, %v3906_v6  ;;  %5297 = vrsqrt.f32 %v3658_v47  ;;  %v3528_v56 = vmul.f32 0.0078125, %v3389_v3 }
 0x52d   :  { %4296 = vst [vmem:[#allocation10 + $0x340] sm:$0xff] %v4168_v5  ;;  %v3907_v53 = vmul.f32 %v5284_v34, %v7507_v13  ;;  %v3659_v33 = vadd.f32 1e-05, %v3531_v29  ;;  %v3391_v38 = vpop.xlane.xlu1 %3390 }
 0x52e   :  { %v5286_v39 = vpop.eup %5285  ;;  %4297 = vst [vmem:[#allocation10 + $0x348] sm:$0xff] %v4169_v9  ;;  %v4174_v35 = vadd.f32 %v7697_v23, %v4040_v25  ;;  %v3656_v40 = vadd.f32 1e-05, %v3528_v56  ;;  %v3529_v17 = vmul.f32 0.0078125, %v3391_v38  ;;  %v8362_v56 = vld [vmem:[#allocation111_spill] sm:$0xff] }
 0x52f   :  { %v5288_v27 = vpop.eup %5287  ;;  %v4041_v36 = vmul.f32 %v7681_v62, %v3907_v53  ;;  %v3904_v32 = vmul.f32 %v5286_v39, %v7512_v20  ;;  %5299 = vrsqrt.f32 %v3659_v33  ;;  %v3401_v1 = vpop.xlane.xlu0 %3400 }
 0x530   :  { %4302 = vst [vmem:[#allocation10 + $0x370] sm:$0xff] %v4174_v35  ;;  %v3905_v50 = vmul.f32 %v5288_v27, %v8359_v59  ;;  %5301 = vrsqrt.f32 %v3656_v40  ;;  %v3657_v13 = vadd.f32 1e-05, %v3529_v17  ;;  %v3534_v57 = vmul.f32 0.0078125, %v3401_v1  ;;  %v8363_v27 = vld [vmem:[#allocation42_spill] sm:$0xff] }
 0x531   :  { %v5290_v7 = vpop.eup %5289  ;;  %v4175_v44 = vadd.f32 %v7697_v23, %v4041_v36  ;;  %v4038_v45 = vmul.f32 %v7681_v62, %v3904_v32  ;;  %v3403_v30 = vpop.xlane.xlu1 %3402 }
 0x532   :  { %v4039_v24 = vmul.f32 %v7681_v62, %v3905_v50  ;;  %v3910_v11 = vmul.f32 %v5290_v7, %v8360_v42  ;;  %5303 = vrsqrt.f32 %v3657_v13  ;;  %v3662_v20 = vadd.f32 1e-05, %v3534_v57 }
 0x533   :  { %4303 = vst [vmem:[#allocation10 + $0x378] sm:$0xff] %v4175_v44  ;;  %v4172_v10 = vadd.f32 %v7697_v23, %v4038_v45  ;;  %v3535_v31 = vmul.f32 0.0078125, %v3403_v30  ;;  %v3397_v43 = vpop.xlane.xlu0 %3396 }
 0x534   :  { %v5292_v60 = vpop.eup %5291  ;;  %v4173_v49 = vadd.f32 %v7697_v23, %v4039_v24  ;;  %v4044_v14 = vmul.f32 %v7681_v62, %v3910_v11  ;;  %5305 = vrsqrt.f32 %v3662_v20  ;;  %v3532_v12 = vmul.f32 0.0078125, %v3397_v43 }
 0x535   :  { %v5294_v8 = vpop.eup %5293  ;;  %4300 = vst [vmem:[#allocation10 + $0x360] sm:$0xff] %v4172_v10  ;;  %v3911_v18 = vmul.f32 %v5292_v60, %v8361_v4  ;;  %v3663_v46 = vadd.f32 1e-05, %v3535_v31  ;;  %v3399_v19 = vpop.xlane.xlu1 %3398 }
 0x536   :  { %4301 = vst [vmem:[#allocation10 + $0x368] sm:$0xff] %v4173_v49  ;;  %v4178_v41 = vadd.f32 %v7697_v23, %v4044_v14  ;;  %v3908_v2 = vmul.f32 %v5294_v8, %v7542_v48  ;;  %v3660_v52 = vadd.f32 1e-05, %v3532_v12  ;;  %v3533_v22 = vmul.f32 0.0078125, %v3399_v19  ;;  %v8364_v8 = vld [vmem:[#allocation112_spill] sm:$0xff] }
 0x537   :  { %v5296_v15 = vpop.eup %5295  ;;  %v4045_v58 = vmul.f32 %v7681_v62, %v3911_v18  ;;  %5307 = vrsqrt.f32 %v3663_v46 }
 0x538   :  { %4306 = vst [vmem:[#allocation10 + $0x390] sm:$0xff] %v4178_v41  ;;  %v4042_v28 = vmul.f32 %v7681_v62, %v3908_v2  ;;  %v3909_v6 = vmul.f32 %v5296_v15, %v7552_v61  ;;  %5309 = vrsqrt.f32 %v3660_v52  ;;  %v3661_v47 = vadd.f32 1e-05, %v3533_v22  ;;  %v3405_v5 = vpop.xlane.xlu0 %3404 }
 0x539   :  { %v5298_v29 = vpop.eup %5297  ;;  %v4179_v3 = vadd.f32 %v7697_v23, %v4045_v58  ;;  %v3536_v34 = vmul.f32 0.0078125, %v3405_v5  ;;  %v3407_v9 = vpop.xlane.xlu1 %3406 }
 0x53a   :  { %v4176_v48 = vadd.f32 %v7697_v23, %v4042_v28  ;;  %v4043_v25 = vmul.f32 %v7681_v62, %v3909_v6  ;;  %v3914_v53 = vmul.f32 %v5298_v29, %v8362_v56  ;;  %5311 = vrsqrt.f32 %v3661_v47 }
 0x53b   :  { %4307 = vst [vmem:[#allocation10 + $0x398] sm:$0xff] %v4179_v3  ;;  %v3664_v33 = vadd.f32 1e-05, %v3536_v34  ;;  %v3537_v38 = vmul.f32 0.0078125, %v3407_v9 }
 0x53c   :  { %v5300_v39 = vpop.eup %5299  ;;  %4304 = vst [vmem:[#allocation10 + $0x380] sm:$0xff] %v4176_v48  ;;  %v4177_v61 = vadd.f32 %v7697_v23, %v4043_v25  ;;  %v4048_v35 = vmul.f32 %v7681_v62, %v3914_v53  ;;  %v3409_v40 = vpop.xlane.xlu0 %3408 }
 0x53d   :  { %v5302_v17 = vpop.eup %5301  ;;  %v3915_v36 = vmul.f32 %v5300_v39, %v8363_v27  ;;  %5313 = vrsqrt.f32 %v3664_v33  ;;  %v3665_v32 = vadd.f32 1e-05, %v3537_v38  ;;  %v3538_v1 = vmul.f32 0.0078125, %v3409_v40  ;;  %v3411_v59 = vpop.xlane.xlu1 %3410 }
 0x53e   :  { %4305 = vst [vmem:[#allocation10 + $0x388] sm:$0xff] %v4177_v61  ;;  %v4182_v50 = vadd.f32 %v7697_v23, %v4048_v35  ;;  %v3912_v13 = vmul.f32 %v5302_v17, %v7572_v16  ;;  %v3539_v57 = vmul.f32 0.0078125, %v3411_v59 }
 0x53f   :  { %v5304_v7 = vpop.eup %5303  ;;  %v4049_v44 = vmul.f32 %v7681_v62, %v3915_v36  ;;  %5315 = vrsqrt.f32 %v3665_v32  ;;  %v3666_v45 = vadd.f32 1e-05, %v3538_v1 }
 0x540   :  { %4310 = vst [vmem:[#allocation10 + $0x3b0] sm:$0xff] %v4182_v50  ;;  %v4046_v30 = vmul.f32 %v7681_v62, %v3912_v13  ;;  %v3913_v24 = vmul.f32 %v5304_v7, %v7578_v63  ;;  %v3667_v42 = vadd.f32 1e-05, %v3539_v57 }
 0x541   :  { %v5306_v11 = vpop.eup %5305  ;;  %v4183_v20 = vadd.f32 %v7697_v23, %v4049_v44  ;;  %5317 = vrsqrt.f32 %v3666_v45 }
 0x542   :  { %v4180_v10 = vadd.f32 %v7697_v23, %v4046_v30  ;;  %v4047_v16 = vmul.f32 %v7681_v62, %v3913_v24  ;;  %v3918_v31 = vmul.f32 %v5306_v11, %v7584_v21  ;;  %5319 = vrsqrt.f32 %v3667_v42  ;;  %v5328_v21 = vld [vmem:[%s7891_s7] ss:$0 sm:$0xff]  ;;  %s5445_s7 = smov [#allocation10]  }
 0x543   :  { %4311 = vst [vmem:[#allocation10 + $0x3b8] sm:$0xff] %v4183_v20  ;;  %s4325_s30 = sshll.u32 %s5445_s7, 4  ;;  %s4326_s30 = int_to_ptr.vmem [resolvable:$true] %s4325_s30 }
 0x544   :  { %v5308_v43 = vpop.eup %5307  ;;  %4308 = vst [vmem:[#allocation10 + $0x3a0] sm:$0xff] %v4180_v10  ;;  %v4181_v60 = vadd.f32 %v7697_v23, %v4047_v16  ;;  %v4052_v49 = vmul.f32 %v7681_v62, %v3918_v31  ;;  %s5409_s3 = scalar_lea.vmem %s4326_s30, 16384  ;;  %p5414_p7 = scmp.lt.s32.totalorder %s4326_s30, %s4326_s30 }
 0x545   :  { %v5310_v63 = vpop.eup %5309  ;;  %v3919_v14 = vmul.f32 %v5308_v43, %v7595_v54  ;;  %p5410_p6 = scmp.ne.s32.totalorder %s4326_s30, %s5409_s3  ;;  %p5415_p8 = scmp.lt.s32.totalorder %s5409_s3, %s5409_s3 }
 0x546   :  { %4309 = vst [vmem:[#allocation10 + $0x3a8] sm:$0xff] %v4181_v60  ;;  %v4186_v12 = vadd.f32 %v7697_v23, %v4052_v49  ;;  %v3916_v4 = vmul.f32 %v5310_v63, %v8364_v8 }
 0x547   :  { %v5312_v18 = vpop.eup %5311  ;;  %v4053_v46 = vmul.f32 %v5328_v21, %v3919_v14  ;;  %p5416_p9 = por %p5415_p8, %p5414_p7 }
 0x548   :  { %4314 = vst [vmem:[#allocation10 + $0x3d0] sm:$0xff] %v4186_v12  ;;  %v4050_v19 = vmul.f32 %v5328_v21, %v3916_v4  ;;  %v3917_v41 = vmul.f32 %v5312_v18, %v7604_v55 }
 0x549   :  { %v4187_v62 = vadd.f32 %v7697_v23, %v4053_v46  ;;  %p5417_p10 = pnand %p5416_p9, %p5410_p6 }
 0x54a   :  { %v5314_v2 = vpop.eup %5313  ;;  %v4184_v54 = vadd.f32 %v7697_v23, %v4050_v19  ;;  %v4051_v52 = vmul.f32 %v5328_v21, %v3917_v41 }
 0x54b   :  { %4315 = vst [vmem:[#allocation10 + $0x3d8] sm:$0xff] %v4187_v62  ;;  %v3920_v22 = vmul.f32 %v5314_v2, %v7618_v37 }
 0x54c   :  { %v5316_v15 = vpop.eup %5315  ;;  %4312 = vst [vmem:[#allocation10 + $0x3c0] sm:$0xff] %v4184_v54  ;;  %v4185_v58 = vadd.f32 %v7697_v23, %v4051_v52 }
 0x54d   :  { %v4054_v28 = vmul.f32 %v5328_v21, %v3920_v22  ;;  %v3921_v6 = vmul.f32 %v5316_v15, %v7622_v51 }
 0x54e   :  { %v5318_v47 = vpop.eup %5317  ;;  %4313 = vst [vmem:[#allocation10 + $0x3c8] sm:$0xff] %v4185_v58 }
 0x54f   :  { %v5320_v5 = vpop.eup %5319  ;;  %v4188_v55 = vadd.f32 %v7697_v23, %v4054_v28  ;;  %v4055_v29 = vmul.f32 %v5328_v21, %v3921_v6  ;;  %v3922_v3 = vmul.f32 %v5318_v47, %v7625_v26 }
 0x550   :  { %v3923_v34 = vmul.f32 %v5320_v5, %v7628_v0 }
 0x551   :  { %4316 = vst [vmem:[#allocation10 + $0x3e0] sm:$0xff] %v4188_v55  ;;  %v4189_v37 = vadd.f32 %v7697_v23, %v4055_v29  ;;  %v4056_v9 = vmul.f32 %v5328_v21, %v3922_v3 }
 0x552   :  { %v4057_v48 = vmul.f32 %v5328_v21, %v3923_v34 }
 0x553   :  { %4317 = vst [vmem:[#allocation10 + $0x3e8] sm:$0xff] %v4189_v37  ;;  %v4190_v51 = vadd.f32 %v7697_v23, %v4056_v9 }
 0x554   :  { %v4191_v25 = vadd.f32 %v7697_v23, %v4057_v48 }
 0x555   :  { %4318 = vst [vmem:[#allocation10 + $0x3f0] sm:$0xff] %v4190_v51 }
 0x556   :  { %4319 = vst [vmem:[#allocation10 + $0x3f8] sm:$0xff] %v4191_v25 }
 0x557   :  { %5420 = shalt.err (!%p5417_p10)
}
 0x558   :  { %4331 = dma.vmem_to_hbm [thread:$0]  %s4326_s30, 16384, %s7893_s9, [#allocation4], %s5441_s19, %s5441_s19, %s5442_s20  }
 0x559   :  { %5435 = dma.done.wait [#allocation4], 16384  }
 0x55a   :  { %5436 = vsyncadd [#allocation4], 4294950912 }
 0x55b   :  { %4335 = vsyncpa [#allocation3], 1 }
 0x55c   :  { %4336 = vsyncpa [#allocation6], 1 }
 0x55d   :  { %4337 = vsyncpa [#allocation9], 1 }
 0x55e   :  { %4338 = vsyncpa [#allocation4], 1 }

</bundles_post_ra>
